<compile_context>
chip_gen: v5e
topology: v5e:2x2
jax: 0.10.0
libtpu: 0.0.40
codegen_flags: <defaults>
</compile_context>

<pallas_src>
import functools
import math

import jax
import jax.numpy as jnp
from jax.experimental import pallas as pl
from jax.experimental.pallas import tpu as pltpu


def _ru(x, m):
    return (x + m - 1) // m * m


# ----------------------------------------------------------------------------- Pallas kernels ----

def _mm_affine_kernel(a_ref, b_ref, s_ref, c_ref, *refs, relu, has_res):
    """out = (A @ B) * scale + bias (+ residual), optional ReLU.

    Single K block: the whole reduction happens in one jnp.dot (f32 accumulation on the MXU),
    so there is no accumulator scratch and no init/finalize phase.  Epilogue math is f32
    (VPU-safe on v5e, which lacks bf16 VALU), then cast to the output dtype.
    """
    o_ref = refs[-1]
    acc = jnp.dot(a_ref[...], b_ref[...], preferred_element_type=jnp.float32)
    y = acc * s_ref[...] + c_ref[...]
    if has_res:
        y = y + refs[0][...].astype(jnp.float32)
    if relu:
        y = jnp.maximum(y, 0.0)
    o_ref[...] = y.astype(o_ref.dtype)


def _pick_tiles(M, N, K):
    """Full-K single block; 256-wide N tiles when Cout allows; >=2 parallel blocks when cheap."""
    tm = min(128, _ru(M, 16))
    tn = min(256, _ru(N, 128))
    kp = _ru(K, 128)
    # Keep at least two blocks on a "parallel" grid axis when possible (megacore / v7x 2nd TC).
    if _ru(M, tm) // tm == 1 and _ru(N, tn) // tn == 1 and tm >= 32:
        tm //= 2
    return tm, tn, kp


def matmul_affine(a, b, scale, bias, residual=None, *, relu, out_dtype=jnp.bfloat16):
    """a:(M,K) @ b:(K,N), per-column affine, optional fused residual add and ReLU.

    Operands are cast to bf16 (MXU-native, halves HBM traffic); scale/bias and the accumulator
    stay f32.  Pads to tile multiples and slices back.
    """
    M, K = a.shape
    _, N = b.shape
    tm, tn, Kp = _pick_tiles(M, N, K)
    Mp, Np = _ru(M, tm), _ru(N, tn)

    a_p = jnp.pad(a.astype(jnp.bfloat16), ((0, Mp - M), (0, Kp - K)))
    b_p = jnp.pad(b.astype(jnp.bfloat16), ((0, Kp - K), (0, Np - N)))
    s_p = jnp.pad(scale.astype(jnp.float32).reshape(1, -1), ((0, 0), (0, Np - N)))
    c_p = jnp.pad(bias.astype(jnp.float32).reshape(1, -1), ((0, 0), (0, Np - N)))

    inputs = [a_p, b_p, s_p, c_p]
    in_specs = [
        pl.BlockSpec((tm, Kp), lambda i, j: (i, 0)),
        pl.BlockSpec((Kp, tn), lambda i, j: (0, j)),
        pl.BlockSpec((1, tn), lambda i, j: (0, j)),
        pl.BlockSpec((1, tn), lambda i, j: (0, j)),
    ]
    has_res = residual is not None
    if has_res:
        r_p = jnp.pad(residual.astype(jnp.bfloat16), ((0, Mp - M), (0, Np - N)))
        inputs.append(r_p)
        in_specs.append(pl.BlockSpec((tm, tn), lambda i, j: (i, j)))

    out = pl.pallas_call(
        functools.partial(_mm_affine_kernel, relu=relu, has_res=has_res),
        out_shape=jax.ShapeDtypeStruct((Mp, Np), out_dtype),
        grid_spec=pltpu.PrefetchScalarGridSpec(
            num_scalar_prefetch=0,
            grid=(Mp // tm, Np // tn),
            in_specs=in_specs,
            out_specs=pl.BlockSpec((tm, tn), lambda i, j: (i, j)),
        ),
        compiler_params=pltpu.CompilerParams(
            dimension_semantics=("parallel", "parallel")),
    )(*inputs)
    return out[:M, :N]


# --------------------------------------------------------------------------------- conv glue ----

def _im2col(x, kh, kw, stride, pad):
    """x: NHWC (bf16) -> (N*Ho*Wo, kh*kw*C) patches, row-major over (i, j, c)."""
    # TODO(synk): the halo'd, strided patch gather stays plain-JAX (bf16 concat); a fully fused
    # Pallas version needs manual halo DMA (memory_space=pl.ANY + make_async_copy), not BlockSpec.
    xp = jnp.pad(x, ((0, 0), (pad, pad), (pad, pad), (0, 0)))
    N, Hp, Wp, C = xp.shape
    Ho = (Hp - kh) // stride + 1
    Wo = (Wp - kw) // stride + 1
    cols = []
    for i in range(kh):
        for j in range(kw):
            cols.append(xp[:, i:i + stride * (Ho - 1) + 1:stride,
                           j:j + stride * (Wo - 1) + 1:stride, :])
    patches = jnp.concatenate(cols, axis=-1)          # (N, Ho, Wo, kh*kw*C)
    return patches.reshape(N * Ho * Wo, kh * kw * C), Ho, Wo


def conv_bn(x, w, bn_scale, bn_bias, *, stride, pad, relu, residual=None):
    """Conv2d(no bias) + folded BatchNorm (+fused residual +ReLU).  x: NHWC bf16, w: (kh,kw,Cin,Cout)."""
    N, H, W, _ = x.shape
    kh, kw, cin, cout = w.shape
    if kh == 1 and kw == 1 and stride == 1 and pad == 0:
        patches, Ho, Wo = x.reshape(N * H * W, cin), H, W      # 1x1 conv: no im2col needed
    else:
        patches, Ho, Wo = _im2col(x, kh, kw, stride, pad)
    res2d = None if residual is None else residual.reshape(N * Ho * Wo, cout)
    y = matmul_affine(patches, w.reshape(kh * kw * cin, cout), bn_scale, bn_bias,
                      residual=res2d, relu=relu)
    return y.reshape(N, Ho, Wo, cout)


def maxpool_3x3_s2_p1(x):
    """PyTorch MaxPool2d(kernel_size=3, stride=2, padding=1) on NHWC input.

    Implemented as an XLA-fused 9-tap maximum tree over strided views: the stride-2 halo windows
    are not expressible with Blocked BlockSpec index maps, and the previous 9x stacked-tensor
    Pallas reduction paid ~9x HBM traffic for a purely memory-bound op.
    """
    N, H, W, C = x.shape
    xp = jnp.pad(x, ((0, 0), (1, 1), (1, 1), (0, 0)), constant_values=-jnp.inf)
    Ho = (H + 2 - 3) // 2 + 1
    Wo = (W + 2 - 3) // 2 + 1
    out = None
    for i in range(3):
        for j in range(3):
            v = xp[:, i:i + 2 * (Ho - 1) + 1:2, j:j + 2 * (Wo - 1) + 1:2, :]
            out = v if out is None else jnp.maximum(out, v)
    return out


# ------------------------------------------------------------------------------- parameters ----

def _fold_bn(key, c, eps=1e-5):
    k1, k2, k3 = jax.random.split(key, 3)
    gamma = 1.0 + 0.1 * jax.random.normal(k1, (c,), jnp.float32)
    beta = 0.1 * jax.random.normal(k2, (c,), jnp.float32)
    mean = 0.1 * jax.random.normal(k3, (c,), jnp.float32)
    var = jnp.ones((c,), jnp.float32)
    scale = gamma / jnp.sqrt(var + eps)
    bias = beta - mean * scale
    return scale, bias


def _conv_w(key, kh, kw, cin, cout):
    return jax.random.normal(key, (kh, kw, cin, cout), jnp.float32) / math.sqrt(kh * kw * cin)


def init_params(key, fc_in):
    keys = iter(jax.random.split(key, 64))
    p = {}
    p["conv1_w"] = _conv_w(next(keys), 7, 7, 3, 64)
    p["bn1"] = _fold_bn(next(keys), 64)
    # resnet50 layer1: 3 bottleneck blocks, 64 -> (64, 64, 256), stride 1, downsample in block 0
    blocks = []
    cin = 64
    for b in range(3):
        blk = {
            "w1": _conv_w(next(keys), 1, 1, cin, 64), "bn1": _fold_bn(next(keys), 64),
            "w2": _conv_w(next(keys), 3, 3, 64, 64), "bn2": _fold_bn(next(keys), 64),
            "w3": _conv_w(next(keys), 1, 1, 64, 256), "bn3": _fold_bn(next(keys), 256),
        }
        if b == 0:
            blk["wd"] = _conv_w(next(keys), 1, 1, cin, 256)
            blk["bnd"] = _fold_bn(next(keys), 256)
        blocks.append(blk)
        cin = 256
    p["layer1"] = blocks
    # fc: (256 * Hf * Wf) -> 128.  (Original module uses 256*56*28 for 224x112 inputs; here the
    # spatial size is small, so fc_in is derived from the actual feature-map shape.)
    p["fc_w"] = 0.01 * jax.random.normal(next(keys), (fc_in, 128), jnp.float32)
    p["fc_b"] = 0.01 * jax.random.normal(next(keys), (128,), jnp.float32)
    return p


# ----------------------------------------------------------------------------------- forward ----

def _bottleneck(x, blk):
    identity = x
    if "wd" in blk:
        identity = conv_bn(x, blk["wd"], *blk["bnd"], stride=1, pad=0, relu=False)
    out = conv_bn(x, blk["w1"], *blk["bn1"], stride=1, pad=0, relu=True)
    out = conv_bn(out, blk["w2"], *blk["bn2"], stride=1, pad=1, relu=True)
    # residual add + ReLU fused into the expand-conv GEMM epilogue (no separate add_relu pass)
    return conv_bn(out, blk["w3"], *blk["bn3"], stride=1, pad=0, relu=True, residual=identity)


def embedding_net_forward(x_nchw, params, ncc=False):
    # TODO(synk): BatchNorm is applied in inference mode (folded running stats); the original
    # torch module would use batch statistics unless .eval() is called.
    x = jnp.transpose(x_nchw, (0, 2, 3, 1)).astype(jnp.bfloat16)  # NCHW -> NHWC, bf16 activations
    x = conv_bn(x, params["conv1_w"], *params["bn1"], stride=2, pad=3, relu=True)
    x = maxpool_3x3_s2_p1(x)
    for blk in params["layer1"]:
        x = _bottleneck(x, blk)
    if ncc:
        return jnp.transpose(x, (0, 3, 1, 2))                     # return feature map (NCHW)
    x_nchw_out = jnp.transpose(x, (0, 3, 1, 2))                   # flatten in PyTorch NCHW order
    flat = x_nchw_out.reshape(x_nchw_out.shape[0], -1)
    ones = jnp.ones((params["fc_w"].shape[1],), jnp.float32)
    return matmul_affine(flat, params["fc_w"], ones, params["fc_b"],
                         relu=False, out_dtype=jnp.float32)


# -------------------------------------------------------------------------------------- main ----

if __name__ == "__main__":
    key = jax.random.PRNGKey(0)
    k_x, k_p = jax.random.split(key)

    # Small NCHW input consistent with the module's forward (stride-2 conv + stride-2 maxpool).
    x = jax.random.normal(k_x, (2, 3, 32, 16), jnp.float32)

    # Feature map after layer1: 256 channels, spatial = (32/4, 16/4) = (8, 4)  ->  fc_in = 8192.
    fc_in = 256 * (32 // 4) * (16 // 4)
    params = init_params(k_p, fc_in)

    fwd = jax.jit(embedding_net_forward)
    out = jax.block_until_ready(fwd(x, params))
    assert out.shape == (2, 128) and out.dtype == jnp.float32
    assert bool(jnp.all(jnp.isfinite(out)))
    print("KERNEL_OK")
</pallas_src>

<mosaic_0001>
module attributes {stable_mosaic.version = 11 : i64} {
  func.func @_mm_affine_kernel(%arg0: i32, %arg1: i32, %arg2: memref<128x256xbf16, #tpu.memory_space<vmem>>, %arg3: memref<256x128xbf16, #tpu.memory_space<vmem>>, %arg4: memref<1x128xf32, #tpu.memory_space<vmem>>, %arg5: memref<1x128xf32, #tpu.memory_space<vmem>>, %arg6: memref<128x128xbf16, #tpu.memory_space<vmem>>) attributes {dimension_semantics = [#tpu.dimension_semantics<parallel>, #tpu.dimension_semantics<parallel>], iteration_bounds = array<i64: 2, 1>, scalar_prefetch = 0 : i64, scratch_operands = 0 : i64, tpu.core_type = #tpu.core_type<tc>, window_params = [{transform_indices = @transform_0, window_bounds = array<i64: 128, 256>}, {transform_indices = @transform_1, window_bounds = array<i64: 256, 128>}, {transform_indices = @transform_2, window_bounds = array<i64: 1, 128>}, {transform_indices = @transform_3, window_bounds = array<i64: 1, 128>}, {transform_indices = @transform_4, window_bounds = array<i64: 128, 128>}]} {
    %c0 = arith.constant 0 : index
    %c0_0 = arith.constant 0 : index
    %0 = vector.load %arg2[%c0, %c0_0] : memref<128x256xbf16, #tpu.memory_space<vmem>>, vector<128x256xbf16>
    %c0_1 = arith.constant 0 : index
    %c0_2 = arith.constant 0 : index
    %1 = vector.load %arg3[%c0_1, %c0_2] : memref<256x128xbf16, #tpu.memory_space<vmem>>, vector<256x128xbf16>
    %cst = arith.constant dense<0.000000e+00> : vector<128x128xf32>
    %2 = tpu.matmul %0, %1, %cst {dimension_numbers = #tpu.dot_dimension_numbers<[1], [0], [0], [1], [0, 0, 1, 1], [], []>} : vector<128x256xbf16>, vector<256x128xbf16>, vector<128x128xf32> -> vector<128x128xf32>
    %c0_3 = arith.constant 0 : index
    %c0_4 = arith.constant 0 : index
    %3 = vector.load %arg4[%c0_3, %c0_4] : memref<1x128xf32, #tpu.memory_space<vmem>>, vector<1x128xf32>
    %4 = vector.broadcast %3 : vector<1x128xf32> to vector<128x128xf32>
    %5 = arith.mulf %2, %4 : vector<128x128xf32>
    %c0_5 = arith.constant 0 : index
    %c0_6 = arith.constant 0 : index
    %6 = vector.load %arg5[%c0_5, %c0_6] : memref<1x128xf32, #tpu.memory_space<vmem>>, vector<1x128xf32>
    %7 = vector.broadcast %6 : vector<1x128xf32> to vector<128x128xf32>
    %8 = arith.addf %5, %7 : vector<128x128xf32>
    %cst_7 = arith.constant 0.000000e+00 : f32
    %9 = vector.broadcast %cst_7 : f32 to vector<128x128xf32>
    %10 = arith.maximumf %8, %9 : vector<128x128xf32>
    %11 = arith.truncf %10 : vector<128x128xf32> to vector<128x128xbf16>
    %c0_8 = arith.constant 0 : index
    %c0_9 = arith.constant 0 : index
    %12 = vector.load %arg6[%c0_8, %c0_9] : memref<128x128xbf16, #tpu.memory_space<vmem>>, vector<128x128xbf16>
    tpu.vector_store %arg6[%c0_8, %c0_9], %11 {strides = array<i32>} : memref<128x128xbf16, #tpu.memory_space<vmem>>, vector<128x128xbf16>,
    return
  }
  func.func @transform_0(%arg0: i32, %arg1: i32) -> (i32, i32) {
    %c0_i32 = arith.constant 0 : i32
    %c0_i32_0 = arith.constant 0 : i32
    return %arg0, %c0_i32 : i32, i32
  }
  func.func @transform_1(%arg0: i32, %arg1: i32) -> (i32, i32) {
    %c0_i32 = arith.constant 0 : i32
    %c0_i32_0 = arith.constant 0 : i32
    return %c0_i32, %arg1 : i32, i32
  }
  func.func @transform_2(%arg0: i32, %arg1: i32) -> (i32, i32) {
    %c0_i32 = arith.constant 0 : i32
    %c0_i32_0 = arith.constant 0 : i32
    return %c0_i32, %arg1 : i32, i32
  }
  func.func @transform_3(%arg0: i32, %arg1: i32) -> (i32, i32) {
    %c0_i32 = arith.constant 0 : i32
    %c0_i32_0 = arith.constant 0 : i32
    return %c0_i32, %arg1 : i32, i32
  }
  func.func @transform_4(%arg0: i32, %arg1: i32) -> (i32, i32) {
    %c0_i32 = arith.constant 0 : i32
    return %arg0, %arg1 : i32, i32
  }
}

module attributes {stable_mosaic.version = 11 : i64} {
  func.func @_mm_affine_kernel(%arg0: i32, %arg1: i32, %arg2: memref<32x128xbf16, #tpu.memory_space<vmem>>, %arg3: memref<128x128xbf16, #tpu.memory_space<vmem>>, %arg4: memref<1x128xf32, #tpu.memory_space<vmem>>, %arg5: memref<1x128xf32, #tpu.memory_space<vmem>>, %arg6: memref<32x128xbf16, #tpu.memory_space<vmem>>) attributes {dimension_semantics = [#tpu.dimension_semantics<parallel>, #tpu.dimension_semantics<parallel>], iteration_bounds = array<i64: 2, 1>, scalar_prefetch = 0 : i64, scratch_operands = 0 : i64, tpu.core_type = #tpu.core_type<tc>, window_params = [{transform_indices = @transform_0, window_bounds = array<i64: 32, 128>}, {transform_indices = @transform_1, window_bounds = array<i64: 128, 128>}, {transform_indices = @transform_2, window_bounds = array<i64: 1, 128>}, {transform_indices = @transform_3, window_bounds = array<i64: 1, 128>}, {transform_indices = @transform_4, window_bounds = array<i64: 32, 128>}]} {
    %c0 = arith.constant 0 : index
    %c0_0 = arith.constant 0 : index
    %0 = vector.load %arg2[%c0, %c0_0] : memref<32x128xbf16, #tpu.memory_space<vmem>>, vector<32x128xbf16>
    %c0_1 = arith.constant 0 : index
    %c0_2 = arith.constant 0 : index
    %1 = vector.load %arg3[%c0_1, %c0_2] : memref<128x128xbf16, #tpu.memory_space<vmem>>, vector<128x128xbf16>
    %cst = arith.constant dense<0.000000e+00> : vector<32x128xf32>
    %2 = tpu.matmul %0, %1, %cst {dimension_numbers = #tpu.dot_dimension_numbers<[1], [0], [0], [1], [0, 0, 1, 1], [], []>} : vector<32x128xbf16>, vector<128x128xbf16>, vector<32x128xf32> -> vector<32x128xf32>
    %c0_3 = arith.constant 0 : index
    %c0_4 = arith.constant 0 : index
    %3 = vector.load %arg4[%c0_3, %c0_4] : memref<1x128xf32, #tpu.memory_space<vmem>>, vector<1x128xf32>
    %4 = vector.broadcast %3 : vector<1x128xf32> to vector<32x128xf32>
    %5 = arith.mulf %2, %4 : vector<32x128xf32>
    %c0_5 = arith.constant 0 : index
    %c0_6 = arith.constant 0 : index
    %6 = vector.load %arg5[%c0_5, %c0_6] : memref<1x128xf32, #tpu.memory_space<vmem>>, vector<1x128xf32>
    %7 = vector.broadcast %6 : vector<1x128xf32> to vector<32x128xf32>
    %8 = arith.addf %5, %7 : vector<32x128xf32>
    %cst_7 = arith.constant 0.000000e+00 : f32
    %9 = vector.broadcast %cst_7 : f32 to vector<32x128xf32>
    %10 = arith.maximumf %8, %9 : vector<32x128xf32>
    %11 = arith.truncf %10 : vector<32x128xf32> to vector<32x128xbf16>
    %c0_8 = arith.constant 0 : index
    %c0_9 = arith.constant 0 : index
    %12 = vector.load %arg6[%c0_8, %c0_9] : memref<32x128xbf16, #tpu.memory_space<vmem>>, vector<32x128xbf16>
    tpu.vector_store %arg6[%c0_8, %c0_9], %11 {strides = array<i32>} : memref<32x128xbf16, #tpu.memory_space<vmem>>, vector<32x128xbf16>,
    return
  }
  func.func @transform_0(%arg0: i32, %arg1: i32) -> (i32, i32) {
    %c0_i32 = arith.constant 0 : i32
    %c0_i32_0 = arith.constant 0 : i32
    return %arg0, %c0_i32 : i32, i32
  }
  func.func @transform_1(%arg0: i32, %arg1: i32) -> (i32, i32) {
    %c0_i32 = arith.constant 0 : i32
    %c0_i32_0 = arith.constant 0 : i32
    return %c0_i32, %arg1 : i32, i32
  }
  func.func @transform_2(%arg0: i32, %arg1: i32) -> (i32, i32) {
    %c0_i32 = arith.constant 0 : i32
    %c0_i32_0 = arith.constant 0 : i32
    return %c0_i32, %arg1 : i32, i32
  }
  func.func @transform_3(%arg0: i32, %arg1: i32) -> (i32, i32) {
    %c0_i32 = arith.constant 0 : i32
    %c0_i32_0 = arith.constant 0 : i32
    return %c0_i32, %arg1 : i32, i32
  }
  func.func @transform_4(%arg0: i32, %arg1: i32) -> (i32, i32) {
    %c0_i32 = arith.constant 0 : i32
    return %arg0, %arg1 : i32, i32
  }
}

module attributes {stable_mosaic.version = 11 : i64} {
  func.func @_mm_affine_kernel(%arg0: i32, %arg1: i32, %arg2: memref<32x640xbf16, #tpu.memory_space<vmem>>, %arg3: memref<640x128xbf16, #tpu.memory_space<vmem>>, %arg4: memref<1x128xf32, #tpu.memory_space<vmem>>, %arg5: memref<1x128xf32, #tpu.memory_space<vmem>>, %arg6: memref<32x128xbf16, #tpu.memory_space<vmem>>) attributes {dimension_semantics = [#tpu.dimension_semantics<parallel>, #tpu.dimension_semantics<parallel>], iteration_bounds = array<i64: 2, 1>, scalar_prefetch = 0 : i64, scratch_operands = 0 : i64, tpu.core_type = #tpu.core_type<tc>, window_params = [{transform_indices = @transform_0, window_bounds = array<i64: 32, 640>}, {transform_indices = @transform_1, window_bounds = array<i64: 640, 128>}, {transform_indices = @transform_2, window_bounds = array<i64: 1, 128>}, {transform_indices = @transform_3, window_bounds = array<i64: 1, 128>}, {transform_indices = @transform_4, window_bounds = array<i64: 32, 128>}]} {
    %c0 = arith.constant 0 : index
    %c0_0 = arith.constant 0 : index
    %0 = vector.load %arg2[%c0, %c0_0] : memref<32x640xbf16, #tpu.memory_space<vmem>>, vector<32x640xbf16>
    %c0_1 = arith.constant 0 : index
    %c0_2 = arith.constant 0 : index
    %1 = vector.load %arg3[%c0_1, %c0_2] : memref<640x128xbf16, #tpu.memory_space<vmem>>, vector<640x128xbf16>
    %cst = arith.constant dense<0.000000e+00> : vector<32x128xf32>
    %2 = tpu.matmul %0, %1, %cst {dimension_numbers = #tpu.dot_dimension_numbers<[1], [0], [0], [1], [0, 0, 1, 1], [], []>} : vector<32x640xbf16>, vector<640x128xbf16>, vector<32x128xf32> -> vector<32x128xf32>
    %c0_3 = arith.constant 0 : index
    %c0_4 = arith.constant 0 : index
    %3 = vector.load %arg4[%c0_3, %c0_4] : memref<1x128xf32, #tpu.memory_space<vmem>>, vector<1x128xf32>
    %4 = vector.broadcast %3 : vector<1x128xf32> to vector<32x128xf32>
    %5 = arith.mulf %2, %4 : vector<32x128xf32>
    %c0_5 = arith.constant 0 : index
    %c0_6 = arith.constant 0 : index
    %6 = vector.load %arg5[%c0_5, %c0_6] : memref<1x128xf32, #tpu.memory_space<vmem>>, vector<1x128xf32>
    %7 = vector.broadcast %6 : vector<1x128xf32> to vector<32x128xf32>
    %8 = arith.addf %5, %7 : vector<32x128xf32>
    %cst_7 = arith.constant 0.000000e+00 : f32
    %9 = vector.broadcast %cst_7 : f32 to vector<32x128xf32>
    %10 = arith.maximumf %8, %9 : vector<32x128xf32>
    %11 = arith.truncf %10 : vector<32x128xf32> to vector<32x128xbf16>
    %c0_8 = arith.constant 0 : index
    %c0_9 = arith.constant 0 : index
    %12 = vector.load %arg6[%c0_8, %c0_9] : memref<32x128xbf16, #tpu.memory_space<vmem>>, vector<32x128xbf16>
    tpu.vector_store %arg6[%c0_8, %c0_9], %11 {strides = array<i32>} : memref<32x128xbf16, #tpu.memory_space<vmem>>, vector<32x128xbf16>,
    return
  }
  func.func @transform_0(%arg0: i32, %arg1: i32) -> (i32, i32) {
    %c0_i32 = arith.constant 0 : i32
    %c0_i32_0 = arith.constant 0 : i32
    return %arg0, %c0_i32 : i32, i32
  }
  func.func @transform_1(%arg0: i32, %arg1: i32) -> (i32, i32) {
    %c0_i32 = arith.constant 0 : i32
    %c0_i32_0 = arith.constant 0 : i32
    return %c0_i32, %arg1 : i32, i32
  }
  func.func @transform_2(%arg0: i32, %arg1: i32) -> (i32, i32) {
    %c0_i32 = arith.constant 0 : i32
    %c0_i32_0 = arith.constant 0 : i32
    return %c0_i32, %arg1 : i32, i32
  }
  func.func @transform_3(%arg0: i32, %arg1: i32) -> (i32, i32) {
    %c0_i32 = arith.constant 0 : i32
    %c0_i32_0 = arith.constant 0 : i32
    return %c0_i32, %arg1 : i32, i32
  }
  func.func @transform_4(%arg0: i32, %arg1: i32) -> (i32, i32) {
    %c0_i32 = arith.constant 0 : i32
    return %arg0, %arg1 : i32, i32
  }
}

module attributes {stable_mosaic.version = 11 : i64} {
  func.func @_mm_affine_kernel(%arg0: i32, %arg1: i32, %arg2: memref<32x128xbf16, #tpu.memory_space<vmem>>, %arg3: memref<128x256xbf16, #tpu.memory_space<vmem>>, %arg4: memref<1x256xf32, #tpu.memory_space<vmem>>, %arg5: memref<1x256xf32, #tpu.memory_space<vmem>>, %arg6: memref<32x256xbf16, #tpu.memory_space<vmem>>, %arg7: memref<32x256xbf16, #tpu.memory_space<vmem>>) attributes {dimension_semantics = [#tpu.dimension_semantics<parallel>, #tpu.dimension_semantics<parallel>], iteration_bounds = array<i64: 2, 1>, scalar_prefetch = 0 : i64, scratch_operands = 0 : i64, tpu.core_type = #tpu.core_type<tc>, window_params = [{transform_indices = @transform_0, window_bounds = array<i64: 32, 128>}, {transform_indices = @transform_1, window_bounds = array<i64: 128, 256>}, {transform_indices = @transform_2, window_bounds = array<i64: 1, 256>}, {transform_indices = @transform_3, window_bounds = array<i64: 1, 256>}, {transform_indices = @transform_4, window_bounds = array<i64: 32, 256>}, {transform_indices = @transform_5, window_bounds = array<i64: 32, 256>}]} {
    %c0 = arith.constant 0 : index
    %c0_0 = arith.constant 0 : index
    %0 = vector.load %arg2[%c0, %c0_0] : memref<32x128xbf16, #tpu.memory_space<vmem>>, vector<32x128xbf16>
    %c0_1 = arith.constant 0 : index
    %c0_2 = arith.constant 0 : index
    %1 = vector.load %arg3[%c0_1, %c0_2] : memref<128x256xbf16, #tpu.memory_space<vmem>>, vector<128x256xbf16>
    %cst = arith.constant dense<0.000000e+00> : vector<32x256xf32>
    %2 = tpu.matmul %0, %1, %cst {dimension_numbers = #tpu.dot_dimension_numbers<[1], [0], [0], [1], [0, 0, 1, 1], [], []>} : vector<32x128xbf16>, vector<128x256xbf16>, vector<32x256xf32> -> vector<32x256xf32>
    %c0_3 = arith.constant 0 : index
    %c0_4 = arith.constant 0 : index
    %3 = vector.load %arg4[%c0_3, %c0_4] : memref<1x256xf32, #tpu.memory_space<vmem>>, vector<1x256xf32>
    %4 = vector.broadcast %3 : vector<1x256xf32> to vector<32x256xf32>
    %5 = arith.mulf %2, %4 : vector<32x256xf32>
    %c0_5 = arith.constant 0 : index
    %c0_6 = arith.constant 0 : index
    %6 = vector.load %arg5[%c0_5, %c0_6] : memref<1x256xf32, #tpu.memory_space<vmem>>, vector<1x256xf32>
    %7 = vector.broadcast %6 : vector<1x256xf32> to vector<32x256xf32>
    %8 = arith.addf %5, %7 : vector<32x256xf32>
    %c0_7 = arith.constant 0 : index
    %c0_8 = arith.constant 0 : index
    %9 = vector.load %arg6[%c0_7, %c0_8] : memref<32x256xbf16, #tpu.memory_space<vmem>>, vector<32x256xbf16>
    %10 = arith.extf %9 : vector<32x256xbf16> to vector<32x256xf32>
    %11 = arith.addf %8, %10 : vector<32x256xf32>
    %cst_9 = arith.constant 0.000000e+00 : f32
    %12 = vector.broadcast %cst_9 : f32 to vector<32x256xf32>
    %13 = arith.maximumf %11, %12 : vector<32x256xf32>
    %14 = arith.truncf %13 : vector<32x256xf32> to vector<32x256xbf16>
    %c0_10 = arith.constant 0 : index
    %c0_11 = arith.constant 0 : index
    %15 = vector.load %arg7[%c0_10, %c0_11] : memref<32x256xbf16, #tpu.memory_space<vmem>>, vector<32x256xbf16>
    tpu.vector_store %arg7[%c0_10, %c0_11], %14 {strides = array<i32>} : memref<32x256xbf16, #tpu.memory_space<vmem>>, vector<32x256xbf16>,
    return
  }
  func.func @transform_0(%arg0: i32, %arg1: i32) -> (i32, i32) {
    %c0_i32 = arith.constant 0 : i32
    %c0_i32_0 = arith.constant 0 : i32
    return %arg0, %c0_i32 : i32, i32
  }
  func.func @transform_1(%arg0: i32, %arg1: i32) -> (i32, i32) {
    %c0_i32 = arith.constant 0 : i32
    %c0_i32_0 = arith.constant 0 : i32
    return %c0_i32, %arg1 : i32, i32
  }
  func.func @transform_2(%arg0: i32, %arg1: i32) -> (i32, i32) {
    %c0_i32 = arith.constant 0 : i32
    %c0_i32_0 = arith.constant 0 : i32
    return %c0_i32, %arg1 : i32, i32
  }
  func.func @transform_3(%arg0: i32, %arg1: i32) -> (i32, i32) {
    %c0_i32 = arith.constant 0 : i32
    %c0_i32_0 = arith.constant 0 : i32
    return %c0_i32, %arg1 : i32, i32
  }
  func.func @transform_4(%arg0: i32, %arg1: i32) -> (i32, i32) {
    %c0_i32 = arith.constant 0 : i32
    return %arg0, %arg1 : i32, i32
  }
  func.func @transform_5(%arg0: i32, %arg1: i32) -> (i32, i32) {
    %c0_i32 = arith.constant 0 : i32
    return %arg0, %arg1 : i32, i32
  }
}

module attributes {stable_mosaic.version = 11 : i64} {
  func.func @_mm_affine_kernel(%arg0: i32, %arg1: i32, %arg2: memref<32x128xbf16, #tpu.memory_space<vmem>>, %arg3: memref<128x256xbf16, #tpu.memory_space<vmem>>, %arg4: memref<1x256xf32, #tpu.memory_space<vmem>>, %arg5: memref<1x256xf32, #tpu.memory_space<vmem>>, %arg6: memref<32x256xbf16, #tpu.memory_space<vmem>>) attributes {dimension_semantics = [#tpu.dimension_semantics<parallel>, #tpu.dimension_semantics<parallel>], iteration_bounds = array<i64: 2, 1>, scalar_prefetch = 0 : i64, scratch_operands = 0 : i64, tpu.core_type = #tpu.core_type<tc>, window_params = [{transform_indices = @transform_0, window_bounds = array<i64: 32, 128>}, {transform_indices = @transform_1, window_bounds = array<i64: 128, 256>}, {transform_indices = @transform_2, window_bounds = array<i64: 1, 256>}, {transform_indices = @transform_3, window_bounds = array<i64: 1, 256>}, {transform_indices = @transform_4, window_bounds = array<i64: 32, 256>}]} {
    %c0 = arith.constant 0 : index
    %c0_0 = arith.constant 0 : index
    %0 = vector.load %arg2[%c0, %c0_0] : memref<32x128xbf16, #tpu.memory_space<vmem>>, vector<32x128xbf16>
    %c0_1 = arith.constant 0 : index
    %c0_2 = arith.constant 0 : index
    %1 = vector.load %arg3[%c0_1, %c0_2] : memref<128x256xbf16, #tpu.memory_space<vmem>>, vector<128x256xbf16>
    %cst = arith.constant dense<0.000000e+00> : vector<32x256xf32>
    %2 = tpu.matmul %0, %1, %cst {dimension_numbers = #tpu.dot_dimension_numbers<[1], [0], [0], [1], [0, 0, 1, 1], [], []>} : vector<32x128xbf16>, vector<128x256xbf16>, vector<32x256xf32> -> vector<32x256xf32>
    %c0_3 = arith.constant 0 : index
    %c0_4 = arith.constant 0 : index
    %3 = vector.load %arg4[%c0_3, %c0_4] : memref<1x256xf32, #tpu.memory_space<vmem>>, vector<1x256xf32>
    %4 = vector.broadcast %3 : vector<1x256xf32> to vector<32x256xf32>
    %5 = arith.mulf %2, %4 : vector<32x256xf32>
    %c0_5 = arith.constant 0 : index
    %c0_6 = arith.constant 0 : index
    %6 = vector.load %arg5[%c0_5, %c0_6] : memref<1x256xf32, #tpu.memory_space<vmem>>, vector<1x256xf32>
    %7 = vector.broadcast %6 : vector<1x256xf32> to vector<32x256xf32>
    %8 = arith.addf %5, %7 : vector<32x256xf32>
    %9 = arith.truncf %8 : vector<32x256xf32> to vector<32x256xbf16>
    %c0_7 = arith.constant 0 : index
    %c0_8 = arith.constant 0 : index
    %10 = vector.load %arg6[%c0_7, %c0_8] : memref<32x256xbf16, #tpu.memory_space<vmem>>, vector<32x256xbf16>
    tpu.vector_store %arg6[%c0_7, %c0_8], %9 {strides = array<i32>} : memref<32x256xbf16, #tpu.memory_space<vmem>>, vector<32x256xbf16>,
    return
  }
  func.func @transform_0(%arg0: i32, %arg1: i32) -> (i32, i32) {
    %c0_i32 = arith.constant 0 : i32
    %c0_i32_0 = arith.constant 0 : i32
    return %arg0, %c0_i32 : i32, i32
  }
  func.func @transform_1(%arg0: i32, %arg1: i32) -> (i32, i32) {
    %c0_i32 = arith.constant 0 : i32
    %c0_i32_0 = arith.constant 0 : i32
    return %c0_i32, %arg1 : i32, i32
  }
  func.func @transform_2(%arg0: i32, %arg1: i32) -> (i32, i32) {
    %c0_i32 = arith.constant 0 : i32
    %c0_i32_0 = arith.constant 0 : i32
    return %c0_i32, %arg1 : i32, i32
  }
  func.func @transform_3(%arg0: i32, %arg1: i32) -> (i32, i32) {
    %c0_i32 = arith.constant 0 : i32
    %c0_i32_0 = arith.constant 0 : i32
    return %c0_i32, %arg1 : i32, i32
  }
  func.func @transform_4(%arg0: i32, %arg1: i32) -> (i32, i32) {
    %c0_i32 = arith.constant 0 : i32
    return %arg0, %arg1 : i32, i32
  }
}

module attributes {stable_mosaic.version = 11 : i64} {
  func.func @_mm_affine_kernel(%arg0: i32, %arg1: i32, %arg2: memref<32x256xbf16, #tpu.memory_space<vmem>>, %arg3: memref<256x128xbf16, #tpu.memory_space<vmem>>, %arg4: memref<1x128xf32, #tpu.memory_space<vmem>>, %arg5: memref<1x128xf32, #tpu.memory_space<vmem>>, %arg6: memref<32x128xbf16, #tpu.memory_space<vmem>>) attributes {dimension_semantics = [#tpu.dimension_semantics<parallel>, #tpu.dimension_semantics<parallel>], iteration_bounds = array<i64: 2, 1>, scalar_prefetch = 0 : i64, scratch_operands = 0 : i64, tpu.core_type = #tpu.core_type<tc>, window_params = [{transform_indices = @transform_0, window_bounds = array<i64: 32, 256>}, {transform_indices = @transform_1, window_bounds = array<i64: 256, 128>}, {transform_indices = @transform_2, window_bounds = array<i64: 1, 128>}, {transform_indices = @transform_3, window_bounds = array<i64: 1, 128>}, {transform_indices = @transform_4, window_bounds = array<i64: 32, 128>}]} {
    %c0 = arith.constant 0 : index
    %c0_0 = arith.constant 0 : index
    %0 = vector.load %arg2[%c0, %c0_0] : memref<32x256xbf16, #tpu.memory_space<vmem>>, vector<32x256xbf16>
    %c0_1 = arith.constant 0 : index
    %c0_2 = arith.constant 0 : index
    %1 = vector.load %arg3[%c0_1, %c0_2] : memref<256x128xbf16, #tpu.memory_space<vmem>>, vector<256x128xbf16>
    %cst = arith.constant dense<0.000000e+00> : vector<32x128xf32>
    %2 = tpu.matmul %0, %1, %cst {dimension_numbers = #tpu.dot_dimension_numbers<[1], [0], [0], [1], [0, 0, 1, 1], [], []>} : vector<32x256xbf16>, vector<256x128xbf16>, vector<32x128xf32> -> vector<32x128xf32>
    %c0_3 = arith.constant 0 : index
    %c0_4 = arith.constant 0 : index
    %3 = vector.load %arg4[%c0_3, %c0_4] : memref<1x128xf32, #tpu.memory_space<vmem>>, vector<1x128xf32>
    %4 = vector.broadcast %3 : vector<1x128xf32> to vector<32x128xf32>
    %5 = arith.mulf %2, %4 : vector<32x128xf32>
    %c0_5 = arith.constant 0 : index
    %c0_6 = arith.constant 0 : index
    %6 = vector.load %arg5[%c0_5, %c0_6] : memref<1x128xf32, #tpu.memory_space<vmem>>, vector<1x128xf32>
    %7 = vector.broadcast %6 : vector<1x128xf32> to vector<32x128xf32>
    %8 = arith.addf %5, %7 : vector<32x128xf32>
    %cst_7 = arith.constant 0.000000e+00 : f32
    %9 = vector.broadcast %cst_7 : f32 to vector<32x128xf32>
    %10 = arith.maximumf %8, %9 : vector<32x128xf32>
    %11 = arith.truncf %10 : vector<32x128xf32> to vector<32x128xbf16>
    %c0_8 = arith.constant 0 : index
    %c0_9 = arith.constant 0 : index
    %12 = vector.load %arg6[%c0_8, %c0_9] : memref<32x128xbf16, #tpu.memory_space<vmem>>, vector<32x128xbf16>
    tpu.vector_store %arg6[%c0_8, %c0_9], %11 {strides = array<i32>} : memref<32x128xbf16, #tpu.memory_space<vmem>>, vector<32x128xbf16>,
    return
  }
  func.func @transform_0(%arg0: i32, %arg1: i32) -> (i32, i32) {
    %c0_i32 = arith.constant 0 : i32
    %c0_i32_0 = arith.constant 0 : i32
    return %arg0, %c0_i32 : i32, i32
  }
  func.func @transform_1(%arg0: i32, %arg1: i32) -> (i32, i32) {
    %c0_i32 = arith.constant 0 : i32
    %c0_i32_0 = arith.constant 0 : i32
    return %c0_i32, %arg1 : i32, i32
  }
  func.func @transform_2(%arg0: i32, %arg1: i32) -> (i32, i32) {
    %c0_i32 = arith.constant 0 : i32
    %c0_i32_0 = arith.constant 0 : i32
    return %c0_i32, %arg1 : i32, i32
  }
  func.func @transform_3(%arg0: i32, %arg1: i32) -> (i32, i32) {
    %c0_i32 = arith.constant 0 : i32
    %c0_i32_0 = arith.constant 0 : i32
    return %c0_i32, %arg1 : i32, i32
  }
  func.func @transform_4(%arg0: i32, %arg1: i32) -> (i32, i32) {
    %c0_i32 = arith.constant 0 : i32
    return %arg0, %arg1 : i32, i32
  }
}

module attributes {stable_mosaic.version = 11 : i64} {
  func.func @_mm_affine_kernel(%arg0: i32, %arg1: i32, %arg2: memref<16x8192xbf16, #tpu.memory_space<vmem>>, %arg3: memref<8192x128xbf16, #tpu.memory_space<vmem>>, %arg4: memref<1x128xf32, #tpu.memory_space<vmem>>, %arg5: memref<1x128xf32, #tpu.memory_space<vmem>>, %arg6: memref<16x128xf32, #tpu.memory_space<vmem>>) attributes {dimension_semantics = [#tpu.dimension_semantics<parallel>, #tpu.dimension_semantics<parallel>], iteration_bounds = array<i64: 1, 1>, scalar_prefetch = 0 : i64, scratch_operands = 0 : i64, tpu.core_type = #tpu.core_type<tc>, window_params = [{transform_indices = @transform_0, window_bounds = array<i64: 16, 8192>}, {transform_indices = @transform_1, window_bounds = array<i64: 8192, 128>}, {transform_indices = @transform_2, window_bounds = array<i64: 1, 128>}, {transform_indices = @transform_3, window_bounds = array<i64: 1, 128>}, {transform_indices = @transform_4, window_bounds = array<i64: 16, 128>}]} {
    %c0 = arith.constant 0 : index
    %c0_0 = arith.constant 0 : index
    %0 = vector.load %arg2[%c0, %c0_0] : memref<16x8192xbf16, #tpu.memory_space<vmem>>, vector<16x8192xbf16>
    %c0_1 = arith.constant 0 : index
    %c0_2 = arith.constant 0 : index
    %1 = vector.load %arg3[%c0_1, %c0_2] : memref<8192x128xbf16, #tpu.memory_space<vmem>>, vector<8192x128xbf16>
    %cst = arith.constant dense<0.000000e+00> : vector<16x128xf32>
    %2 = tpu.matmul %0, %1, %cst {dimension_numbers = #tpu.dot_dimension_numbers<[1], [0], [0], [1], [0, 0, 1, 1], [], []>} : vector<16x8192xbf16>, vector<8192x128xbf16>, vector<16x128xf32> -> vector<16x128xf32>
    %c0_3 = arith.constant 0 : index
    %c0_4 = arith.constant 0 : index
    %3 = vector.load %arg4[%c0_3, %c0_4] : memref<1x128xf32, #tpu.memory_space<vmem>>, vector<1x128xf32>
    %4 = vector.broadcast %3 : vector<1x128xf32> to vector<16x128xf32>
    %5 = arith.mulf %2, %4 : vector<16x128xf32>
    %c0_5 = arith.constant 0 : index
    %c0_6 = arith.constant 0 : index
    %6 = vector.load %arg5[%c0_5, %c0_6] : memref<1x128xf32, #tpu.memory_space<vmem>>, vector<1x128xf32>
    %7 = vector.broadcast %6 : vector<1x128xf32> to vector<16x128xf32>
    %8 = arith.addf %5, %7 : vector<16x128xf32>
    %c0_7 = arith.constant 0 : index
    %c0_8 = arith.constant 0 : index
    %9 = vector.load %arg6[%c0_7, %c0_8] : memref<16x128xf32, #tpu.memory_space<vmem>>, vector<16x128xf32>
    tpu.vector_store %arg6[%c0_7, %c0_8], %8 {strides = array<i32>} : memref<16x128xf32, #tpu.memory_space<vmem>>, vector<16x128xf32>,
    return
  }
  func.func @transform_0(%arg0: i32, %arg1: i32) -> (i32, i32) {
    %c0_i32 = arith.constant 0 : i32
    %c0_i32_0 = arith.constant 0 : i32
    return %arg0, %c0_i32 : i32, i32
  }
  func.func @transform_1(%arg0: i32, %arg1: i32) -> (i32, i32) {
    %c0_i32 = arith.constant 0 : i32
    %c0_i32_0 = arith.constant 0 : i32
    return %c0_i32, %arg1 : i32, i32
  }
  func.func @transform_2(%arg0: i32, %arg1: i32) -> (i32, i32) {
    %c0_i32 = arith.constant 0 : i32
    %c0_i32_0 = arith.constant 0 : i32
    return %c0_i32, %arg1 : i32, i32
  }
  func.func @transform_3(%arg0: i32, %arg1: i32) -> (i32, i32) {
    %c0_i32 = arith.constant 0 : i32
    %c0_i32_0 = arith.constant 0 : i32
    return %c0_i32, %arg1 : i32, i32
  }
  func.func @transform_4(%arg0: i32, %arg1: i32) -> (i32, i32) {
    %c0_i32 = arith.constant 0 : i32
    return %arg0, %arg1 : i32, i32
  }
}

</mosaic_0001>

<bundles_post_ra>
// kernel: embedding_net_forward.12
= control target key start
LH: loop header
LB: loop body
LE: loop exit
PB: predicated region body
PF: predicated region fallthrough
CT: control target
= control target key end

     0   :  { %s1107_s15 = smov 0   ;;  %s1109_s16 = smov 0   ;;  %s1281_s0 = inlined_call_operand.vmem [shape: bf16[256,256], index: 0, kind: input, shape index: {}]   ;;  %s1282_s1 = inlined_call_operand.vmem [shape: bf16[256,128], index: 1, kind: input, shape index: {}]   ;;  %s1283_s2 = inlined_call_operand.vmem [shape: f32[1,128], index: 2, kind: input, shape index: {}]   ;;  %s1284_s3 = inlined_call_operand.vmem [shape: f32[1,128], index: 3, kind: input, shape index: {}]   ;;  %s1285_s4 = inlined_call_operand.vmem [shape: bf16[256,128], index: 4, kind: output, shape index: {}]  }
   0x1   :  { %s1111_s17 = smov 0  }
   0x2 LB: > { %s26_s18 = sadd.s32 1, %s1076_s16  ;;  %p800_p0 = scmp.ge.s32.totalorder %s1080_s17, 1  ;;  %s1080_s17 = sphi %s1111_s17, %s14_s17   ;;  %s1076_s16 = sphi %s1109_s16, %s1287_s16   ;;  %s1072_s15 = sphi %s1107_s15, %s1286_s15  }
   0x3   : > { %p28_p1 = scmp.ge.s32.totalorder %s26_s18, 2  ;;  %p203_p2 = scmp.lt.s32.totalorder %s1080_s17, 3 }
   0x5   : > { %s1289_s18 = smov (%p28_p1, %s26_s18), 0  ;;  %p204_p3 = pnand %p800_p0, %p203_p2 }
   0x6   : > { %s801_s5 = sshll.u32 (!%p204_p3), %s1072_s15, 4 }
   0x7   : > { %207 = sbr.rel (%p204_p3) target bundleno = 244 (0xf4), region = 36  ;;  %p244_p4 = scmp.lt.s32.totalorder (!%p204_p3), %s801_s5, 31 }
   0xc   : > { %v960_v0 = vld [vmem:[%s1282_s1 + $0x38] sm:$0xff]  ;;  %v959_v2 = vld [vmem:[%s1282_s1 + $0x30] sm:$0xff]  ;;  %v958_v4 = vld [vmem:[%s1282_s1 + $0x28] sm:$0xff]  ;;  %s1291_s5 = smov (!%p244_p4, %s801_s5), 31 }
   0xd   : > { %v968_v1 = vld [vmem:[%s1282_s1 + $0x78] sm:$0xff]  ;;  %493 = vmatpush.bf16.msra.mxu0 %v960_v0  ;;  %1016 = vmatpush.bf16.msra.mxu2 %v960_v0  ;;  %v967_v3 = vld [vmem:[%s1282_s1 + $0x70] sm:$0xff]  ;;  %v966_v5 = vld [vmem:[%s1282_s1 + $0x68] sm:$0xff]  ;;  %s936_s21 = sshll.u32 %s1291_s5, 3  ;;  %s805_s12 = sshll.u32 %s1291_s5, 2 }
   0xe   : > { %542 = vmatpush.bf16.msra.mxu1 %v968_v1  ;;  %1024 = vmatpush.bf16.msra.mxu3 %v968_v1  ;;  %v957_v6 = vld [vmem:[%s1282_s1 + $0x20] sm:$0xff]  ;;  %v956_v8 = vld [vmem:[%s1282_s1 + $0x18] sm:$0xff]  ;;  %v955_v10 = vld [vmem:[%s1282_s1 + $0x10] sm:$0xff]  ;;  %s1173_s26 = scalar_lea.vmem %s1281_s0, %s936_s21  ;;  %s1235_s15 = scalar_lea.vmem %s1285_s4, %s805_s12 }
   0xf   : > { %v965_v7 = vld [vmem:[%s1282_s1 + $0x60] sm:$0xff]  ;;  %v964_v9 = vld [vmem:[%s1282_s1 + $0x58] sm:$0xff]  ;;  %v963_v11 = vld [vmem:[%s1282_s1 + $0x50] sm:$0xff] }
  0x10   : > { %v954_v12 = vld [vmem:[%s1282_s1 + $0x8] sm:$0xff]  ;;  %v953_v14 = vld [vmem:[%s1282_s1] sm:$0xff]  ;;  %v816_v28 = vld [vmem:[%s1173_s26 + $0x10] sm:$0xf] }
  0x11   : > { %494 = vmatpush.bf16.msra.mxu0 %v959_v2  ;;  %1017 = vmatpush.bf16.msra.mxu2 %v959_v2  ;;  %v962_v13 = vld [vmem:[%s1282_s1 + $0x48] sm:$0xff]  ;;  %v961_v15 = vld [vmem:[%s1282_s1 + $0x40] sm:$0xff]  ;;  %v940_v29 = vld [vmem:[%s1173_s26 + $0x14] sm:$0xf0] }
  0x12   : > { %543 = vmatpush.bf16.msra.mxu1 %v967_v3  ;;  %1025 = vmatpush.bf16.msra.mxu3 %v967_v3  ;;  %v808_v16 = vld [vmem:[%s1173_s26] sm:$0xf]  ;;  %v938_v17 = vld [vmem:[%s1173_s26 + $0x4] sm:$0xf0]  ;;  %v937_v20 = vld [vmem:[%s1173_s26 + $0x4] sm:$0xf]  ;;  %v817_v36 = vor.u32 %v940_v29, %v816_v28 }
  0x13   : > { %v840_v18 = vld [vmem:[%s1173_s26 + $0x40] sm:$0xf]  ;;  %v946_v19 = vld [vmem:[%s1173_s26 + $0x44] sm:$0xf0]  ;;  %v810_v21 = vld [vmem:[%s1173_s26 + $0x8] sm:$0xf0]  ;;  %v809_v24 = vor.u32 %v938_v17, %v808_v16 }
  0x14   : > { %v945_v22 = vld [vmem:[%s1173_s26 + $0x44] sm:$0xf]  ;;  %v842_v23 = vld [vmem:[%s1173_s26 + $0x48] sm:$0xf0]  ;;  %v841_v25 = vor.u32 %v946_v19, %v840_v18  ;;  %v813_v26 = vor.u32 %v937_v20, %v810_v21  ;;  %v848_v30 = vld [vmem:[%s1173_s26 + $0x50] sm:$0xf] }
  0x15   : > { %495 = vmatpush.bf16.msra.mxu0 %v958_v4  ;;  %1018 = vmatpush.bf16.msra.mxu2 %v958_v4  ;;  %v845_v27 = vor.u32 %v945_v22, %v842_v23  ;;  %v948_v31 = vld [vmem:[%s1173_s26 + $0x54] sm:$0xf0]  ;;  %v939_v32 = vld [vmem:[%s1173_s26 + $0x14] sm:$0xf]  ;;  %v818_v33 = vld [vmem:[%s1173_s26 + $0x18] sm:$0xf0] }
  0x16   : > { %544 = vmatpush.bf16.msra.mxu1 %v966_v5  ;;  %1026 = vmatpush.bf16.msra.mxu3 %v966_v5  ;;  %v947_v34 = vld [vmem:[%s1173_s26 + $0x54] sm:$0xf]  ;;  %v850_v35 = vld [vmem:[%s1173_s26 + $0x58] sm:$0xf0]  ;;  %v849_v37 = vor.u32 %v948_v31, %v848_v30  ;;  %v821_v38 = vor.u32 %v939_v32, %v818_v33  ;;  %v824_v40 = vld [vmem:[%s1173_s26 + $0x20] sm:$0xf] }
  0x17   : > { %v853_v39 = vor.u32 %v947_v34, %v850_v35  ;;  %v942_v41 = vld [vmem:[%s1173_s26 + $0x24] sm:$0xf0]  ;;  %v856_v42 = vld [vmem:[%s1173_s26 + $0x60] sm:$0xf]  ;;  %v941_v44 = vld [vmem:[%s1173_s26 + $0x24] sm:$0xf] }
  0x18   : > { %v950_v43 = vld [vmem:[%s1173_s26 + $0x64] sm:$0xf0]  ;;  %v826_v45 = vld [vmem:[%s1173_s26 + $0x28] sm:$0xf0]  ;;  %v949_v46 = vld [vmem:[%s1173_s26 + $0x64] sm:$0xf]  ;;  %v825_v48 = vor.u32 %v942_v41, %v824_v40 }
  0x19   : > { %496 = vmatpush.bf16.msra.mxu0 %v957_v6  ;;  %1019 = vmatpush.bf16.msra.mxu2 %v957_v6  ;;  %v858_v47 = vld [vmem:[%s1173_s26 + $0x68] sm:$0xf0]  ;;  %v857_v49 = vor.u32 %v950_v43, %v856_v42  ;;  %v829_v50 = vor.u32 %v941_v44, %v826_v45  ;;  %v832_v52 = vld [vmem:[%s1173_s26 + $0x30] sm:$0xf]  ;;  %v944_v53 = vld [vmem:[%s1173_s26 + $0x34] sm:$0xf0] }
  0x1a   : > { %545 = vmatpush.bf16.msra.mxu1 %v965_v7  ;;  %1027 = vmatpush.bf16.msra.mxu3 %v965_v7  ;;  %v861_v51 = vor.u32 %v949_v46, %v858_v47  ;;  %v864_v54 = vld [vmem:[%s1173_s26 + $0x70] sm:$0xf]  ;;  %v952_v55 = vld [vmem:[%s1173_s26 + $0x74] sm:$0xf0]  ;;  %v943_v56 = vld [vmem:[%s1173_s26 + $0x34] sm:$0xf]  ;;  %v833_v60 = vor.u32 %v944_v53, %v832_v52 }
  0x1b   : > { %v834_v57 = vld [vmem:[%s1173_s26 + $0x38] sm:$0xf0]  ;;  %v951_v58 = vld [vmem:[%s1173_s26 + $0x74] sm:$0xf]  ;;  %v865_v61 = vor.u32 %v952_v55, %v864_v54  ;;  %v1219_v3 = vld [vmem:[%s1283_s2] ss:$0 sm:$0xff] }
  0x1c   : > { %v866_v59 = vld [vmem:[%s1173_s26 + $0x78] sm:$0xf0]  ;;  %v837_v62 = vor.u32 %v943_v56, %v834_v57  ;;  %v1225_v7 = vld [vmem:[%s1284_s3] ss:$0 sm:$0xff] }
  0x1d   : > { %497 = vmatpush.bf16.msra.mxu0 %v956_v8  ;;  %1020 = vmatpush.bf16.msra.mxu2 %v956_v8  ;;  %v869_v63 = vor.u32 %v951_v58, %v866_v59 }
  0x1e   : > { %546 = vmatpush.bf16.msra.mxu1 %v964_v9  ;;  %1028 = vmatpush.bf16.msra.mxu3 %v964_v9 }
  0x21   : > { %498 = vmatpush.bf16.msra.mxu0 %v955_v10  ;;  %1021 = vmatpush.bf16.msra.mxu2 %v955_v10 }
  0x22   : > { %547 = vmatpush.bf16.msra.mxu1 %v963_v11  ;;  %1029 = vmatpush.bf16.msra.mxu3 %v963_v11 }
  0x25   : > { %499 = vmatpush.bf16.msra.mxu0 %v954_v12  ;;  %1022 = vmatpush.bf16.msra.mxu2 %v954_v12 }
  0x26   : > { %548 = vmatpush.bf16.msra.mxu1 %v962_v13  ;;  %1030 = vmatpush.bf16.msra.mxu3 %v962_v13 }
  0x29   : > { %500 = vmatpush.bf16.msra.mxu0 %v953_v14  ;;  %1023 = vmatpush.bf16.msra.mxu2 %v953_v14 }
  0x2a   : > { %549 = vmatpush.bf16.msra.mxu1 %v961_v15  ;;  %1031 = vmatpush.bf16.msra.mxu3 %v961_v15 }
  0x2c   : > { %501 = vmatmul.bf16.vlgmr.msra.gmra.mxu0 %v809_v24  ;;  %521 = vmatmul.bf16.vlgmr.msra.gmra.mxu2 %v841_v25 }
  0x2d   : > { %550 = vmatmul.bf16.vlgmr.msra.gmra.mxu1 %v813_v26  ;;  %570 = vmatmul.bf16.vlgmr.msra.gmra.mxu3 %v845_v27 }
  0x3c   : > { %506 = vmatmul.bf16.gmra.mxu0 %v817_v36  ;;  %526 = vmatmul.bf16.gmra.mxu2 %v849_v37 }
  0x3d   : > { %555 = vmatmul.bf16.gmra.mxu1 %v821_v38  ;;  %575 = vmatmul.bf16.gmra.mxu3 %v853_v39 }
  0x4c   : > { %511 = vmatmul.bf16.gmra.mxu0 %v825_v48  ;;  %531 = vmatmul.bf16.gmra.mxu2 %v857_v49 }
  0x4d   : > { %560 = vmatmul.bf16.gmra.mxu1 %v829_v50  ;;  %580 = vmatmul.bf16.gmra.mxu3 %v861_v51 }
  0x5c   : > { %516 = vmatmul.bf16.gmra.mxu0 %v833_v60  ;;  %536 = vmatmul.bf16.gmra.mxu2 %v865_v61 }
  0x5d   : > { %565 = vmatmul.bf16.gmra.mxu1 %v837_v62  ;;  %585 = vmatmul.bf16.gmra.mxu3 %v869_v63 }
  0xa9   : > { %v502_v0 = vpop.f32.mrf.mxu0 }
  0xaa   : > { %v551_v1 = vpop.f32.mrf.mxu1 }
  0xab   : > { %v552_v2 = vadd.f32 %v551_v1, %v502_v0 }
  0xad   : > { %v595_v6 = vmul.f32 %v1219_v3, %v552_v2 }
  0xaf   : > { %v522_v4 = vpop.f32.mrf.mxu2  ;;  %v615_v12 = vadd.f32 %v1225_v7, %v595_v6 }
  0xb0   : > { %v571_v5 = vpop.f32.mrf.mxu3 }
  0xb1   : > { %v504_v8 = vpop.f32.mrf.mxu0  ;;  %v572_v10 = vadd.f32 %v571_v5, %v522_v4  ;;  %v631_v18 = vmax.f32 %v615_v12, 0.0 }
  0xb2   : > { %v553_v9 = vpop.f32.mrf.mxu1 }
  0xb3   : > { %v554_v11 = vadd.f32 %v553_v9, %v504_v8  ;;  %v603_v14 = vmul.f32 %v1219_v3, %v572_v10 }
  0xb5   : > { %v596_v13 = vmul.f32 %v1219_v3, %v554_v11  ;;  %v623_v23 = vadd.f32 %v1225_v7, %v603_v14 }
  0xb7   : > { %v616_v15 = vadd.f32 %v1225_v7, %v596_v13  ;;  %v524_v16 = vpop.f32.mrf.mxu2  ;;  %v639_v28 = vmax.f32 %v623_v23, 0.0 }
  0xb8   : > { %v573_v17 = vpop.f32.mrf.mxu3 }
  0xb9   : > { %v632_v19 = vmax.f32 %v616_v15, 0.0  ;;  %v574_v20 = vadd.f32 %v573_v17, %v524_v16  ;;  %v507_v21 = vpop.f32.mrf.mxu0 }
  0xba   : > { %v556_v22 = vpop.f32.mrf.mxu1 }
  0xbb   : > { %v972_v24 = vpack.c.bf16 %v632_v19, %v631_v18  ;;  %v604_v25 = vmul.f32 %v1219_v3, %v574_v20  ;;  %v557_v27 = vadd.f32 %v556_v22, %v507_v21 }
  0xbd   : > { %973 = vst [vmem:[%s1235_s15] sm:$0xff] %v972_v24   ;;  %v624_v26 = vadd.f32 %v1225_v7, %v604_v25  ;;  %v597_v33 = vmul.f32 %v1219_v3, %v557_v27 }
  0xbf   : > { %v640_v29 = vmax.f32 %v624_v26, 0.0  ;;  %v527_v30 = vpop.f32.mrf.mxu2  ;;  %v617_v38 = vadd.f32 %v1225_v7, %v597_v33 }
  0xc0   : > { %v576_v31 = vpop.f32.mrf.mxu3 }
  0xc1   : > { %v992_v32 = vpack.c.bf16 %v640_v29, %v639_v28  ;;  %v509_v34 = vpop.f32.mrf.mxu0  ;;  %v577_v36 = vadd.f32 %v576_v31, %v527_v30  ;;  %v633_v44 = vmax.f32 %v617_v38, 0.0 }
  0xc2   : > { %v558_v35 = vpop.f32.mrf.mxu1 }
  0xc3   : > { %1012 = vst [vmem:[%s1235_s15 + $0x20] sm:$0xff] %v992_v32   ;;  %v559_v37 = vadd.f32 %v558_v35, %v509_v34  ;;  %v605_v40 = vmul.f32 %v1219_v3, %v577_v36 }
  0xc5   : > { %v598_v39 = vmul.f32 %v1219_v3, %v559_v37  ;;  %v625_v49 = vadd.f32 %v1225_v7, %v605_v40 }
  0xc7   : > { %v618_v41 = vadd.f32 %v1225_v7, %v598_v39  ;;  %v529_v42 = vpop.f32.mrf.mxu2  ;;  %v641_v54 = vmax.f32 %v625_v49, 0.0 }
  0xc8   : > { %v578_v43 = vpop.f32.mrf.mxu3 }
  0xc9   : > { %v634_v45 = vmax.f32 %v618_v41, 0.0  ;;  %v579_v46 = vadd.f32 %v578_v43, %v529_v42  ;;  %v512_v47 = vpop.f32.mrf.mxu0 }
  0xca   : > { %v561_v48 = vpop.f32.mrf.mxu1 }
  0xcb   : > { %v977_v50 = vpack.c.bf16 %v634_v45, %v633_v44  ;;  %v606_v51 = vmul.f32 %v1219_v3, %v579_v46  ;;  %v562_v53 = vadd.f32 %v561_v48, %v512_v47 }
  0xcd   : > { %1009 = vst [vmem:[%s1235_s15 + $0x8] sm:$0xff] %v977_v50   ;;  %v626_v52 = vadd.f32 %v1225_v7, %v606_v51  ;;  %v599_v59 = vmul.f32 %v1219_v3, %v562_v53 }
  0xcf   : > { %v642_v55 = vmax.f32 %v626_v52, 0.0  ;;  %v532_v56 = vpop.f32.mrf.mxu2  ;;  %v619_v0 = vadd.f32 %v1225_v7, %v599_v59 }
  0xd0   : > { %v581_v57 = vpop.f32.mrf.mxu3 }
  0xd1   : > { %v997_v58 = vpack.c.bf16 %v642_v55, %v641_v54  ;;  %v514_v60 = vpop.f32.mrf.mxu0  ;;  %v582_v62 = vadd.f32 %v581_v57, %v532_v56  ;;  %v635_v8 = vmax.f32 %v619_v0, 0.0 }
  0xd2   : > { %v563_v61 = vpop.f32.mrf.mxu1 }
  0xd3   : > { %1013 = vst [vmem:[%s1235_s15 + $0x28] sm:$0xff] %v997_v58   ;;  %v564_v63 = vadd.f32 %v563_v61, %v514_v60  ;;  %v607_v2 = vmul.f32 %v1219_v3, %v582_v62 }
  0xd5   : > { %v600_v1 = vmul.f32 %v1219_v3, %v564_v63  ;;  %v627_v13 = vadd.f32 %v1225_v7, %v607_v2 }
  0xd7   : > { %v620_v4 = vadd.f32 %v1225_v7, %v600_v1  ;;  %v534_v5 = vpop.f32.mrf.mxu2  ;;  %v643_v18 = vmax.f32 %v627_v13, 0.0 }
  0xd8   : > { %v583_v6 = vpop.f32.mrf.mxu3 }
  0xd9   : > { %v636_v9 = vmax.f32 %v620_v4, 0.0  ;;  %v584_v10 = vadd.f32 %v583_v6, %v534_v5  ;;  %v517_v11 = vpop.f32.mrf.mxu0 }
  0xda   : > { %v566_v12 = vpop.f32.mrf.mxu1 }
  0xdb   : > { %v982_v14 = vpack.c.bf16 %v636_v9, %v635_v8  ;;  %v608_v15 = vmul.f32 %v1219_v3, %v584_v10  ;;  %v567_v17 = vadd.f32 %v566_v12, %v517_v11 }
  0xdd   : > { %1010 = vst [vmem:[%s1235_s15 + $0x10] sm:$0xff] %v982_v14   ;;  %v628_v16 = vadd.f32 %v1225_v7, %v608_v15  ;;  %v601_v23 = vmul.f32 %v1219_v3, %v567_v17 }
  0xdf   : > { %v644_v19 = vmax.f32 %v628_v16, 0.0  ;;  %v537_v20 = vpop.f32.mrf.mxu2  ;;  %v621_v28 = vadd.f32 %v1225_v7, %v601_v23 }
  0xe0   : > { %v586_v21 = vpop.f32.mrf.mxu3 }
  0xe1   : > { %v1002_v22 = vpack.c.bf16 %v644_v19, %v643_v18  ;;  %v519_v24 = vpop.f32.mrf.mxu0  ;;  %v587_v26 = vadd.f32 %v586_v21, %v537_v20  ;;  %v637_v34 = vmax.f32 %v621_v28, 0.0 }
  0xe2   : > { %v568_v25 = vpop.f32.mrf.mxu1 }
  0xe3   : > { %1014 = vst [vmem:[%s1235_s15 + $0x30] sm:$0xff] %v1002_v22   ;;  %v569_v27 = vadd.f32 %v568_v25, %v519_v24  ;;  %v609_v30 = vmul.f32 %v1219_v3, %v587_v26 }
  0xe5   : > { %v602_v29 = vmul.f32 %v1219_v3, %v569_v27  ;;  %v629_v37 = vadd.f32 %v1225_v7, %v609_v30 }
  0xe7   : > { %v622_v31 = vadd.f32 %v1225_v7, %v602_v29  ;;  %v539_v32 = vpop.f32.mrf.mxu2  ;;  %v645_v41 = vmax.f32 %v629_v37, 0.0 }
  0xe8   : > { %v588_v33 = vpop.f32.mrf.mxu3 }
  0xe9   : > { %v638_v35 = vmax.f32 %v622_v31, 0.0  ;;  %v589_v36 = vadd.f32 %v588_v33, %v539_v32 }
  0xeb   : > { %v987_v38 = vpack.c.bf16 %v638_v35, %v637_v34  ;;  %v610_v39 = vmul.f32 %v1219_v3, %v589_v36 }
  0xed   : > { %1011 = vst [vmem:[%s1235_s15 + $0x18] sm:$0xff] %v987_v38   ;;  %v630_v40 = vadd.f32 %v1225_v7, %v610_v39 }
  0xef   : > { %v646_v42 = vmax.f32 %v630_v40, 0.0 }
  0xf1   : > { %v1007_v43 = vpack.c.bf16 %v646_v42, %v645_v41 }
  0xf3   : > { %1015 = vst [vmem:[%s1235_s15 + $0x38] sm:$0xff] %v1007_v43  }
  0xf4 PF: > { %s14_s17 = sadd.s32 1, %s1080_s17   ;;  %s1286_s15 = smov %s1076_s16 }
  0xf5   : > { %p11_p5 = scmp.ge.s32.totalorder %s14_s17, 4   ;;  %s1287_s16 = smov %s1289_s18 }
  0xf7   :  { %13 = sbr.rel (!%p11_p5) target bundleno = 2 (0x2), region = 75 }

// kernel: embedding_net_forward.14
= control target key start
LH: loop header
LB: loop body
LE: loop exit
PB: predicated region body
PF: predicated region fallthrough
CT: control target
= control target key end

     0   :  { %s665_s15 = smov 0   ;;  %s667_s16 = smov 0   ;;  %s735_s0 = inlined_call_operand.vmem [shape: bf16[64,128], index: 0, kind: input, shape index: {}]   ;;  %s736_s1 = inlined_call_operand.vmem [shape: bf16[128,128], index: 1, kind: input, shape index: {}]   ;;  %s737_s2 = inlined_call_operand.vmem [shape: f32[1,128], index: 2, kind: input, shape index: {}]   ;;  %s738_s3 = inlined_call_operand.vmem [shape: f32[1,128], index: 3, kind: input, shape index: {}]   ;;  %s739_s4 = inlined_call_operand.vmem [shape: bf16[64,128], index: 4, kind: output, shape index: {}]  }
   0x1   :  { %s669_s17 = smov 0  }
   0x2 LB: > { %s26_s18 = sadd.s32 1, %s634_s16  ;;  %p514_p0 = scmp.ge.s32.totalorder %s638_s17, 1  ;;  %s638_s17 = sphi %s669_s17, %s14_s17   ;;  %s634_s16 = sphi %s667_s16, %s741_s16   ;;  %s630_s15 = sphi %s665_s15, %s740_s15  }
   0x3   : > { %p28_p1 = scmp.ge.s32.totalorder %s26_s18, 2  ;;  %p202_p2 = scmp.lt.s32.totalorder %s638_s17, 3 }
   0x5   : > { %s743_s18 = smov (%p28_p1, %s26_s18), 0  ;;  %p203_p3 = pnand %p514_p0, %p202_p2 }
   0x6   : > { %s515_s27 = sshll.u32 (!%p203_p3), %s630_s15, 2 }
   0x7   : > { %206 = sbr.rel (%p203_p3) target bundleno = 188 (0xbc), region = 36  ;;  %p242_p4 = scmp.lt.s32.totalorder (!%p203_p3), %s515_s27, 7 }
   0xc   : > { %v570_v0 = vld [vmem:[%s736_s1 + $0x38] sm:$0xff]  ;;  %v569_v1 = vld [vmem:[%s736_s1 + $0x30] sm:$0xff]  ;;  %v568_v2 = vld [vmem:[%s736_s1 + $0x28] sm:$0xff]  ;;  %s745_s27 = smov (!%p242_p4, %s515_s27), 7 }
   0xd   : > { %346 = vmatpush.bf16.msra.mxu0 %v570_v0  ;;  %582 = vmatpush.bf16.msra.mxu1 %v570_v0  ;;  %v567_v3 = vld [vmem:[%s736_s1 + $0x20] sm:$0xff]  ;;  %v566_v4 = vld [vmem:[%s736_s1 + $0x18] sm:$0xff]  ;;  %v565_v5 = vld [vmem:[%s736_s1 + $0x10] sm:$0xff]  ;;  %s516_s8 = sshll.u32 %s745_s27, 2 }
   0xe   : > { %v564_v6 = vld [vmem:[%s736_s1 + $0x8] sm:$0xff]  ;;  %v563_v7 = vld [vmem:[%s736_s1] sm:$0xff]  ;;  %s245_s13 = scalar_lea.vmem %s735_s0, %s516_s8  ;;  %s264_s23 = scalar_lea.vmem %s739_s4, %s516_s8 }
   0xf   : > { %v561_v8 = vld [vmem:[%s245_s13] sm:$0xff]  ;;  %v562_v9 = vld [vmem:[%s245_s13 + $0x8] sm:$0xff] }
  0x10   : > { %v614_v12 = vld [vmem:[%s737_s2] ss:$0 sm:$0xff] }
  0x11   : > { %347 = vmatpush.bf16.msra.mxu0 %v569_v1  ;;  %583 = vmatpush.bf16.msra.mxu1 %v569_v1  ;;  %v615_v14 = vld [vmem:[%s738_s3] ss:$0 sm:$0xff] }
  0x15   : > { %348 = vmatpush.bf16.msra.mxu0 %v568_v2  ;;  %584 = vmatpush.bf16.msra.mxu1 %v568_v2 }
  0x19   : > { %349 = vmatpush.bf16.msra.mxu0 %v567_v3  ;;  %585 = vmatpush.bf16.msra.mxu1 %v567_v3 }
  0x1d   : > { %350 = vmatpush.bf16.msra.mxu0 %v566_v4  ;;  %586 = vmatpush.bf16.msra.mxu1 %v566_v4 }
  0x21   : > { %351 = vmatpush.bf16.msra.mxu0 %v565_v5  ;;  %587 = vmatpush.bf16.msra.mxu1 %v565_v5 }
  0x25   : > { %352 = vmatpush.bf16.msra.mxu0 %v564_v6  ;;  %588 = vmatpush.bf16.msra.mxu1 %v564_v6 }
  0x29   : > { %353 = vmatpush.bf16.msra.mxu0 %v563_v7  ;;  %589 = vmatpush.bf16.msra.mxu1 %v563_v7 }
  0x2c   : > { %354 = vmatmul.bf16.vlgmr.msra.gmra.mxu0 %v561_v8  ;;  %359 = vmatmul.bf16.vlgmr.msra.gmra.mxu1 %v562_v9 }
  0xa9   : > { %v355_v10 = vpop.f32.mrf.mxu0  ;;  %v360_v11 = vpop.f32.mrf.mxu1 }
  0xaa   : > { %v369_v13 = vmul.f32 %v614_v12, %v355_v10  ;;  %v371_v15 = vmul.f32 %v614_v12, %v360_v11 }
  0xac   : > { %v377_v18 = vadd.f32 %v615_v14, %v369_v13  ;;  %v379_v19 = vadd.f32 %v615_v14, %v371_v15 }
  0xae   : > { %v381_v24 = vmax.f32 %v377_v18, 0.0  ;;  %v383_v25 = vmax.f32 %v379_v19, 0.0 }
  0xb1   : > { %v357_v16 = vpop.f32.mrf.mxu0  ;;  %v362_v17 = vpop.f32.mrf.mxu1 }
  0xb2   : > { %v370_v20 = vmul.f32 %v614_v12, %v357_v16  ;;  %v372_v21 = vmul.f32 %v614_v12, %v362_v17 }
  0xb4   : > { %v378_v22 = vadd.f32 %v615_v14, %v370_v20  ;;  %v380_v23 = vadd.f32 %v615_v14, %v372_v21 }
  0xb6   : > { %v382_v26 = vmax.f32 %v378_v22, 0.0  ;;  %v384_v27 = vmax.f32 %v380_v23, 0.0 }
  0xb8   : > { %v574_v28 = vpack.c.bf16 %v382_v26, %v381_v24  ;;  %v579_v29 = vpack.c.bf16 %v384_v27, %v383_v25 }
  0xba   : > { %575 = vst [vmem:[%s264_s23] sm:$0xff] %v574_v28  }
  0xbb   : > { %581 = vst [vmem:[%s264_s23 + $0x8] sm:$0xff] %v579_v29  }
  0xbc PF: > { %s14_s17 = sadd.s32 1, %s638_s17   ;;  %s740_s15 = smov %s634_s16 }
  0xbd   : > { %p11_p5 = scmp.ge.s32.totalorder %s14_s17, 4   ;;  %s741_s16 = smov %s743_s18 }
  0xbf   :  { %13 = sbr.rel (!%p11_p5) target bundleno = 2 (0x2), region = 75 }

// kernel: embedding_net_forward.16
= control target key start
LH: loop header
LB: loop body
LE: loop exit
PB: predicated region body
PF: predicated region fallthrough
CT: control target
= control target key end

     0   :  { %s913_s18 = smov 0   ;;  %s915_s19 = smov 0   ;;  %s1074_s0 = inlined_call_operand.vmem [shape: bf16[64,128], index: 0, kind: input, shape index: {}]   ;;  %s1075_s1 = inlined_call_operand.vmem [shape: bf16[128,256], index: 1, kind: input, shape index: {}]   ;;  %s1076_s2 = inlined_call_operand.vmem [shape: f32[1,256], index: 2, kind: input, shape index: {}]   ;;  %s1077_s3 = inlined_call_operand.vmem [shape: f32[1,256], index: 3, kind: input, shape index: {}]   ;;  %s1078_s4 = inlined_call_operand.vmem [shape: bf16[64,256], index: 4, kind: input, shape index: {}]   ;;  %s1079_s5 = inlined_call_operand.vmem [shape: bf16[64,256], index: 5, kind: output, shape index: {}]  }
   0x1   :  { %s917_s20 = smov 0  }
   0x2 LB: > { %s27_s21 = sadd.s32 1, %s877_s19  ;;  %p716_p0 = scmp.ge.s32.totalorder %s881_s20, 1  ;;  %s881_s20 = sphi %s917_s20, %s15_s20   ;;  %s877_s19 = sphi %s915_s19, %s1081_s19   ;;  %s873_s18 = sphi %s913_s18, %s1080_s18  }
   0x3   : > { %p29_p1 = scmp.ge.s32.totalorder %s27_s21, 2  ;;  %p252_p2 = scmp.lt.s32.totalorder %s881_s20, 3 }
   0x5   : > { %s1083_s21 = smov (%p29_p1, %s27_s21), 0  ;;  %p253_p3 = pnand %p716_p0, %p252_p2 }
   0x6   : > { %s717_s16 = sshll.u32 (!%p253_p3), %s873_s18, 2 }
   0x7   : > { %256 = sbr.rel (%p253_p3) target bundleno = 198 (0xc6), region = 40  ;;  %p309_p4 = scmp.lt.s32.totalorder (!%p253_p3), %s717_s16, 7 }
   0xc   : > { %v791_v0 = vld [vmem:[%s1075_s1 + $0x70] sm:$0xf]  ;;  %v818_v1 = vld [vmem:[%s1075_s1 + $0x74] sm:$0xf0]  ;;  %v817_v2 = vld [vmem:[%s1075_s1 + $0x74] sm:$0xf] }
   0xd   : > { %v792_v3 = vor.u32 %v818_v1, %v791_v0  ;;  %v793_v4 = vld [vmem:[%s1075_s1 + $0x78] sm:$0xf0]  ;;  %v783_v5 = vld [vmem:[%s1075_s1 + $0x60] sm:$0xf]  ;;  %v816_v6 = vld [vmem:[%s1075_s1 + $0x64] sm:$0xf0] }
   0xe   : > { %v796_v7 = vor.u32 %v817_v2, %v793_v4  ;;  %v815_v8 = vld [vmem:[%s1075_s1 + $0x64] sm:$0xf]  ;;  %v785_v9 = vld [vmem:[%s1075_s1 + $0x68] sm:$0xf0]  ;;  %v784_v10 = vor.u32 %v816_v6, %v783_v5  ;;  %v775_v12 = vld [vmem:[%s1075_s1 + $0x50] sm:$0xf] }
   0xf   : > { %466 = vmatpush.bf16.msra.mxu0 %v792_v3  ;;  %819 = vmatpush.bf16.msra.mxu2 %v792_v3  ;;  %v788_v11 = vor.u32 %v815_v8, %v785_v9  ;;  %v814_v13 = vld [vmem:[%s1075_s1 + $0x54] sm:$0xf0]  ;;  %v813_v14 = vld [vmem:[%s1075_s1 + $0x54] sm:$0xf]  ;;  %v777_v15 = vld [vmem:[%s1075_s1 + $0x58] sm:$0xf0] }
  0x10   : > { %485 = vmatpush.bf16.msra.mxu1 %v796_v7  ;;  %827 = vmatpush.bf16.msra.mxu3 %v796_v7  ;;  %v776_v16 = vor.u32 %v814_v13, %v775_v12  ;;  %v780_v17 = vor.u32 %v813_v14, %v777_v15  ;;  %v767_v18 = vld [vmem:[%s1075_s1 + $0x40] sm:$0xf]  ;;  %v812_v19 = vld [vmem:[%s1075_s1 + $0x44] sm:$0xf0]  ;;  %v811_v20 = vld [vmem:[%s1075_s1 + $0x44] sm:$0xf] }
  0x11   : > { %v769_v21 = vld [vmem:[%s1075_s1 + $0x48] sm:$0xf0]  ;;  %v768_v22 = vor.u32 %v812_v19, %v767_v18  ;;  %v759_v24 = vld [vmem:[%s1075_s1 + $0x30] sm:$0xf]  ;;  %v810_v25 = vld [vmem:[%s1075_s1 + $0x34] sm:$0xf0] }
  0x12   : > { %v772_v23 = vor.u32 %v811_v20, %v769_v21  ;;  %v809_v26 = vld [vmem:[%s1075_s1 + $0x34] sm:$0xf]  ;;  %v761_v27 = vld [vmem:[%s1075_s1 + $0x38] sm:$0xf0]  ;;  %v760_v28 = vor.u32 %v810_v25, %v759_v24  ;;  %v751_v30 = vld [vmem:[%s1075_s1 + $0x20] sm:$0xf] }
  0x13   : > { %467 = vmatpush.bf16.msra.mxu0 %v784_v10  ;;  %820 = vmatpush.bf16.msra.mxu2 %v784_v10  ;;  %v764_v29 = vor.u32 %v809_v26, %v761_v27  ;;  %v808_v31 = vld [vmem:[%s1075_s1 + $0x24] sm:$0xf0]  ;;  %v807_v32 = vld [vmem:[%s1075_s1 + $0x24] sm:$0xf]  ;;  %v753_v33 = vld [vmem:[%s1075_s1 + $0x28] sm:$0xf0] }
  0x14   : > { %486 = vmatpush.bf16.msra.mxu1 %v788_v11  ;;  %828 = vmatpush.bf16.msra.mxu3 %v788_v11  ;;  %v752_v34 = vor.u32 %v808_v31, %v751_v30  ;;  %v756_v35 = vor.u32 %v807_v32, %v753_v33  ;;  %v743_v36 = vld [vmem:[%s1075_s1 + $0x10] sm:$0xf]  ;;  %v806_v37 = vld [vmem:[%s1075_s1 + $0x14] sm:$0xf0]  ;;  %s1085_s16 = smov (!%p309_p4, %s717_s16), 7 }
  0x15   : > { %v805_v38 = vld [vmem:[%s1075_s1 + $0x14] sm:$0xf]  ;;  %v745_v39 = vld [vmem:[%s1075_s1 + $0x18] sm:$0xf0]  ;;  %v744_v40 = vor.u32 %v806_v37, %v743_v36  ;;  %v735_v42 = vld [vmem:[%s1075_s1] sm:$0xf] }
  0x16   : > { %v748_v41 = vor.u32 %v805_v38, %v745_v39  ;;  %v804_v43 = vld [vmem:[%s1075_s1 + $0x4] sm:$0xf0]  ;;  %s718_s15 = sshll.u32 %s1085_s16, 2  ;;  %v803_v44 = vld [vmem:[%s1075_s1 + $0x4] sm:$0xf]  ;;  %s799_s27 = sshll.u32 %s1085_s16, 3 }
  0x17   : > { %468 = vmatpush.bf16.msra.mxu0 %v776_v16  ;;  %821 = vmatpush.bf16.msra.mxu2 %v776_v16  ;;  %v737_v45 = vld [vmem:[%s1075_s1 + $0x8] sm:$0xf0]  ;;  %v736_v46 = vor.u32 %v804_v43, %v735_v42  ;;  %s312_s18 = scalar_lea.vmem %s1074_s0, %s718_s15  ;;  %v504_v50 = vld [vmem:[%s1076_s2] sm:$0x3]  ;;  %s1045_s7 = scalar_lea.vmem %s1078_s4, %s799_s27 }
  0x18   : > { %487 = vmatpush.bf16.msra.mxu1 %v780_v17  ;;  %829 = vmatpush.bf16.msra.mxu3 %v780_v17  ;;  %v740_v47 = vor.u32 %v803_v44, %v737_v45  ;;  %v801_v48 = vld [vmem:[%s312_s18] sm:$0xff]  ;;  %v802_v49 = vld [vmem:[%s312_s18 + $0x8] sm:$0xff]  ;;  %v506_v52 = vperm.slane %v504_v50, 0  ;;  %v507_v54 = vperm.slane %v504_v50, 1  ;;  %v534_v1 = vld [vmem:[%s1045_s7 + $0x10] sm:$0xff]  ;;  %s1058_s12 = scalar_lea.vmem %s1079_s5, %s799_s27 }
  0x19   : > { %v518_v51 = vld [vmem:[%s1077_s3] sm:$0x3]  ;;  %v533_v5 = vld [vmem:[%s1045_s7 + $0x8] sm:$0xff]  ;;  %v540_v8 = vunpack.c.l.bf16 %v534_v1  ;;  %v541_v12 = vunpack.c.h.bf16 %v534_v1  ;;  %v535_v24 = vld [vmem:[%s1045_s7 + $0x18] sm:$0xff] }
  0x1a   : > { %v532_v53 = vld [vmem:[%s1045_s7] sm:$0xff]  ;;  %v520_v55 = vperm.slane %v518_v51, 0  ;;  %v521_v57 = vperm.slane %v518_v51, 1  ;;  %v538_v16 = vunpack.c.l.bf16 %v533_v5  ;;  %v539_v21 = vunpack.c.h.bf16 %v533_v5 }
  0x1b   : > { %469 = vmatpush.bf16.msra.mxu0 %v768_v22  ;;  %822 = vmatpush.bf16.msra.mxu2 %v768_v22  ;;  %v536_v59 = vunpack.c.l.bf16 %v532_v53  ;;  %v537_v62 = vunpack.c.h.bf16 %v532_v53  ;;  %v542_v30 = vunpack.c.l.bf16 %v535_v24  ;;  %v543_v38 = vunpack.c.h.bf16 %v535_v24 }
  0x1c   : > { %488 = vmatpush.bf16.msra.mxu1 %v772_v23  ;;  %830 = vmatpush.bf16.msra.mxu3 %v772_v23 }
  0x1f   : > { %470 = vmatpush.bf16.msra.mxu0 %v760_v28  ;;  %823 = vmatpush.bf16.msra.mxu2 %v760_v28 }
  0x20   : > { %489 = vmatpush.bf16.msra.mxu1 %v764_v29  ;;  %831 = vmatpush.bf16.msra.mxu3 %v764_v29 }
  0x23   : > { %471 = vmatpush.bf16.msra.mxu0 %v752_v34  ;;  %824 = vmatpush.bf16.msra.mxu2 %v752_v34 }
  0x24   : > { %490 = vmatpush.bf16.msra.mxu1 %v756_v35  ;;  %832 = vmatpush.bf16.msra.mxu3 %v756_v35 }
  0x27   : > { %472 = vmatpush.bf16.msra.mxu0 %v744_v40  ;;  %825 = vmatpush.bf16.msra.mxu2 %v744_v40 }
  0x28   : > { %491 = vmatpush.bf16.msra.mxu1 %v748_v41  ;;  %833 = vmatpush.bf16.msra.mxu3 %v748_v41 }
  0x2b   : > { %473 = vmatpush.bf16.msra.mxu0 %v736_v46  ;;  %826 = vmatpush.bf16.msra.mxu2 %v736_v46 }
  0x2c   : > { %492 = vmatpush.bf16.msra.mxu1 %v740_v47  ;;  %834 = vmatpush.bf16.msra.mxu3 %v740_v47 }
  0x2e   : > { %474 = vmatmul.bf16.vlgmr.msra.gmra.mxu0 %v801_v48  ;;  %479 = vmatmul.bf16.vlgmr.msra.gmra.mxu2 %v802_v49 }
  0x2f   : > { %493 = vmatmul.bf16.vlgmr.msra.gmra.mxu1 %v801_v48  ;;  %498 = vmatmul.bf16.vlgmr.msra.gmra.mxu3 %v802_v49 }
  0xab   : > { %v475_v56 = vpop.f32.mrf.mxu0 }
  0xac   : > { %v510_v58 = vmul.f32 %v506_v52, %v475_v56  ;;  %v494_v60 = vpop.f32.mrf.mxu1 }
  0xad   : > { %v511_v61 = vmul.f32 %v507_v54, %v494_v60 }
  0xae   : > { %v524_v63 = vadd.f32 %v520_v55, %v510_v58 }
  0xaf   : > { %v525_v0 = vadd.f32 %v521_v57, %v511_v61 }
  0xb0   : > { %v544_v2 = vadd.f32 %v536_v59, %v524_v63 }
  0xb1   : > { %v545_v3 = vadd.f32 %v537_v62, %v525_v0  ;;  %v480_v4 = vpop.f32.mrf.mxu2 }
  0xb2   : > { %v552_v6 = vmax.f32 %v544_v2, 0.0  ;;  %v514_v7 = vmul.f32 %v506_v52, %v480_v4  ;;  %v499_v9 = vpop.f32.mrf.mxu3 }
  0xb3   : > { %v553_v10 = vmax.f32 %v545_v3, 0.0  ;;  %v515_v11 = vmul.f32 %v507_v54, %v499_v9  ;;  %v477_v13 = vpop.f32.mrf.mxu0 }
  0xb4   : > { %v528_v14 = vadd.f32 %v520_v55, %v514_v7  ;;  %v512_v15 = vmul.f32 %v506_v52, %v477_v13  ;;  %v496_v17 = vpop.f32.mrf.mxu1 }
  0xb5   : > { %v560_v18 = vpack.c.bf16 %v553_v10, %v552_v6  ;;  %v529_v19 = vadd.f32 %v521_v57, %v515_v11  ;;  %v513_v20 = vmul.f32 %v507_v54, %v496_v17 }
  0xb6   : > { %v548_v22 = vadd.f32 %v540_v8, %v528_v14  ;;  %v526_v23 = vadd.f32 %v520_v55, %v512_v15 }
  0xb7   : > { %564 = vst [vmem:[%s1058_s12] sm:$0xff] %v560_v18  ;;  %v549_v25 = vadd.f32 %v541_v12, %v529_v19  ;;  %v527_v26 = vadd.f32 %v521_v57, %v513_v20 }
  0xb8   : > { %v546_v27 = vadd.f32 %v538_v16, %v526_v23  ;;  %v556_v31 = vmax.f32 %v548_v22, 0.0 }
  0xb9   : > { %v547_v28 = vadd.f32 %v539_v21, %v527_v26  ;;  %v482_v29 = vpop.f32.mrf.mxu2  ;;  %v557_v32 = vmax.f32 %v549_v25, 0.0 }
  0xba   : > { %v554_v33 = vmax.f32 %v546_v27, 0.0  ;;  %v516_v34 = vmul.f32 %v506_v52, %v482_v29  ;;  %v501_v35 = vpop.f32.mrf.mxu3 }
  0xbb   : > { %v555_v36 = vmax.f32 %v547_v28, 0.0  ;;  %v517_v37 = vmul.f32 %v507_v54, %v501_v35  ;;  %v562_v42 = vpack.c.bf16 %v557_v32, %v556_v31 }
  0xbc   : > { %v530_v39 = vadd.f32 %v520_v55, %v516_v34 }
  0xbd   : > { %v561_v40 = vpack.c.bf16 %v555_v36, %v554_v33  ;;  %v531_v41 = vadd.f32 %v521_v57, %v517_v37  ;;  %566 = vst [vmem:[%s1058_s12 + $0x10] sm:$0xff] %v562_v42 }
  0xbe   : > { %v550_v43 = vadd.f32 %v542_v30, %v530_v39 }
  0xbf   : > { %565 = vst [vmem:[%s1058_s12 + $0x8] sm:$0xff] %v561_v40  ;;  %v551_v44 = vadd.f32 %v543_v38, %v531_v41 }
  0xc0   : > { %v558_v45 = vmax.f32 %v550_v43, 0.0 }
  0xc1   : > { %v559_v46 = vmax.f32 %v551_v44, 0.0 }
  0xc3   : > { %v563_v47 = vpack.c.bf16 %v559_v46, %v558_v45 }
  0xc5   : > { %567 = vst [vmem:[%s1058_s12 + $0x18] sm:$0xff] %v563_v47 }
  0xc6 PF: > { %s15_s20 = sadd.s32 1, %s881_s20   ;;  %s1080_s18 = smov %s877_s19 }
  0xc7   : > { %p12_p5 = scmp.ge.s32.totalorder %s15_s20, 4   ;;  %s1081_s19 = smov %s1083_s21 }
  0xc9   :  { %14 = sbr.rel (!%p12_p5) target bundleno = 2 (0x2), region = 82 }

// kernel: embedding_net_forward.15
= control target key start
LH: loop header
LB: loop body
LE: loop exit
PB: predicated region body
PF: predicated region fallthrough
CT: control target
= control target key end

     0   :  { %s1249_s15 = smov 0   ;;  %s1251_s16 = smov 0   ;;  %s1437_s0 = inlined_call_operand.vmem [shape: bf16[64,640], index: 0, kind: input, shape index: {}]   ;;  %s1438_s1 = inlined_call_operand.vmem [shape: bf16[640,128], index: 1, kind: input, shape index: {}]   ;;  %s1439_s2 = inlined_call_operand.vmem [shape: f32[1,128], index: 2, kind: input, shape index: {}]   ;;  %s1440_s3 = inlined_call_operand.vmem [shape: f32[1,128], index: 3, kind: input, shape index: {}]   ;;  %s1441_s4 = inlined_call_operand.vmem [shape: bf16[64,128], index: 4, kind: output, shape index: {}]  }
   0x1   :  { %s1253_s17 = smov 0  }
   0x2 LB: > { %s26_s18 = sadd.s32 1, %s1218_s16  ;;  %p897_p0 = scmp.ge.s32.totalorder %s1222_s17, 1  ;;  %s1222_s17 = sphi %s1253_s17, %s14_s17   ;;  %s1218_s16 = sphi %s1251_s16, %s1443_s16   ;;  %s1214_s15 = sphi %s1249_s15, %s1442_s15  }
   0x3   : > { %p28_p1 = scmp.ge.s32.totalorder %s26_s18, 2  ;;  %p203_p2 = scmp.lt.s32.totalorder %s1222_s17, 3 }
   0x5   : > { %s1445_s18 = smov (%p28_p1, %s26_s18), 0  ;;  %p204_p3 = pnand %p897_p0, %p203_p2 }
   0x6   : > { %s898_s21 = sshll.u32 (!%p204_p3), %s1214_s15, 2 }
   0x7   : > { %207 = sbr.rel (%p204_p3) target bundleno = 222 (0xde), region = 36  ;;  %p244_p4 = scmp.lt.s32.totalorder (!%p204_p3), %s898_s21, 7 }
   0xc   : > { %v1121_v0 = vld [vmem:[%s1438_s1 + $0x38] sm:$0xff]  ;;  %v1120_v4 = vld [vmem:[%s1438_s1 + $0x30] sm:$0xff]  ;;  %v1119_v8 = vld [vmem:[%s1438_s1 + $0x28] sm:$0xff]  ;;  %s1447_s21 = smov (!%p244_p4, %s898_s21), 7 }
   0xd   : > { %v1129_v1 = vld [vmem:[%s1438_s1 + $0x78] sm:$0xff]  ;;  %653 = vmatpush.bf16.msra.mxu0 %v1121_v0  ;;  %v1128_v5 = vld [vmem:[%s1438_s1 + $0x70] sm:$0xff]  ;;  %v1127_v9 = vld [vmem:[%s1438_s1 + $0x68] sm:$0xff]  ;;  %s1173_s19 = smul.u32 20, %s1447_s21 }
   0xe   : > { %v1137_v2 = vld [vmem:[%s1438_s1 + $0xb8] sm:$0xff]  ;;  %672 = vmatpush.bf16.msra.mxu1 %v1129_v1  ;;  %v1136_v6 = vld [vmem:[%s1438_s1 + $0xb0] sm:$0xff]  ;;  %v1135_v10 = vld [vmem:[%s1438_s1 + $0xa8] sm:$0xff] }
   0xf   : > { %v1145_v3 = vld [vmem:[%s1438_s1 + $0xf8] sm:$0xff]  ;;  %691 = vmatpush.bf16.msra.mxu2 %v1137_v2  ;;  %v1144_v7 = vld [vmem:[%s1438_s1 + $0xf0] sm:$0xff]  ;;  %v1143_v11 = vld [vmem:[%s1438_s1 + $0xe8] sm:$0xff]  ;;  %s1354_s30 = scalar_lea.vmem %s1437_s0, %s1173_s19  ;;  %s901_s19 = sshll.u32 %s1447_s21, 2 }
  0x10   : > { %710 = vmatpush.bf16.msra.mxu3 %v1145_v3  ;;  %v1118_v12 = vld [vmem:[%s1438_s1 + $0x20] sm:$0xff]  ;;  %v1117_v16 = vld [vmem:[%s1438_s1 + $0x18] sm:$0xff]  ;;  %v1116_v20 = vld [vmem:[%s1438_s1 + $0x10] sm:$0xff]  ;;  %s267_s23 = scalar_lea.vmem %s1441_s4, %s901_s19 }
  0x11   : > { %654 = vmatpush.bf16.msra.mxu0 %v1120_v4  ;;  %v1126_v13 = vld [vmem:[%s1438_s1 + $0x60] sm:$0xff]  ;;  %v1125_v17 = vld [vmem:[%s1438_s1 + $0x58] sm:$0xff]  ;;  %v1124_v21 = vld [vmem:[%s1438_s1 + $0x50] sm:$0xff] }
  0x12   : > { %673 = vmatpush.bf16.msra.mxu1 %v1128_v5  ;;  %v1134_v14 = vld [vmem:[%s1438_s1 + $0xa0] sm:$0xff]  ;;  %v1133_v18 = vld [vmem:[%s1438_s1 + $0x98] sm:$0xff]  ;;  %v1132_v22 = vld [vmem:[%s1438_s1 + $0x90] sm:$0xff] }
  0x13   : > { %692 = vmatpush.bf16.msra.mxu2 %v1136_v6  ;;  %v1142_v15 = vld [vmem:[%s1438_s1 + $0xe0] sm:$0xff]  ;;  %v1141_v19 = vld [vmem:[%s1438_s1 + $0xd8] sm:$0xff]  ;;  %v1140_v23 = vld [vmem:[%s1438_s1 + $0xd0] sm:$0xff] }
  0x14   : > { %711 = vmatpush.bf16.msra.mxu3 %v1144_v7  ;;  %v1115_v24 = vld [vmem:[%s1438_s1 + $0x8] sm:$0xff]  ;;  %v1114_v28 = vld [vmem:[%s1438_s1] sm:$0xff]  ;;  %v1106_v33 = vld [vmem:[%s1354_s30 + $0x10] sm:$0xf0] }
  0x15   : > { %655 = vmatpush.bf16.msra.mxu0 %v1119_v8  ;;  %v1123_v25 = vld [vmem:[%s1438_s1 + $0x48] sm:$0xff]  ;;  %v1122_v29 = vld [vmem:[%s1438_s1 + $0x40] sm:$0xff]  ;;  %v906_v35 = vld [vmem:[%s1354_s30 + $0x14] sm:$0xf0] }
  0x16   : > { %674 = vmatpush.bf16.msra.mxu1 %v1127_v9  ;;  %v1131_v26 = vld [vmem:[%s1438_s1 + $0x88] sm:$0xff]  ;;  %v1130_v30 = vld [vmem:[%s1438_s1 + $0x80] sm:$0xff]  ;;  %v1107_v37 = vld [vmem:[%s1354_s30 + $0x18] sm:$0xf0] }
  0x17   : > { %693 = vmatpush.bf16.msra.mxu2 %v1135_v10  ;;  %v1139_v27 = vld [vmem:[%s1438_s1 + $0xc8] sm:$0xff]  ;;  %v1138_v31 = vld [vmem:[%s1438_s1 + $0xc0] sm:$0xff]  ;;  %v1153_v40 = vld [vmem:[%s1438_s1 + $0x138] sm:$0xff] }
  0x18   : > { %712 = vmatpush.bf16.msra.mxu3 %v1143_v11  ;;  %v904_v32 = vld [vmem:[%s1354_s30] sm:$0xf]  ;;  %v1104_v34 = vld [vmem:[%s1354_s30 + $0x4] sm:$0xf]  ;;  %v912_v36 = vld [vmem:[%s1354_s30 + $0x8] sm:$0xf] }
  0x19   : > { %656 = vmatpush.bf16.msra.mxu0 %v1118_v12  ;;  %v1105_v38 = vld [vmem:[%s1354_s30 + $0xc] sm:$0xf]  ;;  %v914_v39 = vld [vmem:[%s1354_s30 + $0x1c] sm:$0xf0]  ;;  %v905_v41 = vor.u32 %v1106_v33, %v904_v32  ;;  %v909_v42 = vor.u32 %v1104_v34, %v906_v35  ;;  %v913_v43 = vor.u32 %v1107_v37, %v912_v36  ;;  %v1152_v45 = vld [vmem:[%s1438_s1 + $0x130] sm:$0xff] }
  0x1a   : > { %675 = vmatpush.bf16.msra.mxu1 %v1126_v13  ;;  %v917_v44 = vor.u32 %v1105_v38, %v914_v39  ;;  %v1151_v46 = vld [vmem:[%s1438_s1 + $0x128] sm:$0xff]  ;;  %v1150_v47 = vld [vmem:[%s1438_s1 + $0x120] sm:$0xff]  ;;  %v1111_v49 = vld [vmem:[%s1354_s30 + $0x38] sm:$0xf0] }
  0x1b   : > { %694 = vmatpush.bf16.msra.mxu2 %v1134_v14  ;;  %v924_v48 = vld [vmem:[%s1354_s30 + $0x28] sm:$0xf]  ;;  %v1109_v50 = vld [vmem:[%s1354_s30 + $0x2c] sm:$0xf]  ;;  %v926_v51 = vld [vmem:[%s1354_s30 + $0x3c] sm:$0xf0] }
  0x1c   : > { %713 = vmatpush.bf16.msra.mxu3 %v1142_v15  ;;  %v932_v52 = vld [vmem:[%s1354_s30 + $0x30] sm:$0xf]  ;;  %v1112_v53 = vld [vmem:[%s1354_s30 + $0x40] sm:$0xf0]  ;;  %v1110_v54 = vld [vmem:[%s1354_s30 + $0x34] sm:$0xf]  ;;  %v925_v57 = vor.u32 %v1111_v49, %v924_v48  ;;  %v929_v58 = vor.u32 %v1109_v50, %v926_v51 }
  0x1d   : > { %657 = vmatpush.bf16.msra.mxu0 %v1117_v16  ;;  %v934_v55 = vld [vmem:[%s1354_s30 + $0x44] sm:$0xf0]  ;;  %v1149_v56 = vld [vmem:[%s1438_s1 + $0x118] sm:$0xff]  ;;  %v933_v59 = vor.u32 %v1112_v53, %v932_v52  ;;  %v1148_v61 = vld [vmem:[%s1438_s1 + $0x110] sm:$0xff] }
  0x1e   : > { %676 = vmatpush.bf16.msra.mxu1 %v1125_v17  ;;  %v937_v60 = vor.u32 %v1110_v54, %v934_v55  ;;  %v1147_v62 = vld [vmem:[%s1438_s1 + $0x108] sm:$0xff]  ;;  %v1146_v63 = vld [vmem:[%s1438_s1 + $0x100] sm:$0xff]  ;;  %v920_v0 = vld [vmem:[%s1354_s30 + $0x10] sm:$0xf] }
  0x1f   : > { %695 = vmatpush.bf16.msra.mxu2 %v1133_v18  ;;  %v1108_v1 = vld [vmem:[%s1354_s30 + $0x20] sm:$0xf0]  ;;  %v940_v2 = vld [vmem:[%s1354_s30 + $0x38] sm:$0xf]  ;;  %v1113_v3 = vld [vmem:[%s1354_s30 + $0x48] sm:$0xf0] }
  0x20   : > { %714 = vmatpush.bf16.msra.mxu3 %v1141_v19  ;;  %v921_v4 = vor.u32 %v1108_v1, %v920_v0  ;;  %v941_v5 = vor.u32 %v1113_v3, %v940_v2  ;;  %v1198_v34 = vld [vmem:[%s1439_s2] ss:$0 sm:$0xff] }
  0x21   : > { %658 = vmatpush.bf16.msra.mxu0 %v1116_v20 }
  0x22   : > { %677 = vmatpush.bf16.msra.mxu1 %v1124_v21 }
  0x23   : > { %696 = vmatpush.bf16.msra.mxu2 %v1132_v22 }
  0x24   : > { %715 = vmatpush.bf16.msra.mxu3 %v1140_v23 }
  0x25   : > { %659 = vmatpush.bf16.msra.mxu0 %v1115_v24 }
  0x26   : > { %678 = vmatpush.bf16.msra.mxu1 %v1123_v25 }
  0x27   : > { %697 = vmatpush.bf16.msra.mxu2 %v1131_v26 }
  0x28   : > { %716 = vmatpush.bf16.msra.mxu3 %v1139_v27 }
  0x29   : > { %660 = vmatpush.bf16.msra.mxu0 %v1114_v28 }
  0x2a   : > { %679 = vmatpush.bf16.msra.mxu1 %v1122_v29 }
  0x2b   : > { %698 = vmatpush.bf16.msra.mxu2 %v1130_v30 }
  0x2c   : > { %717 = vmatpush.bf16.msra.mxu3 %v1138_v31  ;;  %661 = vmatmul.bf16.vlgmr.msra.gmra.mxu0 %v905_v41 }
  0x2d   : > { %729 = vmatpush.bf16.msrb.mxu0 %v1153_v40  ;;  %680 = vmatmul.bf16.vlgmr.msra.gmra.mxu1 %v909_v42 }
  0x2e   : > { %1165 = vmatpush.bf16.msrb.mxu1 %v1153_v40  ;;  %699 = vmatmul.bf16.vlgmr.msra.gmra.mxu2 %v913_v43  ;;  %v1199_v40 = vld [vmem:[%s1440_s3] ss:$0 sm:$0xff] }
  0x2f   : > { %718 = vmatmul.bf16.vlgmr.msra.gmra.mxu3 %v917_v44 }
  0x31   : > { %730 = vmatpush.bf16.msrb.mxu0 %v1152_v45 }
  0x32   : > { %1166 = vmatpush.bf16.msrb.mxu1 %v1152_v45 }
  0x35   : > { %731 = vmatpush.bf16.msrb.mxu0 %v1151_v46 }
  0x36   : > { %1167 = vmatpush.bf16.msrb.mxu1 %v1151_v46 }
  0x39   : > { %732 = vmatpush.bf16.msrb.mxu0 %v1150_v47 }
  0x3a   : > { %1168 = vmatpush.bf16.msrb.mxu1 %v1150_v47 }
  0x3c   : > { %666 = vmatmul.bf16.gmra.mxu0 %v925_v57 }
  0x3d   : > { %733 = vmatpush.bf16.msrb.mxu0 %v1149_v56  ;;  %685 = vmatmul.bf16.gmra.mxu1 %v929_v58 }
  0x3e   : > { %1169 = vmatpush.bf16.msrb.mxu1 %v1149_v56  ;;  %704 = vmatmul.bf16.gmra.mxu2 %v933_v59 }
  0x3f   : > { %723 = vmatmul.bf16.gmra.mxu3 %v937_v60 }
  0x41   : > { %734 = vmatpush.bf16.msrb.mxu0 %v1148_v61 }
  0x42   : > { %1170 = vmatpush.bf16.msrb.mxu1 %v1148_v61 }
  0x45   : > { %735 = vmatpush.bf16.msrb.mxu0 %v1147_v62 }
  0x46   : > { %1171 = vmatpush.bf16.msrb.mxu1 %v1147_v62 }
  0x49   : > { %736 = vmatpush.bf16.msrb.mxu0 %v1146_v63 }
  0x4a   : > { %1172 = vmatpush.bf16.msrb.mxu1 %v1146_v63 }
  0x4c   : > { %737 = vmatmul.bf16.vlgmr.msrb.gmra.mxu0 %v921_v4 }
  0x4d   : > { %742 = vmatmul.bf16.vlgmr.msrb.gmra.mxu1 %v941_v5 }
  0xa9   : > { %v662_v6 = vpop.f32.mrf.mxu0 }
  0xaa   : > { %v681_v7 = vpop.f32.mrf.mxu1 }
  0xab   : > { %v682_v20 = vadd.f32 %v681_v7, %v662_v6 }
  0xb1   : > { %v700_v8 = vpop.f32.mrf.mxu2  ;;  %v664_v10 = vpop.f32.mrf.mxu0 }
  0xb2   : > { %v719_v9 = vpop.f32.mrf.mxu3  ;;  %v683_v11 = vpop.f32.mrf.mxu1  ;;  %v701_v22 = vadd.f32 %v700_v8, %v682_v20 }
  0xb3   : > { %v684_v28 = vadd.f32 %v683_v11, %v664_v10 }
  0xb4   : > { %v720_v27 = vadd.f32 %v719_v9, %v701_v22 }
  0xb9   : > { %v702_v12 = vpop.f32.mrf.mxu2  ;;  %v667_v14 = vpop.f32.mrf.mxu0 }
  0xba   : > { %v721_v13 = vpop.f32.mrf.mxu3  ;;  %v686_v15 = vpop.f32.mrf.mxu1  ;;  %v703_v31 = vadd.f32 %v702_v12, %v684_v28 }
  0xbb   : > { %v687_v21 = vadd.f32 %v686_v15, %v667_v14 }
  0xbc   : > { %v722_v37 = vadd.f32 %v721_v13, %v703_v31 }
  0xc1   : > { %v705_v16 = vpop.f32.mrf.mxu2  ;;  %v669_v17 = vpop.f32.mrf.mxu0 }
  0xc2   : > { %v688_v18 = vpop.f32.mrf.mxu1  ;;  %v724_v19 = vpop.f32.mrf.mxu3  ;;  %v706_v23 = vadd.f32 %v705_v16, %v687_v21 }
  0xc3   : > { %v689_v30 = vadd.f32 %v688_v18, %v669_v17 }
  0xc4   : > { %v725_v29 = vadd.f32 %v724_v19, %v706_v23 }
  0xc9   : > { %v707_v24 = vpop.f32.mrf.mxu2  ;;  %v738_v25 = vpop.f32.mrf.mxu0 }
  0xca   : > { %v743_v26 = vpop.f32.mrf.mxu1  ;;  %v708_v32 = vadd.f32 %v707_v24, %v689_v30  ;;  %v739_v33 = vadd.f32 %v738_v25, %v720_v27  ;;  %v726_v36 = vpop.f32.mrf.mxu3 }
  0xcb   : > { %v744_v35 = vadd.f32 %v743_v26, %v725_v29 }
  0xcc   : > { %v727_v38 = vadd.f32 %v726_v36, %v708_v32  ;;  %v752_v39 = vmul.f32 %v1198_v34, %v739_v33 }
  0xcd   : > { %v754_v41 = vmul.f32 %v1198_v34, %v744_v35 }
  0xce   : > { %v760_v46 = vadd.f32 %v1199_v40, %v752_v39 }
  0xcf   : > { %v762_v47 = vadd.f32 %v1199_v40, %v754_v41 }
  0xd0   : > { %v764_v52 = vmax.f32 %v760_v46, 0.0 }
  0xd1   : > { %v740_v42 = vpop.f32.mrf.mxu0  ;;  %v766_v53 = vmax.f32 %v762_v47, 0.0 }
  0xd2   : > { %v745_v43 = vpop.f32.mrf.mxu1  ;;  %v741_v44 = vadd.f32 %v740_v42, %v722_v37 }
  0xd3   : > { %v746_v45 = vadd.f32 %v745_v43, %v727_v38 }
  0xd4   : > { %v753_v48 = vmul.f32 %v1198_v34, %v741_v44 }
  0xd5   : > { %v755_v49 = vmul.f32 %v1198_v34, %v746_v45 }
  0xd6   : > { %v761_v50 = vadd.f32 %v1199_v40, %v753_v48 }
  0xd7   : > { %v763_v51 = vadd.f32 %v1199_v40, %v755_v49 }
  0xd8   : > { %v765_v54 = vmax.f32 %v761_v50, 0.0 }
  0xd9   : > { %v767_v55 = vmax.f32 %v763_v51, 0.0 }
  0xda   : > { %v1157_v56 = vpack.c.bf16 %v765_v54, %v764_v52 }
  0xdb   : > { %v1162_v57 = vpack.c.bf16 %v767_v55, %v766_v53 }
  0xdc   : > { %1158 = vst [vmem:[%s267_s23] sm:$0xff] %v1157_v56  }
  0xdd   : > { %1164 = vst [vmem:[%s267_s23 + $0x8] sm:$0xff] %v1162_v57  }
  0xde PF: > { %s14_s17 = sadd.s32 1, %s1222_s17   ;;  %s1442_s15 = smov %s1218_s16 }
  0xdf   : > { %p11_p5 = scmp.ge.s32.totalorder %s14_s17, 4   ;;  %s1443_s16 = smov %s1445_s18 }
  0xe1   :  { %13 = sbr.rel (!%p11_p5) target bundleno = 2 (0x2), region = 75 }

// kernel: embedding_net_forward.13
= control target key start
LH: loop header
LB: loop body
LE: loop exit
PB: predicated region body
PF: predicated region fallthrough
CT: control target
= control target key end

     0   :  { %s790_s15 = smov 0   ;;  %s792_s16 = smov 0   ;;  %s932_s0 = inlined_call_operand.vmem [shape: bf16[64,128], index: 0, kind: input, shape index: {}]   ;;  %s933_s1 = inlined_call_operand.vmem [shape: bf16[128,256], index: 1, kind: input, shape index: {}]   ;;  %s934_s2 = inlined_call_operand.vmem [shape: f32[1,256], index: 2, kind: input, shape index: {}]   ;;  %s935_s3 = inlined_call_operand.vmem [shape: f32[1,256], index: 3, kind: input, shape index: {}]   ;;  %s936_s4 = inlined_call_operand.vmem [shape: bf16[64,256], index: 4, kind: output, shape index: {}]  }
   0x1   :  { %s794_s17 = smov 0  }
   0x2 LB: > { %s26_s18 = sadd.s32 1, %s759_s16  ;;  %p602_p0 = scmp.ge.s32.totalorder %s763_s17, 1  ;;  %s763_s17 = sphi %s794_s17, %s14_s17   ;;  %s759_s16 = sphi %s792_s16, %s938_s16   ;;  %s755_s15 = sphi %s790_s15, %s937_s15  }
   0x3   : > { %p28_p1 = scmp.ge.s32.totalorder %s26_s18, 2  ;;  %p208_p2 = scmp.lt.s32.totalorder %s763_s17, 3 }
   0x5   : > { %s940_s18 = smov (%p28_p1, %s26_s18), 0  ;;  %p209_p3 = pnand %p602_p0, %p208_p2 }
   0x6   : > { %s603_s11 = sshll.u32 (!%p209_p3), %s755_s15, 2 }
   0x7   : > { %212 = sbr.rel (%p209_p3) target bundleno = 194 (0xc2), region = 36  ;;  %p253_p4 = scmp.lt.s32.totalorder (!%p209_p3), %s603_s11, 7 }
   0xc   : > { %v674_v0 = vld [vmem:[%s933_s1 + $0x70] sm:$0xf]  ;;  %v700_v1 = vld [vmem:[%s933_s1 + $0x74] sm:$0xf0]  ;;  %v699_v2 = vld [vmem:[%s933_s1 + $0x74] sm:$0xf] }
   0xd   : > { %v675_v3 = vor.u32 %v700_v1, %v674_v0  ;;  %v676_v4 = vld [vmem:[%s933_s1 + $0x78] sm:$0xf0]  ;;  %v666_v5 = vld [vmem:[%s933_s1 + $0x60] sm:$0xf]  ;;  %v698_v6 = vld [vmem:[%s933_s1 + $0x64] sm:$0xf0] }
   0xe   : > { %v679_v7 = vor.u32 %v699_v2, %v676_v4  ;;  %v697_v8 = vld [vmem:[%s933_s1 + $0x64] sm:$0xf]  ;;  %v668_v9 = vld [vmem:[%s933_s1 + $0x68] sm:$0xf0]  ;;  %v667_v10 = vor.u32 %v698_v6, %v666_v5  ;;  %v658_v12 = vld [vmem:[%s933_s1 + $0x50] sm:$0xf] }
   0xf   : > { %398 = vmatpush.bf16.msra.mxu0 %v675_v3  ;;  %701 = vmatpush.bf16.msra.mxu2 %v675_v3  ;;  %v671_v11 = vor.u32 %v697_v8, %v668_v9  ;;  %v696_v13 = vld [vmem:[%s933_s1 + $0x54] sm:$0xf0]  ;;  %v695_v14 = vld [vmem:[%s933_s1 + $0x54] sm:$0xf]  ;;  %v660_v15 = vld [vmem:[%s933_s1 + $0x58] sm:$0xf0] }
  0x10   : > { %417 = vmatpush.bf16.msra.mxu1 %v679_v7  ;;  %709 = vmatpush.bf16.msra.mxu3 %v679_v7  ;;  %v659_v16 = vor.u32 %v696_v13, %v658_v12  ;;  %v663_v17 = vor.u32 %v695_v14, %v660_v15  ;;  %v650_v18 = vld [vmem:[%s933_s1 + $0x40] sm:$0xf]  ;;  %v694_v19 = vld [vmem:[%s933_s1 + $0x44] sm:$0xf0]  ;;  %v693_v20 = vld [vmem:[%s933_s1 + $0x44] sm:$0xf] }
  0x11   : > { %v652_v21 = vld [vmem:[%s933_s1 + $0x48] sm:$0xf0]  ;;  %v651_v22 = vor.u32 %v694_v19, %v650_v18  ;;  %v642_v24 = vld [vmem:[%s933_s1 + $0x30] sm:$0xf]  ;;  %v692_v25 = vld [vmem:[%s933_s1 + $0x34] sm:$0xf0] }
  0x12   : > { %v655_v23 = vor.u32 %v693_v20, %v652_v21  ;;  %v691_v26 = vld [vmem:[%s933_s1 + $0x34] sm:$0xf]  ;;  %v644_v27 = vld [vmem:[%s933_s1 + $0x38] sm:$0xf0]  ;;  %v643_v28 = vor.u32 %v692_v25, %v642_v24  ;;  %v634_v30 = vld [vmem:[%s933_s1 + $0x20] sm:$0xf] }
  0x13   : > { %399 = vmatpush.bf16.msra.mxu0 %v667_v10  ;;  %702 = vmatpush.bf16.msra.mxu2 %v667_v10  ;;  %v647_v29 = vor.u32 %v691_v26, %v644_v27  ;;  %v690_v31 = vld [vmem:[%s933_s1 + $0x24] sm:$0xf0]  ;;  %v689_v32 = vld [vmem:[%s933_s1 + $0x24] sm:$0xf]  ;;  %v636_v33 = vld [vmem:[%s933_s1 + $0x28] sm:$0xf0] }
  0x14   : > { %418 = vmatpush.bf16.msra.mxu1 %v671_v11  ;;  %710 = vmatpush.bf16.msra.mxu3 %v671_v11  ;;  %v635_v34 = vor.u32 %v690_v31, %v634_v30  ;;  %v639_v35 = vor.u32 %v689_v32, %v636_v33  ;;  %v626_v36 = vld [vmem:[%s933_s1 + $0x10] sm:$0xf]  ;;  %v688_v37 = vld [vmem:[%s933_s1 + $0x14] sm:$0xf0]  ;;  %s942_s11 = smov (!%p253_p4, %s603_s11), 7 }
  0x15   : > { %v687_v38 = vld [vmem:[%s933_s1 + $0x14] sm:$0xf]  ;;  %v628_v39 = vld [vmem:[%s933_s1 + $0x18] sm:$0xf0]  ;;  %v627_v40 = vor.u32 %v688_v37, %v626_v36  ;;  %v618_v42 = vld [vmem:[%s933_s1] sm:$0xf] }
  0x16   : > { %v631_v41 = vor.u32 %v687_v38, %v628_v39  ;;  %v686_v43 = vld [vmem:[%s933_s1 + $0x4] sm:$0xf0]  ;;  %s604_s9 = sshll.u32 %s942_s11, 2  ;;  %v685_v44 = vld [vmem:[%s933_s1 + $0x4] sm:$0xf]  ;;  %s682_s25 = sshll.u32 %s942_s11, 3 }
  0x17   : > { %400 = vmatpush.bf16.msra.mxu0 %v659_v16  ;;  %703 = vmatpush.bf16.msra.mxu2 %v659_v16  ;;  %v620_v45 = vld [vmem:[%s933_s1 + $0x8] sm:$0xf0]  ;;  %v619_v46 = vor.u32 %v686_v43, %v618_v42  ;;  %s256_s21 = scalar_lea.vmem %s932_s0, %s604_s9  ;;  %v436_v50 = vld [vmem:[%s934_s2] sm:$0x3]  ;;  %s283_s28 = scalar_lea.vmem %s936_s4, %s682_s25 }
  0x18   : > { %419 = vmatpush.bf16.msra.mxu1 %v663_v17  ;;  %711 = vmatpush.bf16.msra.mxu3 %v663_v17  ;;  %v623_v47 = vor.u32 %v685_v44, %v620_v45  ;;  %v683_v48 = vld [vmem:[%s256_s21] sm:$0xff]  ;;  %v684_v49 = vld [vmem:[%s256_s21 + $0x8] sm:$0xff]  ;;  %v438_v52 = vperm.slane %v436_v50, 0  ;;  %v439_v53 = vperm.slane %v436_v50, 1 }
  0x19   : > { %v450_v51 = vld [vmem:[%s935_s3] sm:$0x3] }
  0x1a   : > { %v452_v54 = vperm.slane %v450_v51, 0  ;;  %v453_v56 = vperm.slane %v450_v51, 1 }
  0x1b   : > { %401 = vmatpush.bf16.msra.mxu0 %v651_v22  ;;  %704 = vmatpush.bf16.msra.mxu2 %v651_v22 }
  0x1c   : > { %420 = vmatpush.bf16.msra.mxu1 %v655_v23  ;;  %712 = vmatpush.bf16.msra.mxu3 %v655_v23 }
  0x1f   : > { %402 = vmatpush.bf16.msra.mxu0 %v643_v28  ;;  %705 = vmatpush.bf16.msra.mxu2 %v643_v28 }
  0x20   : > { %421 = vmatpush.bf16.msra.mxu1 %v647_v29  ;;  %713 = vmatpush.bf16.msra.mxu3 %v647_v29 }
  0x23   : > { %403 = vmatpush.bf16.msra.mxu0 %v635_v34  ;;  %706 = vmatpush.bf16.msra.mxu2 %v635_v34 }
  0x24   : > { %422 = vmatpush.bf16.msra.mxu1 %v639_v35  ;;  %714 = vmatpush.bf16.msra.mxu3 %v639_v35 }
  0x27   : > { %404 = vmatpush.bf16.msra.mxu0 %v627_v40  ;;  %707 = vmatpush.bf16.msra.mxu2 %v627_v40 }
  0x28   : > { %423 = vmatpush.bf16.msra.mxu1 %v631_v41  ;;  %715 = vmatpush.bf16.msra.mxu3 %v631_v41 }
  0x2b   : > { %405 = vmatpush.bf16.msra.mxu0 %v619_v46  ;;  %708 = vmatpush.bf16.msra.mxu2 %v619_v46 }
  0x2c   : > { %424 = vmatpush.bf16.msra.mxu1 %v623_v47  ;;  %716 = vmatpush.bf16.msra.mxu3 %v623_v47 }
  0x2e   : > { %406 = vmatmul.bf16.vlgmr.msra.gmra.mxu0 %v683_v48  ;;  %411 = vmatmul.bf16.vlgmr.msra.gmra.mxu2 %v684_v49 }
  0x2f   : > { %425 = vmatmul.bf16.vlgmr.msra.gmra.mxu1 %v683_v48  ;;  %430 = vmatmul.bf16.vlgmr.msra.gmra.mxu3 %v684_v49 }
  0xab   : > { %v407_v55 = vpop.f32.mrf.mxu0 }
  0xac   : > { %v442_v57 = vmul.f32 %v438_v52, %v407_v55  ;;  %v426_v58 = vpop.f32.mrf.mxu1 }
  0xad   : > { %v443_v59 = vmul.f32 %v439_v53, %v426_v58 }
  0xae   : > { %v456_v60 = vadd.f32 %v452_v54, %v442_v57 }
  0xaf   : > { %v457_v61 = vadd.f32 %v453_v56, %v443_v59 }
  0xb1   : > { %v464_v62 = vpack.c.bf16 %v457_v61, %v456_v60  ;;  %v412_v63 = vpop.f32.mrf.mxu2 }
  0xb2   : > { %v446_v0 = vmul.f32 %v438_v52, %v412_v63  ;;  %v431_v1 = vpop.f32.mrf.mxu3 }
  0xb3   : > { %468 = vst [vmem:[%s283_s28] sm:$0xff] %v464_v62  ;;  %v447_v2 = vmul.f32 %v439_v53, %v431_v1  ;;  %v409_v3 = vpop.f32.mrf.mxu0 }
  0xb4   : > { %v444_v4 = vmul.f32 %v438_v52, %v409_v3  ;;  %v428_v5 = vpop.f32.mrf.mxu1  ;;  %v460_v7 = vadd.f32 %v452_v54, %v446_v0 }
  0xb5   : > { %v445_v6 = vmul.f32 %v439_v53, %v428_v5  ;;  %v461_v8 = vadd.f32 %v453_v56, %v447_v2 }
  0xb6   : > { %v458_v9 = vadd.f32 %v452_v54, %v444_v4 }
  0xb7   : > { %v459_v10 = vadd.f32 %v453_v56, %v445_v6  ;;  %v466_v13 = vpack.c.bf16 %v461_v8, %v460_v7 }
  0xb9   : > { %v465_v11 = vpack.c.bf16 %v459_v10, %v458_v9  ;;  %v414_v12 = vpop.f32.mrf.mxu2  ;;  %470 = vst [vmem:[%s283_s28 + $0x10] sm:$0xff] %v466_v13 }
  0xba   : > { %v448_v14 = vmul.f32 %v438_v52, %v414_v12  ;;  %v433_v15 = vpop.f32.mrf.mxu3 }
  0xbb   : > { %469 = vst [vmem:[%s283_s28 + $0x8] sm:$0xff] %v465_v11  ;;  %v449_v16 = vmul.f32 %v439_v53, %v433_v15 }
  0xbc   : > { %v462_v17 = vadd.f32 %v452_v54, %v448_v14 }
  0xbd   : > { %v463_v18 = vadd.f32 %v453_v56, %v449_v16 }
  0xbf   : > { %v467_v19 = vpack.c.bf16 %v463_v18, %v462_v17 }
  0xc1   : > { %471 = vst [vmem:[%s283_s28 + $0x18] sm:$0xff] %v467_v19 }
  0xc2 PF: > { %s14_s17 = sadd.s32 1, %s763_s17   ;;  %s937_s15 = smov %s759_s16 }
  0xc3   : > { %p11_p5 = scmp.ge.s32.totalorder %s14_s17, 4   ;;  %s938_s16 = smov %s940_s18 }
  0xc5   :  { %13 = sbr.rel (!%p11_p5) target bundleno = 2 (0x2), region = 75 }

// kernel: embedding_net_forward.17
= control target key start
LH: loop header
LB: loop body
LE: loop exit
PB: predicated region body
PF: predicated region fallthrough
CT: control target
= control target key end

     0   :  { %s819_s15 = smov 0   ;;  %s821_s16 = smov 0   ;;  %s913_s0 = inlined_call_operand.vmem [shape: bf16[64,256], index: 0, kind: input, shape index: {}]   ;;  %s914_s1 = inlined_call_operand.vmem [shape: bf16[256,128], index: 1, kind: input, shape index: {}]   ;;  %s915_s2 = inlined_call_operand.vmem [shape: f32[1,128], index: 2, kind: input, shape index: {}]   ;;  %s916_s3 = inlined_call_operand.vmem [shape: f32[1,128], index: 3, kind: input, shape index: {}]   ;;  %s917_s4 = inlined_call_operand.vmem [shape: bf16[64,128], index: 4, kind: output, shape index: {}]  }
   0x1   :  { %s823_s17 = smov 0  }
   0x2 LB: > { %s26_s18 = sadd.s32 1, %s788_s16  ;;  %p608_p0 = scmp.ge.s32.totalorder %s792_s17, 1  ;;  %s792_s17 = sphi %s823_s17, %s14_s17   ;;  %s788_s16 = sphi %s821_s16, %s919_s16   ;;  %s784_s15 = sphi %s819_s15, %s918_s15  }
   0x3   : > { %p28_p1 = scmp.ge.s32.totalorder %s26_s18, 2  ;;  %p203_p2 = scmp.lt.s32.totalorder %s792_s17, 3 }
   0x5   : > { %s921_s18 = smov (%p28_p1, %s26_s18), 0  ;;  %p204_p3 = pnand %p608_p0, %p203_p2 }
   0x6   : > { %s609_s5 = sshll.u32 (!%p204_p3), %s784_s15, 2 }
   0x7   : > { %207 = sbr.rel (%p204_p3) target bundleno = 196 (0xc4), region = 36  ;;  %p244_p4 = scmp.lt.s32.totalorder (!%p204_p3), %s609_s5, 7 }
   0xc   : > { %v708_v0 = vld [vmem:[%s914_s1 + $0x38] sm:$0xff]  ;;  %v707_v2 = vld [vmem:[%s914_s1 + $0x30] sm:$0xff]  ;;  %v706_v4 = vld [vmem:[%s914_s1 + $0x28] sm:$0xff]  ;;  %s923_s5 = smov (!%p244_p4, %s609_s5), 7 }
   0xd   : > { %v716_v1 = vld [vmem:[%s914_s1 + $0x78] sm:$0xff]  ;;  %421 = vmatpush.bf16.msra.mxu0 %v708_v0  ;;  %728 = vmatpush.bf16.msra.mxu2 %v708_v0  ;;  %v715_v3 = vld [vmem:[%s914_s1 + $0x70] sm:$0xff]  ;;  %v714_v5 = vld [vmem:[%s914_s1 + $0x68] sm:$0xff]  ;;  %s696_s21 = sshll.u32 %s923_s5, 3  ;;  %s613_s12 = sshll.u32 %s923_s5, 2 }
   0xe   : > { %440 = vmatpush.bf16.msra.mxu1 %v716_v1  ;;  %736 = vmatpush.bf16.msra.mxu3 %v716_v1  ;;  %v705_v6 = vld [vmem:[%s914_s1 + $0x20] sm:$0xff]  ;;  %v704_v8 = vld [vmem:[%s914_s1 + $0x18] sm:$0xff]  ;;  %v703_v10 = vld [vmem:[%s914_s1 + $0x10] sm:$0xff]  ;;  %s248_s26 = scalar_lea.vmem %s913_s0, %s696_s21  ;;  %s267_s15 = scalar_lea.vmem %s917_s4, %s613_s12 }
   0xf   : > { %v713_v7 = vld [vmem:[%s914_s1 + $0x60] sm:$0xff]  ;;  %v712_v9 = vld [vmem:[%s914_s1 + $0x58] sm:$0xff]  ;;  %v711_v11 = vld [vmem:[%s914_s1 + $0x50] sm:$0xff] }
  0x10   : > { %v702_v12 = vld [vmem:[%s914_s1 + $0x8] sm:$0xff]  ;;  %v701_v14 = vld [vmem:[%s914_s1] sm:$0xff]  ;;  %v624_v18 = vld [vmem:[%s248_s26 + $0x10] sm:$0xf] }
  0x11   : > { %422 = vmatpush.bf16.msra.mxu0 %v707_v2  ;;  %729 = vmatpush.bf16.msra.mxu2 %v707_v2  ;;  %v710_v13 = vld [vmem:[%s914_s1 + $0x48] sm:$0xff]  ;;  %v709_v15 = vld [vmem:[%s914_s1 + $0x40] sm:$0xff]  ;;  %v700_v19 = vld [vmem:[%s248_s26 + $0x14] sm:$0xf0] }
  0x12   : > { %441 = vmatpush.bf16.msra.mxu1 %v715_v3  ;;  %737 = vmatpush.bf16.msra.mxu3 %v715_v3  ;;  %v616_v16 = vld [vmem:[%s248_s26] sm:$0xf]  ;;  %v698_v17 = vld [vmem:[%s248_s26 + $0x4] sm:$0xf0]  ;;  %v697_v20 = vld [vmem:[%s248_s26 + $0x4] sm:$0xf]  ;;  %v625_v25 = vor.u32 %v700_v19, %v624_v18 }
  0x13   : > { %v618_v21 = vld [vmem:[%s248_s26 + $0x8] sm:$0xf0]  ;;  %v699_v22 = vld [vmem:[%s248_s26 + $0x14] sm:$0xf]  ;;  %v626_v23 = vld [vmem:[%s248_s26 + $0x18] sm:$0xf0]  ;;  %v617_v24 = vor.u32 %v698_v17, %v616_v16 }
  0x14   : > { %v621_v26 = vor.u32 %v697_v20, %v618_v21  ;;  %v629_v27 = vor.u32 %v699_v22, %v626_v23  ;;  %v768_v31 = vld [vmem:[%s915_s2] ss:$0 sm:$0xff] }
  0x15   : > { %423 = vmatpush.bf16.msra.mxu0 %v706_v4  ;;  %730 = vmatpush.bf16.msra.mxu2 %v706_v4  ;;  %v769_v35 = vld [vmem:[%s916_s3] ss:$0 sm:$0xff] }
  0x16   : > { %442 = vmatpush.bf16.msra.mxu1 %v714_v5  ;;  %738 = vmatpush.bf16.msra.mxu3 %v714_v5 }
  0x19   : > { %424 = vmatpush.bf16.msra.mxu0 %v705_v6  ;;  %731 = vmatpush.bf16.msra.mxu2 %v705_v6 }
  0x1a   : > { %443 = vmatpush.bf16.msra.mxu1 %v713_v7  ;;  %739 = vmatpush.bf16.msra.mxu3 %v713_v7 }
  0x1d   : > { %425 = vmatpush.bf16.msra.mxu0 %v704_v8  ;;  %732 = vmatpush.bf16.msra.mxu2 %v704_v8 }
  0x1e   : > { %444 = vmatpush.bf16.msra.mxu1 %v712_v9  ;;  %740 = vmatpush.bf16.msra.mxu3 %v712_v9 }
  0x21   : > { %426 = vmatpush.bf16.msra.mxu0 %v703_v10  ;;  %733 = vmatpush.bf16.msra.mxu2 %v703_v10 }
  0x22   : > { %445 = vmatpush.bf16.msra.mxu1 %v711_v11  ;;  %741 = vmatpush.bf16.msra.mxu3 %v711_v11 }
  0x25   : > { %427 = vmatpush.bf16.msra.mxu0 %v702_v12  ;;  %734 = vmatpush.bf16.msra.mxu2 %v702_v12 }
  0x26   : > { %446 = vmatpush.bf16.msra.mxu1 %v710_v13  ;;  %742 = vmatpush.bf16.msra.mxu3 %v710_v13 }
  0x29   : > { %428 = vmatpush.bf16.msra.mxu0 %v701_v14  ;;  %735 = vmatpush.bf16.msra.mxu2 %v701_v14 }
  0x2a   : > { %447 = vmatpush.bf16.msra.mxu1 %v709_v15  ;;  %743 = vmatpush.bf16.msra.mxu3 %v709_v15 }
  0x2c   : > { %429 = vmatmul.bf16.vlgmr.msra.gmra.mxu0 %v617_v24  ;;  %434 = vmatmul.bf16.vlgmr.msra.gmra.mxu2 %v625_v25 }
  0x2d   : > { %448 = vmatmul.bf16.vlgmr.msra.gmra.mxu1 %v621_v26  ;;  %453 = vmatmul.bf16.vlgmr.msra.gmra.mxu3 %v629_v27 }
  0xa9   : > { %v430_v28 = vpop.f32.mrf.mxu0 }
  0xaa   : > { %v449_v29 = vpop.f32.mrf.mxu1 }
  0xab   : > { %v450_v30 = vadd.f32 %v449_v29, %v430_v28 }
  0xad   : > { %v463_v34 = vmul.f32 %v768_v31, %v450_v30 }
  0xaf   : > { %v435_v32 = vpop.f32.mrf.mxu2  ;;  %v471_v40 = vadd.f32 %v769_v35, %v463_v34 }
  0xb0   : > { %v454_v33 = vpop.f32.mrf.mxu3 }
  0xb1   : > { %v432_v36 = vpop.f32.mrf.mxu0  ;;  %v455_v38 = vadd.f32 %v454_v33, %v435_v32  ;;  %v475_v46 = vmax.f32 %v471_v40, 0.0 }
  0xb2   : > { %v451_v37 = vpop.f32.mrf.mxu1 }
  0xb3   : > { %v452_v39 = vadd.f32 %v451_v37, %v432_v36  ;;  %v465_v42 = vmul.f32 %v768_v31, %v455_v38 }
  0xb5   : > { %v464_v41 = vmul.f32 %v768_v31, %v452_v39  ;;  %v473_v49 = vadd.f32 %v769_v35, %v465_v42 }
  0xb7   : > { %v472_v43 = vadd.f32 %v769_v35, %v464_v41  ;;  %v437_v44 = vpop.f32.mrf.mxu2  ;;  %v477_v53 = vmax.f32 %v473_v49, 0.0 }
  0xb8   : > { %v456_v45 = vpop.f32.mrf.mxu3 }
  0xb9   : > { %v476_v47 = vmax.f32 %v472_v43, 0.0  ;;  %v457_v48 = vadd.f32 %v456_v45, %v437_v44 }
  0xbb   : > { %v720_v50 = vpack.c.bf16 %v476_v47, %v475_v46  ;;  %v466_v51 = vmul.f32 %v768_v31, %v457_v48 }
  0xbd   : > { %721 = vst [vmem:[%s267_s15] sm:$0xff] %v720_v50   ;;  %v474_v52 = vadd.f32 %v769_v35, %v466_v51 }
  0xbf   : > { %v478_v54 = vmax.f32 %v474_v52, 0.0 }
  0xc1   : > { %v725_v55 = vpack.c.bf16 %v478_v54, %v477_v53 }
  0xc3   : > { %727 = vst [vmem:[%s267_s15 + $0x8] sm:$0xff] %v725_v55  }
  0xc4 PF: > { %s14_s17 = sadd.s32 1, %s792_s17   ;;  %s918_s15 = smov %s788_s16 }
  0xc5   : > { %p11_p5 = scmp.ge.s32.totalorder %s14_s17, 4   ;;  %s919_s16 = smov %s921_s18 }
  0xc7   :  { %13 = sbr.rel (!%p11_p5) target bundleno = 2 (0x2), region = 75 }

// kernel: embedding_net_forward.23
= control target key start
LH: loop header
LB: loop body
LE: loop exit
PB: predicated region body
PF: predicated region fallthrough
CT: control target
= control target key end

     0   :  { %s10322_s1 = inlined_call_operand.vmem [shape: bf16[8192,128], index: 1, kind: input, shape index: {}]   ;;  %s10323_s0 = inlined_call_operand.vmem [shape: bf16[16,8192], index: 0, kind: input, shape index: {}]   ;;  %s10324_s2 = inlined_call_operand.vmem [shape: f32[1,128], index: 2, kind: input, shape index: {}]   ;;  %s10325_s3 = inlined_call_operand.vmem [shape: f32[1,128], index: 3, kind: input, shape index: {}]   ;;  %s10326_s4 = inlined_call_operand.vmem [shape: f32[16,128], index: 4, kind: output, shape index: {}]  }
   0x1   :  { %v7786_v0 = vld [vmem:[%s10322_s1 + $0x38] sm:$0xff]  ;;  %v7785_v4 = vld [vmem:[%s10322_s1 + $0x30] sm:$0xff]  ;;  %v7784_v8 = vld [vmem:[%s10322_s1 + $0x28] sm:$0xff] }
   0x2   :  { %v7794_v1 = vld [vmem:[%s10322_s1 + $0x78] sm:$0xff]  ;;  %4497 = vmatpush.bf16.msra.mxu0 %v7786_v0  ;;  %v7793_v5 = vld [vmem:[%s10322_s1 + $0x70] sm:$0xff]  ;;  %v7792_v9 = vld [vmem:[%s10322_s1 + $0x68] sm:$0xff] }
   0x3   :  { %v7802_v2 = vld [vmem:[%s10322_s1 + $0xb8] sm:$0xff]  ;;  %4511 = vmatpush.bf16.msra.mxu1 %v7794_v1  ;;  %v7801_v6 = vld [vmem:[%s10322_s1 + $0xb0] sm:$0xff]  ;;  %v7800_v10 = vld [vmem:[%s10322_s1 + $0xa8] sm:$0xff] }
   0x4   :  { %v7810_v3 = vld [vmem:[%s10322_s1 + $0xf8] sm:$0xff]  ;;  %4525 = vmatpush.bf16.msra.mxu2 %v7802_v2  ;;  %v7809_v7 = vld [vmem:[%s10322_s1 + $0xf0] sm:$0xff]  ;;  %v7808_v11 = vld [vmem:[%s10322_s1 + $0xe8] sm:$0xff] }
   0x5   :  { %4539 = vmatpush.bf16.msra.mxu3 %v7810_v3  ;;  %v7783_v12 = vld [vmem:[%s10322_s1 + $0x20] sm:$0xff]  ;;  %v7782_v16 = vld [vmem:[%s10322_s1 + $0x18] sm:$0xff]  ;;  %v7781_v20 = vld [vmem:[%s10322_s1 + $0x10] sm:$0xff] }
   0x6   :  { %4498 = vmatpush.bf16.msra.mxu0 %v7785_v4  ;;  %v7791_v13 = vld [vmem:[%s10322_s1 + $0x60] sm:$0xff]  ;;  %v7790_v17 = vld [vmem:[%s10322_s1 + $0x58] sm:$0xff]  ;;  %v7789_v21 = vld [vmem:[%s10322_s1 + $0x50] sm:$0xff] }
   0x7   :  { %4512 = vmatpush.bf16.msra.mxu1 %v7793_v5  ;;  %v7799_v14 = vld [vmem:[%s10322_s1 + $0xa0] sm:$0xff]  ;;  %v7798_v18 = vld [vmem:[%s10322_s1 + $0x98] sm:$0xff]  ;;  %v7797_v22 = vld [vmem:[%s10322_s1 + $0x90] sm:$0xff] }
   0x8   :  { %4526 = vmatpush.bf16.msra.mxu2 %v7801_v6  ;;  %v7807_v15 = vld [vmem:[%s10322_s1 + $0xe0] sm:$0xff]  ;;  %v7806_v19 = vld [vmem:[%s10322_s1 + $0xd8] sm:$0xff]  ;;  %v7805_v23 = vld [vmem:[%s10322_s1 + $0xd0] sm:$0xff] }
   0x9   :  { %4540 = vmatpush.bf16.msra.mxu3 %v7809_v7  ;;  %v7780_v24 = vld [vmem:[%s10322_s1 + $0x8] sm:$0xff]  ;;  %v7779_v28 = vld [vmem:[%s10322_s1] sm:$0xff]  ;;  %v7818_v32 = vld [vmem:[%s10322_s1 + $0x138] sm:$0xff] }
   0xa   :  { %4499 = vmatpush.bf16.msra.mxu0 %v7784_v8  ;;  %v7788_v25 = vld [vmem:[%s10322_s1 + $0x48] sm:$0xff]  ;;  %v7787_v29 = vld [vmem:[%s10322_s1 + $0x40] sm:$0xff]  ;;  %v7826_v33 = vld [vmem:[%s10322_s1 + $0x178] sm:$0xff] }
   0xb   :  { %4513 = vmatpush.bf16.msra.mxu1 %v7792_v9  ;;  %v7796_v26 = vld [vmem:[%s10322_s1 + $0x88] sm:$0xff]  ;;  %v7795_v30 = vld [vmem:[%s10322_s1 + $0x80] sm:$0xff]  ;;  %v7834_v42 = vld [vmem:[%s10322_s1 + $0x1b8] sm:$0xff] }
   0xc   :  { %4527 = vmatpush.bf16.msra.mxu2 %v7800_v10  ;;  %v7804_v27 = vld [vmem:[%s10322_s1 + $0xc8] sm:$0xff]  ;;  %v7803_v31 = vld [vmem:[%s10322_s1 + $0xc0] sm:$0xff]  ;;  %v7842_v43 = vld [vmem:[%s10322_s1 + $0x1f8] sm:$0xff] }
   0xd   :  { %4541 = vmatpush.bf16.msra.mxu3 %v7808_v11  ;;  %v5413_v34 = vld [vmem:[%s10323_s0] sm:$0xf]  ;;  %v5421_v36 = vld [vmem:[%s10323_s0 + $0x8] sm:$0xf]  ;;  %v7715_v38 = vld [vmem:[%s10323_s0 + $0x4] sm:$0xf] }
   0xe   :  { %4500 = vmatpush.bf16.msra.mxu0 %v7783_v12  ;;  %v7747_v35 = vld [vmem:[%s10323_s0 + $0xfc] sm:$0xf0]  ;;  %v7748_v37 = vld [vmem:[%s10323_s0 + $0x104] sm:$0xf0]  ;;  %v5415_v39 = vld [vmem:[%s10323_s0 + $0x100] sm:$0xf0] }
   0xf   :  { %4514 = vmatpush.bf16.msra.mxu1 %v7791_v13  ;;  %v7716_v40 = vld [vmem:[%s10323_s0 + $0xc] sm:$0xf]  ;;  %v5414_v44 = vor.u32 %v7747_v35, %v5413_v34  ;;  %v5422_v45 = vor.u32 %v7748_v37, %v5421_v36  ;;  %v5418_v46 = vor.u32 %v7715_v38, %v5415_v39  ;;  %v7817_v48 = vld [vmem:[%s10322_s1 + $0x130] sm:$0xff]  ;;  %v7815_v56 = vld [vmem:[%s10322_s1 + $0x120] sm:$0xff] }
  0x10   :  { %4528 = vmatpush.bf16.msra.mxu2 %v7799_v14  ;;  %v5423_v41 = vld [vmem:[%s10323_s0 + $0x108] sm:$0xf0]  ;;  %v7825_v49 = vld [vmem:[%s10322_s1 + $0x170] sm:$0xff]  ;;  %v7823_v57 = vld [vmem:[%s10322_s1 + $0x160] sm:$0xff] }
  0x11   :  { %4542 = vmatpush.bf16.msra.mxu3 %v7807_v15  ;;  %v5426_v47 = vor.u32 %v7716_v40, %v5423_v41  ;;  %v7833_v50 = vld [vmem:[%s10322_s1 + $0x1b0] sm:$0xff]  ;;  %v7816_v52 = vld [vmem:[%s10322_s1 + $0x128] sm:$0xff]  ;;  %v7831_v58 = vld [vmem:[%s10322_s1 + $0x1a0] sm:$0xff] }
  0x12   :  { %4501 = vmatpush.bf16.msra.mxu0 %v7782_v16  ;;  %v7841_v51 = vld [vmem:[%s10322_s1 + $0x1f0] sm:$0xff]  ;;  %v7824_v53 = vld [vmem:[%s10322_s1 + $0x168] sm:$0xff]  ;;  %v7839_v59 = vld [vmem:[%s10322_s1 + $0x1e0] sm:$0xff] }
  0x13   :  { %4515 = vmatpush.bf16.msra.mxu1 %v7790_v17  ;;  %v7832_v54 = vld [vmem:[%s10322_s1 + $0x1a8] sm:$0xff]  ;;  %v7814_v60 = vld [vmem:[%s10322_s1 + $0x118] sm:$0xff]  ;;  %v7813_v0 = vld [vmem:[%s10322_s1 + $0x110] sm:$0xff] }
  0x14   :  { %4529 = vmatpush.bf16.msra.mxu2 %v7798_v18  ;;  %v7840_v55 = vld [vmem:[%s10322_s1 + $0x1e8] sm:$0xff]  ;;  %v7822_v61 = vld [vmem:[%s10322_s1 + $0x158] sm:$0xff]  ;;  %v7821_v1 = vld [vmem:[%s10322_s1 + $0x150] sm:$0xff] }
  0x15   :  { %4543 = vmatpush.bf16.msra.mxu3 %v7806_v19  ;;  %v7830_v62 = vld [vmem:[%s10322_s1 + $0x198] sm:$0xff]  ;;  %v7829_v2 = vld [vmem:[%s10322_s1 + $0x190] sm:$0xff]  ;;  %v7812_v4 = vld [vmem:[%s10322_s1 + $0x108] sm:$0xff] }
  0x16   :  { %4502 = vmatpush.bf16.msra.mxu0 %v7781_v20  ;;  %v7838_v63 = vld [vmem:[%s10322_s1 + $0x1d8] sm:$0xff]  ;;  %v7837_v3 = vld [vmem:[%s10322_s1 + $0x1d0] sm:$0xff]  ;;  %v7820_v5 = vld [vmem:[%s10322_s1 + $0x148] sm:$0xff] }
  0x17   :  { %4516 = vmatpush.bf16.msra.mxu1 %v7789_v21  ;;  %v7828_v6 = vld [vmem:[%s10322_s1 + $0x188] sm:$0xff]  ;;  %v7811_v8 = vld [vmem:[%s10322_s1 + $0x100] sm:$0xff]  ;;  %v7850_v12 = vld [vmem:[%s10322_s1 + $0x238] sm:$0xff] }
  0x18   :  { %4530 = vmatpush.bf16.msra.mxu2 %v7797_v22  ;;  %v7836_v7 = vld [vmem:[%s10322_s1 + $0x1c8] sm:$0xff]  ;;  %v7819_v9 = vld [vmem:[%s10322_s1 + $0x140] sm:$0xff]  ;;  %v7858_v13 = vld [vmem:[%s10322_s1 + $0x278] sm:$0xff] }
  0x19   :  { %4544 = vmatpush.bf16.msra.mxu3 %v7805_v23  ;;  %v7827_v10 = vld [vmem:[%s10322_s1 + $0x180] sm:$0xff]  ;;  %v5429_v14 = vld [vmem:[%s10323_s0 + $0x10] sm:$0xf]  ;;  %v5437_v16 = vld [vmem:[%s10323_s0 + $0x18] sm:$0xf] }
  0x1a   :  { %4503 = vmatpush.bf16.msra.mxu0 %v7780_v24  ;;  %v7835_v11 = vld [vmem:[%s10322_s1 + $0x1c0] sm:$0xff]  ;;  %v7749_v15 = vld [vmem:[%s10323_s0 + $0x10c] sm:$0xf0]  ;;  %v7750_v17 = vld [vmem:[%s10323_s0 + $0x114] sm:$0xf0] }
  0x1b   :  { %4517 = vmatpush.bf16.msra.mxu1 %v7788_v25  ;;  %v7717_v18 = vld [vmem:[%s10323_s0 + $0x14] sm:$0xf]  ;;  %v7718_v20 = vld [vmem:[%s10323_s0 + $0x1c] sm:$0xf]  ;;  %v5430_v24 = vor.u32 %v7749_v15, %v5429_v14  ;;  %v5438_v25 = vor.u32 %v7750_v17, %v5437_v16  ;;  %v7864_v34 = vld [vmem:[%s10322_s1 + $0x2a8] sm:$0xff] }
  0x1c   :  { %4531 = vmatpush.bf16.msra.mxu2 %v7796_v26  ;;  %v5431_v19 = vld [vmem:[%s10323_s0 + $0x110] sm:$0xf0]  ;;  %v5439_v21 = vld [vmem:[%s10323_s0 + $0x118] sm:$0xf0]  ;;  %v7872_v35 = vld [vmem:[%s10322_s1 + $0x2e8] sm:$0xff] }
  0x1d   :  { %4545 = vmatpush.bf16.msra.mxu3 %v7804_v27  ;;  %v7866_v22 = vld [vmem:[%s10322_s1 + $0x2b8] sm:$0xff]  ;;  %v5434_v26 = vor.u32 %v7717_v18, %v5431_v19  ;;  %v5442_v27 = vor.u32 %v7718_v20, %v5439_v21  ;;  %v7847_v36 = vld [vmem:[%s10322_s1 + $0x220] sm:$0xff]  ;;  %v7896_v14 = vld [vmem:[%s10322_s1 + $0x3a8] sm:$0xff] }
  0x1e   :  { %4504 = vmatpush.bf16.msra.mxu0 %v7779_v28  ;;  %v7874_v23 = vld [vmem:[%s10322_s1 + $0x2f8] sm:$0xff]  ;;  %v7849_v28 = vld [vmem:[%s10322_s1 + $0x230] sm:$0xff]  ;;  %v7855_v37 = vld [vmem:[%s10322_s1 + $0x260] sm:$0xff] }
  0x1f   :  { %4518 = vmatpush.bf16.msra.mxu1 %v7787_v29  ;;  %v7857_v29 = vld [vmem:[%s10322_s1 + $0x270] sm:$0xff]  ;;  %v7863_v38 = vld [vmem:[%s10322_s1 + $0x2a0] sm:$0xff]  ;;  %v7846_v40 = vld [vmem:[%s10322_s1 + $0x218] sm:$0xff] }
  0x20   :  { %4532 = vmatpush.bf16.msra.mxu2 %v7795_v30  ;;  %v7865_v30 = vld [vmem:[%s10322_s1 + $0x2b0] sm:$0xff]  ;;  %v7871_v39 = vld [vmem:[%s10322_s1 + $0x2e0] sm:$0xff]  ;;  %v7854_v41 = vld [vmem:[%s10322_s1 + $0x258] sm:$0xff] }
  0x21   :  { %4546 = vmatpush.bf16.msra.mxu3 %v7803_v31  ;;  %4505 = vmatmul.bf16.vlgmr.msra.gmra.mxu0 %v5414_v44  ;;  %v7873_v31 = vld [vmem:[%s10322_s1 + $0x2f0] sm:$0xff]  ;;  %v7904_v15 = vld [vmem:[%s10322_s1 + $0x3e8] sm:$0xff]  ;;  %v7879_v16 = vld [vmem:[%s10322_s1 + $0x320] sm:$0xff] }
  0x22   :  { %4553 = vmatpush.bf16.msrb.mxu0 %v7818_v32  ;;  %4519 = vmatmul.bf16.vlgmr.msra.gmra.mxu1 %v5418_v46  ;;  %v7848_v32 = vld [vmem:[%s10322_s1 + $0x228] sm:$0xff]  ;;  %v7845_v44 = vld [vmem:[%s10322_s1 + $0x210] sm:$0xff]  ;;  %v7887_v17 = vld [vmem:[%s10322_s1 + $0x360] sm:$0xff] }
  0x23   :  { %4567 = vmatpush.bf16.msrb.mxu1 %v7826_v33  ;;  %4533 = vmatmul.bf16.vlgmr.msra.gmra.mxu2 %v5422_v45  ;;  %v7856_v33 = vld [vmem:[%s10322_s1 + $0x268] sm:$0xff]  ;;  %v7853_v45 = vld [vmem:[%s10322_s1 + $0x250] sm:$0xff]  ;;  %v7895_v18 = vld [vmem:[%s10322_s1 + $0x3a0] sm:$0xff] }
  0x24   :  { %4581 = vmatpush.bf16.msrb.mxu2 %v7834_v42  ;;  %4547 = vmatmul.bf16.vlgmr.msra.gmra.mxu3 %v5426_v47  ;;  %v7862_v42 = vld [vmem:[%s10322_s1 + $0x298] sm:$0xff]  ;;  %v7861_v46 = vld [vmem:[%s10322_s1 + $0x290] sm:$0xff]  ;;  %v7903_v19 = vld [vmem:[%s10322_s1 + $0x3e0] sm:$0xff] }
  0x25   :  { %4595 = vmatpush.bf16.msrb.mxu3 %v7842_v43  ;;  %v7870_v43 = vld [vmem:[%s10322_s1 + $0x2d8] sm:$0xff]  ;;  %v7869_v47 = vld [vmem:[%s10322_s1 + $0x2d0] sm:$0xff] }
  0x26   :  { %4554 = vmatpush.bf16.msrb.mxu0 %v7817_v48  ;;  %v7844_v48 = vld [vmem:[%s10322_s1 + $0x208] sm:$0xff]  ;;  %v7878_v20 = vld [vmem:[%s10322_s1 + $0x318] sm:$0xff] }
  0x27   :  { %4568 = vmatpush.bf16.msrb.mxu1 %v7825_v49  ;;  %v7852_v49 = vld [vmem:[%s10322_s1 + $0x248] sm:$0xff]  ;;  %v7886_v21 = vld [vmem:[%s10322_s1 + $0x358] sm:$0xff] }
  0x28   :  { %4582 = vmatpush.bf16.msrb.mxu2 %v7833_v50  ;;  %v7860_v50 = vld [vmem:[%s10322_s1 + $0x288] sm:$0xff] }
  0x29   :  { %4596 = vmatpush.bf16.msrb.mxu3 %v7841_v51  ;;  %v7868_v51 = vld [vmem:[%s10322_s1 + $0x2c8] sm:$0xff] }
  0x2a   :  { %4555 = vmatpush.bf16.msrb.mxu0 %v7816_v52  ;;  %v7843_v52 = vld [vmem:[%s10322_s1 + $0x200] sm:$0xff] }
  0x2b   :  { %4569 = vmatpush.bf16.msrb.mxu1 %v7824_v53  ;;  %v7851_v53 = vld [vmem:[%s10322_s1 + $0x240] sm:$0xff] }
  0x2c   :  { %4583 = vmatpush.bf16.msrb.mxu2 %v7832_v54  ;;  %v7859_v54 = vld [vmem:[%s10322_s1 + $0x280] sm:$0xff] }
  0x2d   :  { %4597 = vmatpush.bf16.msrb.mxu3 %v7840_v55  ;;  %v7867_v55 = vld [vmem:[%s10322_s1 + $0x2c0] sm:$0xff] }
  0x2e   :  { %4556 = vmatpush.bf16.msrb.mxu0 %v7815_v56  ;;  %v7882_v56 = vld [vmem:[%s10322_s1 + $0x338] sm:$0xff] }
  0x2f   :  { %4570 = vmatpush.bf16.msrb.mxu1 %v7823_v57  ;;  %v7890_v57 = vld [vmem:[%s10322_s1 + $0x378] sm:$0xff] }
  0x30   :  { %4584 = vmatpush.bf16.msrb.mxu2 %v7831_v58  ;;  %v5445_v58 = vld [vmem:[%s10323_s0 + $0x20] sm:$0xf] }
  0x31   :  { %4598 = vmatpush.bf16.msrb.mxu3 %v7839_v59  ;;  %v7751_v59 = vld [vmem:[%s10323_s0 + $0x11c] sm:$0xf0] }
  0x32   :  { %4557 = vmatpush.bf16.msrb.mxu0 %v7814_v60  ;;  %v5453_v60 = vld [vmem:[%s10323_s0 + $0x28] sm:$0xf] }
  0x33   :  { %4571 = vmatpush.bf16.msrb.mxu1 %v7822_v61  ;;  %v7752_v61 = vld [vmem:[%s10323_s0 + $0x124] sm:$0xf0] }
  0x34   :  { %4585 = vmatpush.bf16.msrb.mxu2 %v7830_v62  ;;  %v7719_v62 = vld [vmem:[%s10323_s0 + $0x24] sm:$0xf] }
  0x35   :  { %4599 = vmatpush.bf16.msrb.mxu3 %v7838_v63  ;;  %v5447_v63 = vld [vmem:[%s10323_s0 + $0x120] sm:$0xf0] }
  0x36   :  { %4558 = vmatpush.bf16.msrb.mxu0 %v7813_v0  ;;  %v7720_v0 = vld [vmem:[%s10323_s0 + $0x2c] sm:$0xf] }
  0x37   :  { %4572 = vmatpush.bf16.msrb.mxu1 %v7821_v1  ;;  %v5455_v1 = vld [vmem:[%s10323_s0 + $0x128] sm:$0xf0] }
  0x38   :  { %4586 = vmatpush.bf16.msrb.mxu2 %v7829_v2  ;;  %v7898_v2 = vld [vmem:[%s10322_s1 + $0x3b8] sm:$0xff] }
  0x39   :  { %4600 = vmatpush.bf16.msrb.mxu3 %v7837_v3  ;;  %v7906_v3 = vld [vmem:[%s10322_s1 + $0x3f8] sm:$0xff] }
  0x3a   :  { %4559 = vmatpush.bf16.msrb.mxu0 %v7812_v4  ;;  %v5446_v4 = vor.u32 %v7751_v59, %v5445_v58  ;;  %v7928_v58 = vld [vmem:[%s10322_s1 + $0x4a8] sm:$0xff] }
  0x3b   :  { %4573 = vmatpush.bf16.msrb.mxu1 %v7820_v5  ;;  %v5454_v5 = vor.u32 %v7752_v61, %v5453_v60  ;;  %v7936_v59 = vld [vmem:[%s10322_s1 + $0x4e8] sm:$0xff]  ;;  %v7911_v60 = vld [vmem:[%s10322_s1 + $0x420] sm:$0xff] }
  0x3c   :  { %4587 = vmatpush.bf16.msrb.mxu2 %v7828_v6  ;;  %v5450_v6 = vor.u32 %v7719_v62, %v5447_v63  ;;  %v7919_v61 = vld [vmem:[%s10322_s1 + $0x460] sm:$0xff] }
  0x3d   :  { %4601 = vmatpush.bf16.msrb.mxu3 %v7836_v7  ;;  %v5458_v7 = vor.u32 %v7720_v0, %v5455_v1  ;;  %v7927_v62 = vld [vmem:[%s10322_s1 + $0x4a0] sm:$0xff]  ;;  %v7910_v0 = vld [vmem:[%s10322_s1 + $0x418] sm:$0xff] }
  0x3e   :  { %4560 = vmatpush.bf16.msrb.mxu0 %v7811_v8  ;;  %v7881_v8 = vld [vmem:[%s10322_s1 + $0x330] sm:$0xff]  ;;  %v7935_v63 = vld [vmem:[%s10322_s1 + $0x4e0] sm:$0xff]  ;;  %v7918_v1 = vld [vmem:[%s10322_s1 + $0x458] sm:$0xff] }
  0x3f   :  { %4574 = vmatpush.bf16.msrb.mxu1 %v7819_v9  ;;  %v7889_v9 = vld [vmem:[%s10322_s1 + $0x370] sm:$0xff] }
  0x40   :  { %4588 = vmatpush.bf16.msrb.mxu2 %v7827_v10  ;;  %v7897_v10 = vld [vmem:[%s10322_s1 + $0x3b0] sm:$0xff] }
  0x41   :  { %4602 = vmatpush.bf16.msrb.mxu3 %v7835_v11  ;;  %4561 = vmatmul.bf16.vlgmr.msrb.gmra.mxu0 %v5430_v24  ;;  %v7905_v11 = vld [vmem:[%s10322_s1 + $0x3f0] sm:$0xff] }
  0x42   :  { %4609 = vmatpush.bf16.msra.mxu0 %v7850_v12  ;;  %4575 = vmatmul.bf16.vlgmr.msrb.gmra.mxu1 %v5434_v26  ;;  %v7880_v12 = vld [vmem:[%s10322_s1 + $0x328] sm:$0xff]  ;;  %v7877_v24 = vld [vmem:[%s10322_s1 + $0x310] sm:$0xff] }
  0x43   :  { %4623 = vmatpush.bf16.msra.mxu1 %v7858_v13  ;;  %4589 = vmatmul.bf16.vlgmr.msrb.gmra.mxu2 %v5438_v25  ;;  %v7888_v13 = vld [vmem:[%s10322_s1 + $0x368] sm:$0xff]  ;;  %v7885_v25 = vld [vmem:[%s10322_s1 + $0x350] sm:$0xff] }
  0x44   :  { %4637 = vmatpush.bf16.msra.mxu2 %v7866_v22  ;;  %4603 = vmatmul.bf16.vlgmr.msrb.gmra.mxu3 %v5442_v27  ;;  %v7894_v22 = vld [vmem:[%s10322_s1 + $0x398] sm:$0xff]  ;;  %v7893_v26 = vld [vmem:[%s10322_s1 + $0x390] sm:$0xff] }
  0x45   :  { %4651 = vmatpush.bf16.msra.mxu3 %v7874_v23  ;;  %v7902_v23 = vld [vmem:[%s10322_s1 + $0x3d8] sm:$0xff]  ;;  %v7901_v27 = vld [vmem:[%s10322_s1 + $0x3d0] sm:$0xff] }
  0x46   :  { %4610 = vmatpush.bf16.msra.mxu0 %v7849_v28  ;;  %v7876_v28 = vld [vmem:[%s10322_s1 + $0x308] sm:$0xff] }
  0x47   :  { %4624 = vmatpush.bf16.msra.mxu1 %v7857_v29  ;;  %v7884_v29 = vld [vmem:[%s10322_s1 + $0x348] sm:$0xff] }
  0x48   :  { %4638 = vmatpush.bf16.msra.mxu2 %v7865_v30  ;;  %v7892_v30 = vld [vmem:[%s10322_s1 + $0x388] sm:$0xff] }
  0x49   :  { %4652 = vmatpush.bf16.msra.mxu3 %v7873_v31  ;;  %v7900_v31 = vld [vmem:[%s10322_s1 + $0x3c8] sm:$0xff] }
  0x4a   :  { %4611 = vmatpush.bf16.msra.mxu0 %v7848_v32  ;;  %v7875_v32 = vld [vmem:[%s10322_s1 + $0x300] sm:$0xff] }
  0x4b   :  { %4625 = vmatpush.bf16.msra.mxu1 %v7856_v33  ;;  %v7883_v33 = vld [vmem:[%s10322_s1 + $0x340] sm:$0xff] }
  0x4c   :  { %4639 = vmatpush.bf16.msra.mxu2 %v7864_v34  ;;  %v7891_v34 = vld [vmem:[%s10322_s1 + $0x380] sm:$0xff] }
  0x4d   :  { %4653 = vmatpush.bf16.msra.mxu3 %v7872_v35  ;;  %v7899_v35 = vld [vmem:[%s10322_s1 + $0x3c0] sm:$0xff] }
  0x4e   :  { %4612 = vmatpush.bf16.msra.mxu0 %v7847_v36  ;;  %v7914_v36 = vld [vmem:[%s10322_s1 + $0x438] sm:$0xff] }
  0x4f   :  { %4626 = vmatpush.bf16.msra.mxu1 %v7855_v37  ;;  %v7922_v37 = vld [vmem:[%s10322_s1 + $0x478] sm:$0xff] }
  0x50   :  { %4640 = vmatpush.bf16.msra.mxu2 %v7863_v38  ;;  %v5461_v38 = vld [vmem:[%s10323_s0 + $0x30] sm:$0xf] }
  0x51   :  { %4654 = vmatpush.bf16.msra.mxu3 %v7871_v39  ;;  %v7753_v39 = vld [vmem:[%s10323_s0 + $0x12c] sm:$0xf0] }
  0x52   :  { %4613 = vmatpush.bf16.msra.mxu0 %v7846_v40  ;;  %v5469_v40 = vld [vmem:[%s10323_s0 + $0x38] sm:$0xf] }
  0x53   :  { %4627 = vmatpush.bf16.msra.mxu1 %v7854_v41  ;;  %v7754_v41 = vld [vmem:[%s10323_s0 + $0x134] sm:$0xf0] }
  0x54   :  { %4641 = vmatpush.bf16.msra.mxu2 %v7862_v42  ;;  %v7721_v42 = vld [vmem:[%s10323_s0 + $0x34] sm:$0xf] }
  0x55   :  { %4655 = vmatpush.bf16.msra.mxu3 %v7870_v43  ;;  %v5463_v43 = vld [vmem:[%s10323_s0 + $0x130] sm:$0xf0] }
  0x56   :  { %4614 = vmatpush.bf16.msra.mxu0 %v7845_v44  ;;  %v7722_v44 = vld [vmem:[%s10323_s0 + $0x3c] sm:$0xf] }
  0x57   :  { %4628 = vmatpush.bf16.msra.mxu1 %v7853_v45  ;;  %v5471_v45 = vld [vmem:[%s10323_s0 + $0x138] sm:$0xf0] }
  0x58   :  { %4642 = vmatpush.bf16.msra.mxu2 %v7861_v46  ;;  %v7930_v46 = vld [vmem:[%s10322_s1 + $0x4b8] sm:$0xff] }
  0x59   :  { %4656 = vmatpush.bf16.msra.mxu3 %v7869_v47  ;;  %v7938_v47 = vld [vmem:[%s10322_s1 + $0x4f8] sm:$0xff] }
  0x5a   :  { %4615 = vmatpush.bf16.msra.mxu0 %v7844_v48  ;;  %v5462_v48 = vor.u32 %v7753_v39, %v5461_v38  ;;  %v7960_v38 = vld [vmem:[%s10322_s1 + $0x5a8] sm:$0xff] }
  0x5b   :  { %4629 = vmatpush.bf16.msra.mxu1 %v7852_v49  ;;  %v5470_v49 = vor.u32 %v7754_v41, %v5469_v40  ;;  %v7968_v39 = vld [vmem:[%s10322_s1 + $0x5e8] sm:$0xff]  ;;  %v7943_v40 = vld [vmem:[%s10322_s1 + $0x520] sm:$0xff] }
  0x5c   :  { %4643 = vmatpush.bf16.msra.mxu2 %v7860_v50  ;;  %v5466_v50 = vor.u32 %v7721_v42, %v5463_v43  ;;  %v7951_v41 = vld [vmem:[%s10322_s1 + $0x560] sm:$0xff] }
  0x5d   :  { %4657 = vmatpush.bf16.msra.mxu3 %v7868_v51  ;;  %v5474_v51 = vor.u32 %v7722_v44, %v5471_v45  ;;  %v7959_v44 = vld [vmem:[%s10322_s1 + $0x5a0] sm:$0xff] }
  0x5e   :  { %4616 = vmatpush.bf16.msra.mxu0 %v7843_v52  ;;  %v7913_v52 = vld [vmem:[%s10322_s1 + $0x430] sm:$0xff]  ;;  %v7967_v45 = vld [vmem:[%s10322_s1 + $0x5e0] sm:$0xff] }
  0x5f   :  { %4630 = vmatpush.bf16.msra.mxu1 %v7851_v53  ;;  %v7921_v53 = vld [vmem:[%s10322_s1 + $0x470] sm:$0xff] }
  0x60   :  { %4644 = vmatpush.bf16.msra.mxu2 %v7859_v54  ;;  %v7929_v54 = vld [vmem:[%s10322_s1 + $0x4b0] sm:$0xff] }
  0x61   :  { %4658 = vmatpush.bf16.msra.mxu3 %v7867_v55  ;;  %4617 = vmatmul.bf16.vlgmr.msra.gmra.mxu0 %v5446_v4  ;;  %v7937_v55 = vld [vmem:[%s10322_s1 + $0x4f0] sm:$0xff] }
  0x62   :  { %4665 = vmatpush.bf16.msrb.mxu0 %v7882_v56  ;;  %4631 = vmatmul.bf16.vlgmr.msra.gmra.mxu1 %v5450_v6  ;;  %v7912_v56 = vld [vmem:[%s10322_s1 + $0x428] sm:$0xff]  ;;  %v7909_v4 = vld [vmem:[%s10322_s1 + $0x410] sm:$0xff] }
  0x63   :  { %4679 = vmatpush.bf16.msrb.mxu1 %v7890_v57  ;;  %4645 = vmatmul.bf16.vlgmr.msra.gmra.mxu2 %v5454_v5  ;;  %v7920_v57 = vld [vmem:[%s10322_s1 + $0x468] sm:$0xff]  ;;  %v7917_v5 = vld [vmem:[%s10322_s1 + $0x450] sm:$0xff] }
  0x64   :  { %4693 = vmatpush.bf16.msrb.mxu2 %v7898_v2  ;;  %4659 = vmatmul.bf16.vlgmr.msra.gmra.mxu3 %v5458_v7  ;;  %v7926_v2 = vld [vmem:[%s10322_s1 + $0x498] sm:$0xff]  ;;  %v7925_v6 = vld [vmem:[%s10322_s1 + $0x490] sm:$0xff] }
  0x65   :  { %4707 = vmatpush.bf16.msrb.mxu3 %v7906_v3  ;;  %v7934_v3 = vld [vmem:[%s10322_s1 + $0x4d8] sm:$0xff]  ;;  %v7933_v7 = vld [vmem:[%s10322_s1 + $0x4d0] sm:$0xff] }
  0x66   :  { %4666 = vmatpush.bf16.msrb.mxu0 %v7881_v8  ;;  %v7908_v8 = vld [vmem:[%s10322_s1 + $0x408] sm:$0xff] }
  0x67   :  { %4680 = vmatpush.bf16.msrb.mxu1 %v7889_v9  ;;  %v7916_v9 = vld [vmem:[%s10322_s1 + $0x448] sm:$0xff] }
  0x68   :  { %4694 = vmatpush.bf16.msrb.mxu2 %v7897_v10  ;;  %v7924_v10 = vld [vmem:[%s10322_s1 + $0x488] sm:$0xff] }
  0x69   :  { %4708 = vmatpush.bf16.msrb.mxu3 %v7905_v11  ;;  %v7932_v11 = vld [vmem:[%s10322_s1 + $0x4c8] sm:$0xff] }
  0x6a   :  { %4667 = vmatpush.bf16.msrb.mxu0 %v7880_v12  ;;  %v7907_v12 = vld [vmem:[%s10322_s1 + $0x400] sm:$0xff] }
  0x6b   :  { %4681 = vmatpush.bf16.msrb.mxu1 %v7888_v13  ;;  %v7915_v13 = vld [vmem:[%s10322_s1 + $0x440] sm:$0xff] }
  0x6c   :  { %4695 = vmatpush.bf16.msrb.mxu2 %v7896_v14  ;;  %v7923_v14 = vld [vmem:[%s10322_s1 + $0x480] sm:$0xff] }
  0x6d   :  { %4709 = vmatpush.bf16.msrb.mxu3 %v7904_v15  ;;  %v7931_v15 = vld [vmem:[%s10322_s1 + $0x4c0] sm:$0xff] }
  0x6e   :  { %4668 = vmatpush.bf16.msrb.mxu0 %v7879_v16  ;;  %v7946_v16 = vld [vmem:[%s10322_s1 + $0x538] sm:$0xff] }
  0x6f   :  { %4682 = vmatpush.bf16.msrb.mxu1 %v7887_v17  ;;  %v7954_v17 = vld [vmem:[%s10322_s1 + $0x578] sm:$0xff] }
  0x70   :  { %4696 = vmatpush.bf16.msrb.mxu2 %v7895_v18  ;;  %v5477_v18 = vld [vmem:[%s10323_s0 + $0x40] sm:$0xf] }
  0x71   :  { %4710 = vmatpush.bf16.msrb.mxu3 %v7903_v19  ;;  %v7755_v19 = vld [vmem:[%s10323_s0 + $0x13c] sm:$0xf0] }
  0x72   :  { %4669 = vmatpush.bf16.msrb.mxu0 %v7878_v20  ;;  %v5485_v20 = vld [vmem:[%s10323_s0 + $0x48] sm:$0xf] }
  0x73   :  { %4683 = vmatpush.bf16.msrb.mxu1 %v7886_v21  ;;  %v7756_v21 = vld [vmem:[%s10323_s0 + $0x144] sm:$0xf0] }
  0x74   :  { %4697 = vmatpush.bf16.msrb.mxu2 %v7894_v22  ;;  %v7723_v22 = vld [vmem:[%s10323_s0 + $0x44] sm:$0xf] }
  0x75   :  { %4711 = vmatpush.bf16.msrb.mxu3 %v7902_v23  ;;  %v5479_v23 = vld [vmem:[%s10323_s0 + $0x140] sm:$0xf0] }
  0x76   :  { %4670 = vmatpush.bf16.msrb.mxu0 %v7877_v24  ;;  %v7724_v24 = vld [vmem:[%s10323_s0 + $0x4c] sm:$0xf] }
  0x77   :  { %4684 = vmatpush.bf16.msrb.mxu1 %v7885_v25  ;;  %v5487_v25 = vld [vmem:[%s10323_s0 + $0x148] sm:$0xf0] }
  0x78   :  { %4698 = vmatpush.bf16.msrb.mxu2 %v7893_v26  ;;  %v7962_v26 = vld [vmem:[%s10322_s1 + $0x5b8] sm:$0xff] }
  0x79   :  { %4712 = vmatpush.bf16.msrb.mxu3 %v7901_v27  ;;  %v7970_v27 = vld [vmem:[%s10322_s1 + $0x5f8] sm:$0xff] }
  0x7a   :  { %4671 = vmatpush.bf16.msrb.mxu0 %v7876_v28  ;;  %v5478_v28 = vor.u32 %v7755_v19, %v5477_v18 }
  0x7b   :  { %4685 = vmatpush.bf16.msrb.mxu1 %v7884_v29  ;;  %v5486_v29 = vor.u32 %v7756_v21, %v5485_v20  ;;  %v7977_v21 = vld [vmem:[%s10322_s1 + $0x630] sm:$0xff] }
  0x7c   :  { %4699 = vmatpush.bf16.msrb.mxu2 %v7892_v30  ;;  %v5482_v30 = vor.u32 %v7723_v22, %v5479_v23  ;;  %v7985_v22 = vld [vmem:[%s10322_s1 + $0x670] sm:$0xff] }
  0x7d   :  { %4713 = vmatpush.bf16.msrb.mxu3 %v7900_v31  ;;  %v5490_v31 = vor.u32 %v7724_v24, %v5487_v25  ;;  %v7993_v23 = vld [vmem:[%s10322_s1 + $0x6b0] sm:$0xff] }
  0x7e   :  { %4672 = vmatpush.bf16.msrb.mxu0 %v7875_v32  ;;  %v7945_v32 = vld [vmem:[%s10322_s1 + $0x530] sm:$0xff] }
  0x7f   :  { %4686 = vmatpush.bf16.msrb.mxu1 %v7883_v33  ;;  %v7953_v33 = vld [vmem:[%s10322_s1 + $0x570] sm:$0xff] }
  0x80   :  { %4700 = vmatpush.bf16.msrb.mxu2 %v7891_v34  ;;  %v7961_v34 = vld [vmem:[%s10322_s1 + $0x5b0] sm:$0xff] }
  0x81   :  { %4714 = vmatpush.bf16.msrb.mxu3 %v7899_v35  ;;  %4673 = vmatmul.bf16.vlgmr.msrb.gmra.mxu0 %v5462_v48  ;;  %v7969_v35 = vld [vmem:[%s10322_s1 + $0x5f0] sm:$0xff]  ;;  %v7950_v48 = vld [vmem:[%s10322_s1 + $0x558] sm:$0xff] }
  0x82   :  { %4721 = vmatpush.bf16.msra.mxu0 %v7914_v36  ;;  %4687 = vmatmul.bf16.vlgmr.msrb.gmra.mxu1 %v5466_v50  ;;  %v7944_v36 = vld [vmem:[%s10322_s1 + $0x528] sm:$0xff]  ;;  %v7966_v50 = vld [vmem:[%s10322_s1 + $0x5d8] sm:$0xff]  ;;  %v8001_v24 = vld [vmem:[%s10322_s1 + $0x6f0] sm:$0xff] }
  0x83   :  { %4735 = vmatpush.bf16.msra.mxu1 %v7922_v37  ;;  %4701 = vmatmul.bf16.vlgmr.msrb.gmra.mxu2 %v5470_v49  ;;  %v7952_v37 = vld [vmem:[%s10322_s1 + $0x568] sm:$0xff]  ;;  %v7958_v49 = vld [vmem:[%s10322_s1 + $0x598] sm:$0xff] }
  0x84   :  { %4749 = vmatpush.bf16.msra.mxu2 %v7930_v46  ;;  %4715 = vmatmul.bf16.vlgmr.msrb.gmra.mxu3 %v5474_v51 }
  0x85   :  { %4763 = vmatpush.bf16.msra.mxu3 %v7938_v47  ;;  %v7942_v47 = vld [vmem:[%s10322_s1 + $0x518] sm:$0xff] }
  0x86   :  { %4722 = vmatpush.bf16.msra.mxu0 %v7913_v52 }
  0x87   :  { %4736 = vmatpush.bf16.msra.mxu1 %v7921_v53 }
  0x88   :  { %4750 = vmatpush.bf16.msra.mxu2 %v7929_v54  ;;  %v7941_v54 = vld [vmem:[%s10322_s1 + $0x510] sm:$0xff] }
  0x89   :  { %4764 = vmatpush.bf16.msra.mxu3 %v7937_v55  ;;  %v7949_v55 = vld [vmem:[%s10322_s1 + $0x550] sm:$0xff] }
  0x8a   :  { %4723 = vmatpush.bf16.msra.mxu0 %v7912_v56 }
  0x8b   :  { %4737 = vmatpush.bf16.msra.mxu1 %v7920_v57  ;;  %v7957_v57 = vld [vmem:[%s10322_s1 + $0x590] sm:$0xff] }
  0x8c   :  { %4751 = vmatpush.bf16.msra.mxu2 %v7928_v58  ;;  %v7965_v58 = vld [vmem:[%s10322_s1 + $0x5d0] sm:$0xff] }
  0x8d   :  { %4765 = vmatpush.bf16.msra.mxu3 %v7936_v59  ;;  %v7940_v59 = vld [vmem:[%s10322_s1 + $0x508] sm:$0xff] }
  0x8e   :  { %4724 = vmatpush.bf16.msra.mxu0 %v7911_v60  ;;  %v7948_v60 = vld [vmem:[%s10322_s1 + $0x548] sm:$0xff] }
  0x8f   :  { %4738 = vmatpush.bf16.msra.mxu1 %v7919_v61  ;;  %v7956_v61 = vld [vmem:[%s10322_s1 + $0x588] sm:$0xff] }
  0x90   :  { %4752 = vmatpush.bf16.msra.mxu2 %v7927_v62  ;;  %v7964_v62 = vld [vmem:[%s10322_s1 + $0x5c8] sm:$0xff] }
  0x91   :  { %4766 = vmatpush.bf16.msra.mxu3 %v7935_v63  ;;  %v7939_v63 = vld [vmem:[%s10322_s1 + $0x500] sm:$0xff] }
  0x92   :  { %4725 = vmatpush.bf16.msra.mxu0 %v7910_v0  ;;  %v7947_v0 = vld [vmem:[%s10322_s1 + $0x540] sm:$0xff] }
  0x93   :  { %4739 = vmatpush.bf16.msra.mxu1 %v7918_v1  ;;  %v7955_v1 = vld [vmem:[%s10322_s1 + $0x580] sm:$0xff] }
  0x94   :  { %4753 = vmatpush.bf16.msra.mxu2 %v7926_v2  ;;  %v7963_v2 = vld [vmem:[%s10322_s1 + $0x5c0] sm:$0xff] }
  0x95   :  { %4767 = vmatpush.bf16.msra.mxu3 %v7934_v3  ;;  %v7978_v3 = vld [vmem:[%s10322_s1 + $0x638] sm:$0xff] }
  0x96   :  { %4726 = vmatpush.bf16.msra.mxu0 %v7909_v4  ;;  %v7986_v4 = vld [vmem:[%s10322_s1 + $0x678] sm:$0xff] }
  0x97   :  { %4740 = vmatpush.bf16.msra.mxu1 %v7917_v5  ;;  %v5493_v5 = vld [vmem:[%s10323_s0 + $0x50] sm:$0xf] }
  0x98   :  { %4754 = vmatpush.bf16.msra.mxu2 %v7925_v6  ;;  %v7757_v6 = vld [vmem:[%s10323_s0 + $0x14c] sm:$0xf0] }
  0x99   :  { %4768 = vmatpush.bf16.msra.mxu3 %v7933_v7  ;;  %v5501_v7 = vld [vmem:[%s10323_s0 + $0x58] sm:$0xf] }
  0x9a   :  { %4727 = vmatpush.bf16.msra.mxu0 %v7908_v8  ;;  %v7758_v8 = vld [vmem:[%s10323_s0 + $0x154] sm:$0xf0] }
  0x9b   :  { %4741 = vmatpush.bf16.msra.mxu1 %v7916_v9  ;;  %v7725_v9 = vld [vmem:[%s10323_s0 + $0x54] sm:$0xf] }
  0x9c   :  { %4755 = vmatpush.bf16.msra.mxu2 %v7924_v10  ;;  %v5495_v10 = vld [vmem:[%s10323_s0 + $0x150] sm:$0xf0] }
  0x9d   :  { %4769 = vmatpush.bf16.msra.mxu3 %v7932_v11  ;;  %v7726_v11 = vld [vmem:[%s10323_s0 + $0x5c] sm:$0xf]  ;;  %v5498_v18 = vor.u32 %v7725_v9, %v5495_v10 }
  0x9e   :  { %4728 = vmatpush.bf16.msra.mxu0 %v7907_v12  ;;  %v4506_v42 = vpop.f32.mrf.mxu0  ;;  %v5503_v12 = vld [vmem:[%s10323_s0 + $0x158] sm:$0xf0] }
  0x9f   :  { %4742 = vmatpush.bf16.msra.mxu1 %v7915_v13  ;;  %v4520_v43 = vpop.f32.mrf.mxu1  ;;  %v7994_v13 = vld [vmem:[%s10322_s1 + $0x6b8] sm:$0xff]  ;;  %v5506_v19 = vor.u32 %v7726_v11, %v5503_v12 }
  0xa0   :  { %4756 = vmatpush.bf16.msra.mxu2 %v7923_v14  ;;  %v4521_v46 = vadd.f32 %v4520_v43, %v4506_v42  ;;  %v8002_v14 = vld [vmem:[%s10322_s1 + $0x6f8] sm:$0xff] }
  0xa1   :  { %4770 = vmatpush.bf16.msra.mxu3 %v7931_v15  ;;  %4729 = vmatmul.bf16.vlgmr.msra.gmra.mxu0 %v5478_v28  ;;  %v7992_v28 = vld [vmem:[%s10322_s1 + $0x6a8] sm:$0xff]  ;;  %v7998_v42 = vld [vmem:[%s10322_s1 + $0x6d8] sm:$0xff] }
  0xa2   :  { %4777 = vmatpush.bf16.msrb.mxu0 %v7946_v16  ;;  %4743 = vmatmul.bf16.vlgmr.msra.gmra.mxu1 %v5482_v30  ;;  %v5494_v16 = vor.u32 %v7757_v6, %v5493_v5  ;;  %v8026_v5 = vld [vmem:[%s10322_s1 + $0x7b8] sm:$0xff] }
  0xa3   :  { %4791 = vmatpush.bf16.msrb.mxu1 %v7954_v17  ;;  %4757 = vmatmul.bf16.vlgmr.msra.gmra.mxu2 %v5486_v29  ;;  %v5502_v17 = vor.u32 %v7758_v8, %v5501_v7  ;;  %v8000_v29 = vld [vmem:[%s10322_s1 + $0x6e8] sm:$0xff]  ;;  %v8034_v6 = vld [vmem:[%s10322_s1 + $0x7f8] sm:$0xff] }
  0xa4   :  { %4805 = vmatpush.bf16.msrb.mxu2 %v7962_v26  ;;  %4771 = vmatmul.bf16.vlgmr.msra.gmra.mxu3 %v5490_v31  ;;  %v7976_v26 = vld [vmem:[%s10322_s1 + $0x628] sm:$0xff] }
  0xa5   :  { %4819 = vmatpush.bf16.msrb.mxu3 %v7970_v27  ;;  %v7984_v27 = vld [vmem:[%s10322_s1 + $0x668] sm:$0xff] }
  0xa6   :  { %4778 = vmatpush.bf16.msrb.mxu0 %v7945_v32  ;;  %v4534_v51 = vpop.f32.mrf.mxu2  ;;  %v9052_v15 = vpop.f32.mrf.mxu0 }
  0xa7   :  { %4792 = vmatpush.bf16.msrb.mxu1 %v7953_v33  ;;  %v4535_v52 = vadd.f32 %v4534_v51, %v4521_v46  ;;  %v4548_v53 = vpop.f32.mrf.mxu3  ;;  %v9054_v20 = vpop.f32.mrf.mxu1  ;;  %v7975_v33 = vld [vmem:[%s10322_s1 + $0x620] sm:$0xff]  ;;  %v7972_v51 = vld [vmem:[%s10322_s1 + $0x608] sm:$0xff] }
  0xa8   :  { %4806 = vmatpush.bf16.msrb.mxu2 %v7961_v34  ;;  %v7983_v34 = vld [vmem:[%s10322_s1 + $0x660] sm:$0xff] }
  0xa9   :  { %4820 = vmatpush.bf16.msrb.mxu3 %v7969_v35  ;;  %v8984_v56 = vadd.f32 %v4548_v53, %v4535_v52  ;;  %v7991_v35 = vld [vmem:[%s10322_s1 + $0x6a0] sm:$0xff]  ;;  %v7980_v52 = vld [vmem:[%s10322_s1 + $0x648] sm:$0xff] }
  0xaa   :  { %4779 = vmatpush.bf16.msrb.mxu0 %v7944_v36  ;;  %v7999_v36 = vld [vmem:[%s10322_s1 + $0x6e0] sm:$0xff]  ;;  %v7988_v53 = vld [vmem:[%s10322_s1 + $0x688] sm:$0xff] }
  0xab   :  { %4793 = vmatpush.bf16.msrb.mxu1 %v7952_v37 }
  0xac   :  { %4807 = vmatpush.bf16.msrb.mxu2 %v7960_v38 }
  0xad   :  { %4821 = vmatpush.bf16.msrb.mxu3 %v7968_v39  ;;  %v7974_v39 = vld [vmem:[%s10322_s1 + $0x618] sm:$0xff] }
  0xae   :  { %4780 = vmatpush.bf16.msrb.mxu0 %v7943_v40  ;;  %v9068_v25 = vpop.f32.mrf.mxu2  ;;  %v7982_v40 = vld [vmem:[%s10322_s1 + $0x658] sm:$0xff] }
  0xaf   :  { %4794 = vmatpush.bf16.msrb.mxu1 %v7951_v41  ;;  %v9082_v30 = vpop.f32.mrf.mxu3  ;;  %v7990_v41 = vld [vmem:[%s10322_s1 + $0x698] sm:$0xff] }
  0xb0   :  { %4808 = vmatpush.bf16.msrb.mxu2 %v7959_v44 }
  0xb1   :  { %4822 = vmatpush.bf16.msrb.mxu3 %v7967_v45 }
  0xb2   :  { %4781 = vmatpush.bf16.msrb.mxu0 %v7942_v47  ;;  %v7973_v47 = vld [vmem:[%s10322_s1 + $0x610] sm:$0xff] }
  0xb3   :  { %4795 = vmatpush.bf16.msrb.mxu1 %v7950_v48  ;;  %v7981_v48 = vld [vmem:[%s10322_s1 + $0x650] sm:$0xff] }
  0xb4   :  { %4809 = vmatpush.bf16.msrb.mxu2 %v7958_v49  ;;  %v7989_v49 = vld [vmem:[%s10322_s1 + $0x690] sm:$0xff] }
  0xb5   :  { %4823 = vmatpush.bf16.msrb.mxu3 %v7966_v50  ;;  %v7997_v50 = vld [vmem:[%s10322_s1 + $0x6d0] sm:$0xff] }
  0xb6   :  { %4782 = vmatpush.bf16.msrb.mxu0 %v7941_v54  ;;  %v7996_v54 = vld [vmem:[%s10322_s1 + $0x6c8] sm:$0xff] }
  0xb7   :  { %4796 = vmatpush.bf16.msrb.mxu1 %v7949_v55  ;;  %v7971_v55 = vld [vmem:[%s10322_s1 + $0x600] sm:$0xff] }
  0xb8   :  { %4810 = vmatpush.bf16.msrb.mxu2 %v7957_v57  ;;  %v7987_v57 = vld [vmem:[%s10322_s1 + $0x680] sm:$0xff] }
  0xb9   :  { %4824 = vmatpush.bf16.msrb.mxu3 %v7965_v58  ;;  %v7995_v58 = vld [vmem:[%s10322_s1 + $0x6c0] sm:$0xff] }
  0xba   :  { %4783 = vmatpush.bf16.msrb.mxu0 %v7940_v59  ;;  %v8010_v59 = vld [vmem:[%s10322_s1 + $0x738] sm:$0xff] }
  0xbb   :  { %4797 = vmatpush.bf16.msrb.mxu1 %v7948_v60  ;;  %v8018_v60 = vld [vmem:[%s10322_s1 + $0x778] sm:$0xff] }
  0xbc   :  { %4811 = vmatpush.bf16.msrb.mxu2 %v7956_v61  ;;  %v5509_v61 = vld [vmem:[%s10323_s0 + $0x60] sm:$0xf] }
  0xbd   :  { %4825 = vmatpush.bf16.msrb.mxu3 %v7964_v62  ;;  %v7759_v62 = vld [vmem:[%s10323_s0 + $0x15c] sm:$0xf0] }
  0xbe   :  { %4784 = vmatpush.bf16.msrb.mxu0 %v7939_v63  ;;  %v4562_v31 = vpop.f32.mrf.mxu0  ;;  %v5517_v63 = vld [vmem:[%s10323_s0 + $0x68] sm:$0xf]  ;;  %v5510_v7 = vor.u32 %v7759_v62, %v5509_v61  ;;  %v7729_v61 = vld [vmem:[%s10323_s0 + $0x74] sm:$0xf] }
  0xbf   :  { %4798 = vmatpush.bf16.msrb.mxu1 %v7947_v0  ;;  %v4563_v32 = vadd.f32 %v4562_v31, %v8984_v56  ;;  %v4576_v37 = vpop.f32.mrf.mxu1  ;;  %v7979_v56 = vld [vmem:[%s10322_s1 + $0x640] sm:$0xff]  ;;  %v7760_v0 = vld [vmem:[%s10323_s0 + $0x164] sm:$0xf0]  ;;  %v5527_v62 = vld [vmem:[%s10323_s0 + $0x170] sm:$0xf0] }
  0xc0   :  { %4812 = vmatpush.bf16.msrb.mxu2 %v7955_v1  ;;  %v7727_v1 = vld [vmem:[%s10323_s0 + $0x64] sm:$0xf]  ;;  %v5518_v8 = vor.u32 %v7760_v0, %v5517_v63  ;;  %v7730_v63 = vld [vmem:[%s10323_s0 + $0x7c] sm:$0xf] }
  0xc1   :  { %4826 = vmatpush.bf16.msrb.mxu3 %v7963_v2  ;;  %4785 = vmatmul.bf16.vlgmr.msrb.gmra.mxu0 %v5494_v16  ;;  %v4577_v38 = vadd.f32 %v4576_v37, %v4563_v32  ;;  %v5511_v2 = vld [vmem:[%s10323_s0 + $0x160] sm:$0xf0]  ;;  %v8025_v16 = vld [vmem:[%s10322_s1 + $0x7b0] sm:$0xff]  ;;  %v8022_v37 = vld [vmem:[%s10322_s1 + $0x798] sm:$0xff] }
  0xc2   :  { %4833 = vmatpush.bf16.msra.mxu0 %v7978_v3  ;;  %4799 = vmatmul.bf16.vlgmr.msrb.gmra.mxu1 %v5498_v18  ;;  %v7728_v3 = vld [vmem:[%s10323_s0 + $0x6c] sm:$0xf]  ;;  %v5514_v10 = vor.u32 %v7727_v1, %v5511_v2  ;;  %v8023_v32 = vld [vmem:[%s10322_s1 + $0x7a0] sm:$0xff]  ;;  %v5535_v0 = vld [vmem:[%s10323_s0 + $0x178] sm:$0xf0] }
  0xc3   :  { %4847 = vmatpush.bf16.msra.mxu1 %v7986_v4  ;;  %4813 = vmatmul.bf16.vlgmr.msrb.gmra.mxu2 %v5502_v17  ;;  %v5519_v4 = vld [vmem:[%s10323_s0 + $0x168] sm:$0xf0]  ;;  %v8033_v17 = vld [vmem:[%s10322_s1 + $0x7f0] sm:$0xff]  ;;  %v8058_v1 = vld [vmem:[%s10322_s1 + $0x8b8] sm:$0xff] }
  0xc4   :  { %4861 = vmatpush.bf16.msra.mxu2 %v7994_v13  ;;  %4827 = vmatmul.bf16.vlgmr.msrb.gmra.mxu3 %v5506_v19  ;;  %v5522_v11 = vor.u32 %v7728_v3, %v5519_v4  ;;  %v8009_v13 = vld [vmem:[%s10322_s1 + $0x730] sm:$0xff]  ;;  %v8008_v18 = vld [vmem:[%s10322_s1 + $0x728] sm:$0xff]  ;;  %v8066_v2 = vld [vmem:[%s10322_s1 + $0x8f8] sm:$0xff] }
  0xc5   :  { %4875 = vmatpush.bf16.msra.mxu3 %v8002_v14  ;;  %v8017_v14 = vld [vmem:[%s10322_s1 + $0x770] sm:$0xff]  ;;  %v8016_v19 = vld [vmem:[%s10322_s1 + $0x768] sm:$0xff] }
  0xc6   :  { %4834 = vmatpush.bf16.msra.mxu0 %v7977_v21  ;;  %v4590_v43 = vpop.f32.mrf.mxu2  ;;  %v9183_v9 = vpop.f32.mrf.mxu0 }
  0xc7   :  { %4848 = vmatpush.bf16.msra.mxu1 %v7985_v22  ;;  %v4591_v44 = vadd.f32 %v4590_v43, %v4577_v38  ;;  %v4604_v45 = vpop.f32.mrf.mxu3  ;;  %v9185_v12 = vpop.f32.mrf.mxu1  ;;  %v8024_v22 = vld [vmem:[%s10322_s1 + $0x7a8] sm:$0xff]  ;;  %v8030_v38 = vld [vmem:[%s10322_s1 + $0x7d8] sm:$0xff]  ;;  %v8005_v43 = vld [vmem:[%s10322_s1 + $0x710] sm:$0xff] }
  0xc8   :  { %4862 = vmatpush.bf16.msra.mxu2 %v7993_v23  ;;  %v8032_v23 = vld [vmem:[%s10322_s1 + $0x7e8] sm:$0xff] }
  0xc9   :  { %4876 = vmatpush.bf16.msra.mxu3 %v8001_v24  ;;  %v9109_v46 = vadd.f32 %v4604_v45, %v4591_v44  ;;  %v8013_v44 = vld [vmem:[%s10322_s1 + $0x750] sm:$0xff] }
  0xca   :  { %4835 = vmatpush.bf16.msra.mxu0 %v7976_v26  ;;  %v8021_v45 = vld [vmem:[%s10322_s1 + $0x790] sm:$0xff] }
  0xcb   :  { %4849 = vmatpush.bf16.msra.mxu1 %v7984_v27 }
  0xcc   :  { %4863 = vmatpush.bf16.msra.mxu2 %v7992_v28  ;;  %v8007_v28 = vld [vmem:[%s10322_s1 + $0x720] sm:$0xff] }
  0xcd   :  { %4877 = vmatpush.bf16.msra.mxu3 %v8000_v29  ;;  %v8015_v29 = vld [vmem:[%s10322_s1 + $0x760] sm:$0xff] }
  0xce   :  { %4836 = vmatpush.bf16.msra.mxu0 %v7975_v33  ;;  %v9205_v21 = vpop.f32.mrf.mxu2  ;;  %v8031_v33 = vld [vmem:[%s10322_s1 + $0x7e0] sm:$0xff] }
  0xcf   :  { %4850 = vmatpush.bf16.msra.mxu1 %v7983_v34  ;;  %v9213_v24 = vpop.f32.mrf.mxu3 }
  0xd0   :  { %4864 = vmatpush.bf16.msra.mxu2 %v7991_v35  ;;  %v8006_v35 = vld [vmem:[%s10322_s1 + $0x718] sm:$0xff] }
  0xd1   :  { %4878 = vmatpush.bf16.msra.mxu3 %v7999_v36  ;;  %v8014_v36 = vld [vmem:[%s10322_s1 + $0x758] sm:$0xff] }
  0xd2   :  { %4837 = vmatpush.bf16.msra.mxu0 %v7974_v39 }
  0xd3   :  { %4851 = vmatpush.bf16.msra.mxu1 %v7982_v40 }
  0xd4   :  { %4865 = vmatpush.bf16.msra.mxu2 %v7990_v41 }
  0xd5   :  { %4879 = vmatpush.bf16.msra.mxu3 %v7998_v42 }
  0xd6   :  { %4838 = vmatpush.bf16.msra.mxu0 %v7973_v47  ;;  %v8004_v47 = vld [vmem:[%s10322_s1 + $0x708] sm:$0xff] }
  0xd7   :  { %4852 = vmatpush.bf16.msra.mxu1 %v7981_v48  ;;  %v8012_v48 = vld [vmem:[%s10322_s1 + $0x748] sm:$0xff] }
  0xd8   :  { %4866 = vmatpush.bf16.msra.mxu2 %v7989_v49  ;;  %v8020_v49 = vld [vmem:[%s10322_s1 + $0x788] sm:$0xff] }
  0xd9   :  { %4880 = vmatpush.bf16.msra.mxu3 %v7997_v50  ;;  %v8028_v50 = vld [vmem:[%s10322_s1 + $0x7c8] sm:$0xff] }
  0xda   :  { %4839 = vmatpush.bf16.msra.mxu0 %v7972_v51  ;;  %v8003_v51 = vld [vmem:[%s10322_s1 + $0x700] sm:$0xff] }
  0xdb   :  { %4853 = vmatpush.bf16.msra.mxu1 %v7980_v52  ;;  %v8011_v52 = vld [vmem:[%s10322_s1 + $0x740] sm:$0xff] }
  0xdc   :  { %4867 = vmatpush.bf16.msra.mxu2 %v7988_v53  ;;  %v8019_v53 = vld [vmem:[%s10322_s1 + $0x780] sm:$0xff] }
  0xdd   :  { %4881 = vmatpush.bf16.msra.mxu3 %v7996_v54  ;;  %v8027_v54 = vld [vmem:[%s10322_s1 + $0x7c0] sm:$0xff] }
  0xde   :  { %4840 = vmatpush.bf16.msra.mxu0 %v7971_v55  ;;  %v4618_v26 = vpop.f32.mrf.mxu0  ;;  %v8042_v55 = vld [vmem:[%s10322_s1 + $0x838] sm:$0xff] }
  0xdf   :  { %4854 = vmatpush.bf16.msra.mxu1 %v7979_v56  ;;  %v4619_v27 = vadd.f32 %v4618_v26, %v9109_v46  ;;  %v4632_v31 = vpop.f32.mrf.mxu1  ;;  %v8029_v46 = vld [vmem:[%s10322_s1 + $0x7d0] sm:$0xff]  ;;  %v8050_v56 = vld [vmem:[%s10322_s1 + $0x878] sm:$0xff] }
  0xe0   :  { %4868 = vmatpush.bf16.msra.mxu2 %v7987_v57  ;;  %v5525_v57 = vld [vmem:[%s10323_s0 + $0x70] sm:$0xf] }
  0xe1   :  { %4882 = vmatpush.bf16.msra.mxu3 %v7995_v58  ;;  %4841 = vmatmul.bf16.vlgmr.msra.gmra.mxu0 %v5510_v7  ;;  %v4633_v34 = vadd.f32 %v4632_v31, %v4619_v27  ;;  %v7761_v58 = vld [vmem:[%s10323_s0 + $0x16c] sm:$0xf0]  ;;  %v5538_v7 = vor.u32 %v7730_v63, %v5535_v0  ;;  %v5543_v63 = vld [vmem:[%s10323_s0 + $0x180] sm:$0xf0]  ;;  %v7732_v0 = vld [vmem:[%s10323_s0 + $0x8c] sm:$0xf] }
  0xe2   :  { %4889 = vmatpush.bf16.msrb.mxu0 %v8010_v59  ;;  %4855 = vmatmul.bf16.vlgmr.msra.gmra.mxu1 %v5514_v10  ;;  %v5533_v59 = vld [vmem:[%s10323_s0 + $0x78] sm:$0xf]  ;;  %v5526_v3 = vor.u32 %v7761_v58, %v5525_v57  ;;  %v5541_v57 = vld [vmem:[%s10323_s0 + $0x80] sm:$0xf] }
  0xe3   :  { %4903 = vmatpush.bf16.msrb.mxu1 %v8018_v60  ;;  %4869 = vmatmul.bf16.vlgmr.msra.gmra.mxu2 %v5518_v8  ;;  %v7762_v60 = vld [vmem:[%s10323_s0 + $0x174] sm:$0xf0]  ;;  %v4523_v8 = vadd.f32 %v9054_v20, %v9052_v15  ;;  %v8065_v15 = vld [vmem:[%s10322_s1 + $0x8f0] sm:$0xff]  ;;  %v7763_v58 = vld [vmem:[%s10323_s0 + $0x17c] sm:$0xf0] }
  0xe4   :  { %4917 = vmatpush.bf16.msrb.mxu2 %v8026_v5  ;;  %4883 = vmatmul.bf16.vlgmr.msra.gmra.mxu3 %v5522_v11  ;;  %v5534_v4 = vor.u32 %v7762_v60, %v5533_v59  ;;  %v8041_v11 = vld [vmem:[%s10322_s1 + $0x830] sm:$0xff]  ;;  %v5549_v59 = vld [vmem:[%s10323_s0 + $0x88] sm:$0xf] }
  0xe5   :  { %4931 = vmatpush.bf16.msrb.mxu3 %v8034_v6  ;;  %v5530_v6 = vor.u32 %v7729_v61, %v5527_v62  ;;  %v4537_v20 = vadd.f32 %v9068_v25, %v4523_v8  ;;  %v8064_v25 = vld [vmem:[%s10322_s1 + $0x8e8] sm:$0xff]  ;;  %v7731_v61 = vld [vmem:[%s10323_s0 + $0x84] sm:$0xf] }
  0xe6   :  { %4890 = vmatpush.bf16.msrb.mxu0 %v8009_v13  ;;  %v4646_v39 = vpop.f32.mrf.mxu2  ;;  %v9314_v5 = vpop.f32.mrf.mxu0  ;;  %v8049_v13 = vld [vmem:[%s10322_s1 + $0x870] sm:$0xff]  ;;  %v7764_v60 = vld [vmem:[%s10323_s0 + $0x184] sm:$0xf0]  ;;  %v5546_v8 = vor.u32 %v7731_v61, %v5543_v63  ;;  %v8114_v63 = vld [vmem:[%s10322_s1 + $0xa78] sm:$0xff] }
  0xe7   :  { %4904 = vmatpush.bf16.msrb.mxu1 %v8017_v14  ;;  %v4647_v40 = vadd.f32 %v4646_v39, %v4633_v34  ;;  %v4660_v41 = vpop.f32.mrf.mxu3  ;;  %v9318_v10 = vpop.f32.mrf.mxu1  ;;  %v8057_v14 = vld [vmem:[%s10322_s1 + $0x8b0] sm:$0xff]  ;;  %v4551_v26 = vadd.f32 %v9082_v30, %v4537_v20  ;;  %v8063_v30 = vld [vmem:[%s10322_s1 + $0x8e0] sm:$0xff] }
  0xe8   :  { %4918 = vmatpush.bf16.msrb.mxu2 %v8025_v16  ;;  %v8040_v16 = vld [vmem:[%s10322_s1 + $0x828] sm:$0xff]  ;;  %v8097_v20 = vld [vmem:[%s10322_s1 + $0x9f0] sm:$0xff] }
  0xe9   :  { %4932 = vmatpush.bf16.msrb.mxu3 %v8033_v17  ;;  %v9240_v42 = vadd.f32 %v4660_v41, %v4647_v40  ;;  %v8048_v17 = vld [vmem:[%s10322_s1 + $0x868] sm:$0xff] }
  0xea   :  { %4891 = vmatpush.bf16.msrb.mxu0 %v8008_v18 }
  0xeb   :  { %4905 = vmatpush.bf16.msrb.mxu1 %v8016_v19  ;;  %v8056_v19 = vld [vmem:[%s10322_s1 + $0x8a8] sm:$0xff] }
  0xec   :  { %4919 = vmatpush.bf16.msrb.mxu2 %v8024_v22 }
  0xed   :  { %4933 = vmatpush.bf16.msrb.mxu3 %v8032_v23 }
  0xee   :  { %4892 = vmatpush.bf16.msrb.mxu0 %v8007_v28  ;;  %v9339_v18 = vpop.f32.mrf.mxu2  ;;  %v8039_v28 = vld [vmem:[%s10322_s1 + $0x820] sm:$0xff] }
  0xef   :  { %4906 = vmatpush.bf16.msrb.mxu1 %v8015_v29  ;;  %v9347_v22 = vpop.f32.mrf.mxu3  ;;  %v8047_v29 = vld [vmem:[%s10322_s1 + $0x860] sm:$0xff] }
  0xf0   :  { %4920 = vmatpush.bf16.msrb.mxu2 %v8023_v32  ;;  %v8055_v32 = vld [vmem:[%s10322_s1 + $0x8a0] sm:$0xff] }
  0xf1   :  { %4934 = vmatpush.bf16.msrb.mxu3 %v8031_v33  ;;  %v4565_v33 = vadd.f32 %v9183_v9, %v4551_v26  ;;  %v8062_v9 = vld [vmem:[%s10322_s1 + $0x8d8] sm:$0xff] }
  0xf2   :  { %4893 = vmatpush.bf16.msrb.mxu0 %v8006_v35  ;;  %v8038_v35 = vld [vmem:[%s10322_s1 + $0x818] sm:$0xff] }
  0xf3   :  { %4907 = vmatpush.bf16.msrb.mxu1 %v8014_v36  ;;  %v8046_v36 = vld [vmem:[%s10322_s1 + $0x858] sm:$0xff]  ;;  %v4579_v39 = vadd.f32 %v9185_v12, %v4565_v33  ;;  %v8053_v12 = vld [vmem:[%s10322_s1 + $0x890] sm:$0xff]  ;;  %v8087_v33 = vld [vmem:[%s10322_s1 + $0x9a0] sm:$0xff] }
  0xf4   :  { %4921 = vmatpush.bf16.msrb.mxu2 %v8022_v37  ;;  %v8054_v37 = vld [vmem:[%s10322_s1 + $0x898] sm:$0xff] }
  0xf5   :  { %4935 = vmatpush.bf16.msrb.mxu3 %v8030_v38 }
  0xf6   :  { %4894 = vmatpush.bf16.msrb.mxu0 %v8005_v43 }
  0xf7   :  { %4908 = vmatpush.bf16.msrb.mxu1 %v8013_v44  ;;  %v8037_v44 = vld [vmem:[%s10322_s1 + $0x810] sm:$0xff] }
  0xf8   :  { %4922 = vmatpush.bf16.msrb.mxu2 %v8021_v45  ;;  %v8045_v45 = vld [vmem:[%s10322_s1 + $0x850] sm:$0xff] }
  0xf9   :  { %4936 = vmatpush.bf16.msrb.mxu3 %v8029_v46 }
  0xfa   :  { %4895 = vmatpush.bf16.msrb.mxu0 %v8004_v47  ;;  %v8036_v47 = vld [vmem:[%s10322_s1 + $0x808] sm:$0xff] }
  0xfb   :  { %4909 = vmatpush.bf16.msrb.mxu1 %v8012_v48  ;;  %v8044_v48 = vld [vmem:[%s10322_s1 + $0x848] sm:$0xff] }
  0xfc   :  { %4923 = vmatpush.bf16.msrb.mxu2 %v8020_v49  ;;  %v8052_v49 = vld [vmem:[%s10322_s1 + $0x888] sm:$0xff] }
  0xfd   :  { %4937 = vmatpush.bf16.msrb.mxu3 %v8028_v50 }
  0xfe   :  { %4896 = vmatpush.bf16.msrb.mxu0 %v8003_v51  ;;  %v4674_v23 = vpop.f32.mrf.mxu0  ;;  %v8035_v51 = vld [vmem:[%s10322_s1 + $0x800] sm:$0xff] }
  0xff   :  { %4910 = vmatpush.bf16.msrb.mxu1 %v8011_v52  ;;  %v4675_v27 = vadd.f32 %v4674_v23, %v9240_v42  ;;  %v4688_v31 = vpop.f32.mrf.mxu1  ;;  %v4593_v42 = vadd.f32 %v9205_v21, %v4579_v39  ;;  %v8061_v21 = vld [vmem:[%s10322_s1 + $0x8d0] sm:$0xff]  ;;  %v8043_v52 = vld [vmem:[%s10322_s1 + $0x840] sm:$0xff]  ;;  %v8096_v23 = vld [vmem:[%s10322_s1 + $0x9e8] sm:$0xff] }
 0x100   :  { %4924 = vmatpush.bf16.msrb.mxu2 %v8019_v53  ;;  %v8051_v53 = vld [vmem:[%s10322_s1 + $0x880] sm:$0xff]  ;;  %v8094_v39 = vld [vmem:[%s10322_s1 + $0x9d8] sm:$0xff] }
 0x101   :  { %4938 = vmatpush.bf16.msrb.mxu3 %v8027_v54  ;;  %4897 = vmatmul.bf16.vlgmr.msrb.gmra.mxu0 %v5526_v3  ;;  %v4689_v34 = vadd.f32 %v4688_v31, %v4675_v27  ;;  %v4607_v46 = vadd.f32 %v9213_v24, %v4593_v42  ;;  %v8060_v24 = vld [vmem:[%s10322_s1 + $0x8c8] sm:$0xff]  ;;  %v8059_v54 = vld [vmem:[%s10322_s1 + $0x8c0] sm:$0xff]  ;;  %v8098_v3 = vld [vmem:[%s10322_s1 + $0x9f8] sm:$0xff] }
 0x102   :  { %4945 = vmatpush.bf16.msra.mxu0 %v8042_v55  ;;  %4911 = vmatmul.bf16.vlgmr.msrb.gmra.mxu1 %v5530_v6  ;;  %v8074_v55 = vld [vmem:[%s10322_s1 + $0x938] sm:$0xff]  ;;  %v5550_v6 = vor.u32 %v7764_v60, %v5549_v59  ;;  %v8071_v31 = vld [vmem:[%s10322_s1 + $0x920] sm:$0xff] }
 0x103   :  { %4959 = vmatpush.bf16.msra.mxu1 %v8050_v56  ;;  %4925 = vmatmul.bf16.vlgmr.msrb.gmra.mxu2 %v5534_v4  ;;  %v4621_v50 = vadd.f32 %v9314_v5, %v4607_v46  ;;  %v8082_v56 = vld [vmem:[%s10322_s1 + $0x978] sm:$0xff]  ;;  %v5542_v5 = vor.u32 %v7763_v58, %v5541_v57  ;;  %v8077_v46 = vld [vmem:[%s10322_s1 + $0x950] sm:$0xff]  ;;  %v8067_v57 = vld [vmem:[%s10322_s1 + $0x900] sm:$0xff] }
 0x104   :  { %4973 = vmatpush.bf16.msra.mxu2 %v8058_v1  ;;  %4939 = vmatmul.bf16.vlgmr.msrb.gmra.mxu3 %v5538_v7  ;;  %v5551_v1 = vld [vmem:[%s10323_s0 + $0x188] sm:$0xf0]  ;;  %v8075_v58 = vld [vmem:[%s10322_s1 + $0x940] sm:$0xff] }
 0x105   :  { %4987 = vmatpush.bf16.msra.mxu3 %v8066_v2  ;;  %v4635_v62 = vadd.f32 %v9318_v10, %v4621_v50  ;;  %v8090_v2 = vld [vmem:[%s10322_s1 + $0x9b8] sm:$0xff]  ;;  %v5554_v10 = vor.u32 %v7732_v0, %v5551_v1  ;;  %v8068_v50 = vld [vmem:[%s10322_s1 + $0x908] sm:$0xff]  ;;  %v8083_v59 = vld [vmem:[%s10322_s1 + $0x980] sm:$0xff] }
 0x106   :  { %4946 = vmatpush.bf16.msra.mxu0 %v8041_v11  ;;  %v4702_v38 = vpop.f32.mrf.mxu2  ;;  %v4676_v7 = vpop.f32.mrf.mxu0  ;;  %v8091_v60 = vld [vmem:[%s10322_s1 + $0x9c0] sm:$0xff]  ;;  %v5557_v0 = vld [vmem:[%s10323_s0 + $0x90] sm:$0xf] }
 0x107   :  { %4960 = vmatpush.bf16.msra.mxu1 %v8049_v13  ;;  %v4703_v40 = vadd.f32 %v4702_v38, %v4689_v34  ;;  %v4716_v41 = vpop.f32.mrf.mxu3  ;;  %v4649_v4 = vadd.f32 %v9339_v18, %v4635_v62  ;;  %v4690_v11 = vpop.f32.mrf.mxu1  ;;  %v8073_v13 = vld [vmem:[%s10322_s1 + $0x930] sm:$0xff]  ;;  %v8072_v18 = vld [vmem:[%s10322_s1 + $0x928] sm:$0xff]  ;;  %v8095_v34 = vld [vmem:[%s10322_s1 + $0x9e0] sm:$0xff] }
 0x108   :  { %4974 = vmatpush.bf16.msra.mxu2 %v8057_v14  ;;  %v8081_v14 = vld [vmem:[%s10322_s1 + $0x970] sm:$0xff]  ;;  %v8086_v38 = vld [vmem:[%s10322_s1 + $0x998] sm:$0xff] }
 0x109   :  { %4988 = vmatpush.bf16.msra.mxu3 %v8065_v15  ;;  %v9378_v43 = vadd.f32 %v4716_v41, %v4703_v40  ;;  %v8089_v15 = vld [vmem:[%s10322_s1 + $0x9b0] sm:$0xff]  ;;  %v8106_v62 = vld [vmem:[%s10322_s1 + $0xa38] sm:$0xff] }
 0x10a   :  { %4947 = vmatpush.bf16.msra.mxu0 %v8040_v16  ;;  %v4663_v16 = vadd.f32 %v9347_v22, %v4649_v4  ;;  %v8088_v22 = vld [vmem:[%s10322_s1 + $0x9a8] sm:$0xff]  ;;  %v7765_v1 = vld [vmem:[%s10323_s0 + $0x18c] sm:$0xf0]  ;;  %v7733_v4 = vld [vmem:[%s10323_s0 + $0x94] sm:$0xf] }
 0x10b   :  { %4961 = vmatpush.bf16.msra.mxu1 %v8048_v17 }
 0x10c   :  { %4975 = vmatpush.bf16.msra.mxu2 %v8056_v19  ;;  %v4677_v17 = vadd.f32 %v4676_v7, %v4663_v16  ;;  %v8080_v19 = vld [vmem:[%s10322_s1 + $0x968] sm:$0xff]  ;;  %v5567_v7 = vld [vmem:[%s10323_s0 + $0x198] sm:$0xf0]  ;;  %v8113_v16 = vld [vmem:[%s10322_s1 + $0xa70] sm:$0xff] }
 0x10d   :  { %4989 = vmatpush.bf16.msra.mxu3 %v8064_v25 }
 0x10e   :  { %4948 = vmatpush.bf16.msra.mxu0 %v8039_v28  ;;  %v4704_v25 = vpop.f32.mrf.mxu2  ;;  %v4691_v28 = vadd.f32 %v4690_v11, %v4677_v17  ;;  %v5558_v11 = vor.u32 %v7765_v1, %v5557_v0  ;;  %v8121_v17 = vld [vmem:[%s10322_s1 + $0xab0] sm:$0xff]  ;;  %v7735_v0 = vld [vmem:[%s10323_s0 + $0xa4] sm:$0xf] }
 0x10f   :  { %4962 = vmatpush.bf16.msra.mxu1 %v8047_v29  ;;  %v4718_v26 = vpop.f32.mrf.mxu3  ;;  %v5575_v1 = vld [vmem:[%s10323_s0 + $0x1a0] sm:$0xf0] }
 0x110   :  { %4976 = vmatpush.bf16.msra.mxu2 %v8055_v32  ;;  %v8079_v32 = vld [vmem:[%s10322_s1 + $0x960] sm:$0xff] }
 0x111   :  { %4990 = vmatpush.bf16.msra.mxu3 %v8063_v30 }
 0x112   :  { %4949 = vmatpush.bf16.msra.mxu0 %v8038_v35  ;;  %v4705_v35 = vadd.f32 %v4704_v25, %v4691_v28  ;;  %v8112_v25 = vld [vmem:[%s10322_s1 + $0xa68] sm:$0xff]  ;;  %v8103_v28 = vld [vmem:[%s10322_s1 + $0xa20] sm:$0xff] }
 0x113   :  { %4963 = vmatpush.bf16.msra.mxu1 %v8046_v36 }
 0x114   :  { %4977 = vmatpush.bf16.msra.mxu2 %v8054_v37  ;;  %v8070_v37 = vld [vmem:[%s10322_s1 + $0x918] sm:$0xff]  ;;  %v4719_v41 = vadd.f32 %v4718_v26, %v4705_v35 }
 0x115   :  { %4991 = vmatpush.bf16.msra.mxu3 %v8062_v9  ;;  %v8078_v9 = vld [vmem:[%s10322_s1 + $0x958] sm:$0xff] }
 0x116   :  { %4950 = vmatpush.bf16.msra.mxu0 %v8037_v44  ;;  %v8110_v35 = vld [vmem:[%s10322_s1 + $0xa58] sm:$0xff] }
 0x117   :  { %4964 = vmatpush.bf16.msra.mxu1 %v8045_v45 }
 0x118   :  { %4978 = vmatpush.bf16.msra.mxu2 %v8053_v12 }
 0x119   :  { %4992 = vmatpush.bf16.msra.mxu3 %v8061_v21  ;;  %v8069_v21 = vld [vmem:[%s10322_s1 + $0x910] sm:$0xff] }
 0x11a   :  { %4951 = vmatpush.bf16.msra.mxu0 %v8036_v47 }
 0x11b   :  { %4965 = vmatpush.bf16.msra.mxu1 %v8044_v48  ;;  %v8085_v48 = vld [vmem:[%s10322_s1 + $0x990] sm:$0xff] }
 0x11c   :  { %4979 = vmatpush.bf16.msra.mxu2 %v8052_v49  ;;  %v8093_v49 = vld [vmem:[%s10322_s1 + $0x9d0] sm:$0xff] }
 0x11d   :  { %4993 = vmatpush.bf16.msra.mxu3 %v8060_v24 }
 0x11e   :  { %4952 = vmatpush.bf16.msra.mxu0 %v8035_v51  ;;  %v4730_v27 = vpop.f32.mrf.mxu0  ;;  %v8076_v51 = vld [vmem:[%s10322_s1 + $0x948] sm:$0xff] }
 0x11f   :  { %4966 = vmatpush.bf16.msra.mxu1 %v8043_v52  ;;  %v4731_v29 = vadd.f32 %v4730_v27, %v9378_v43  ;;  %v4744_v30 = vpop.f32.mrf.mxu1  ;;  %v8084_v52 = vld [vmem:[%s10322_s1 + $0x988] sm:$0xff] }
 0x120   :  { %4980 = vmatpush.bf16.msra.mxu2 %v8051_v53  ;;  %v8092_v53 = vld [vmem:[%s10322_s1 + $0x9c8] sm:$0xff] }
 0x121   :  { %4994 = vmatpush.bf16.msra.mxu3 %v8059_v54  ;;  %4953 = vmatmul.bf16.vlgmr.msra.gmra.mxu0 %v5542_v5  ;;  %v4745_v36 = vadd.f32 %v4744_v30, %v4731_v29  ;;  %v5559_v5 = vld [vmem:[%s10323_s0 + $0x190] sm:$0xf0]  ;;  %v8111_v29 = vld [vmem:[%s10322_s1 + $0xa60] sm:$0xff] }
 0x122   :  { %5001 = vmatpush.bf16.msrb.mxu0 %v8074_v55  ;;  %4967 = vmatmul.bf16.vlgmr.msra.gmra.mxu1 %v5546_v8  ;;  %v8122_v8 = vld [vmem:[%s10322_s1 + $0xab8] sm:$0xff]  ;;  %v8127_v30 = vld [vmem:[%s10322_s1 + $0xae0] sm:$0xff] }
 0x123   :  { %5015 = vmatpush.bf16.msrb.mxu1 %v8082_v56  ;;  %4981 = vmatmul.bf16.vlgmr.msra.gmra.mxu2 %v5550_v6  ;;  %v7734_v6 = vld [vmem:[%s10323_s0 + $0x9c] sm:$0xf] }
 0x124   :  { %5029 = vmatpush.bf16.msrb.mxu2 %v8090_v2  ;;  %4995 = vmatmul.bf16.vlgmr.msra.gmra.mxu3 %v5554_v10  ;;  %v5565_v2 = vld [vmem:[%s10323_s0 + $0x98] sm:$0xf] }
 0x125   :  { %5043 = vmatpush.bf16.msrb.mxu3 %v8098_v3  ;;  %v7766_v3 = vld [vmem:[%s10323_s0 + $0x194] sm:$0xf0] }
 0x126   :  { %5002 = vmatpush.bf16.msrb.mxu0 %v8073_v13  ;;  %v4758_v40 = vpop.f32.mrf.mxu2  ;;  %v4732_v44 = vpop.f32.mrf.mxu0  ;;  %v8130_v10 = vld [vmem:[%s10322_s1 + $0xaf8] sm:$0xff]  ;;  %v5566_v13 = vor.u32 %v7766_v3, %v5565_v2  ;;  %v7736_v2 = vld [vmem:[%s10323_s0 + $0xac] sm:$0xf] }
 0x127   :  { %5016 = vmatpush.bf16.msrb.mxu1 %v8081_v14  ;;  %v4759_v42 = vadd.f32 %v4758_v40, %v4745_v36  ;;  %v4772_v43 = vpop.f32.mrf.mxu3  ;;  %v4733_v45 = vadd.f32 %v4732_v44, %v4719_v41  ;;  %v4746_v47 = vpop.f32.mrf.mxu1  ;;  %v5562_v14 = vor.u32 %v7733_v4, %v5559_v5  ;;  %v8118_v36 = vld [vmem:[%s10322_s1 + $0xa98] sm:$0xff]  ;;  %v8109_v44 = vld [vmem:[%s10322_s1 + $0xa50] sm:$0xff]  ;;  %v5583_v3 = vld [vmem:[%s10323_s0 + $0x1a8] sm:$0xf0] }
 0x128   :  { %5030 = vmatpush.bf16.msrb.mxu2 %v8089_v15  ;;  %v5570_v15 = vor.u32 %v7734_v6, %v5567_v7  ;;  %v8154_v4 = vld [vmem:[%s10322_s1 + $0xbb8] sm:$0xff] }
 0x129   :  { %5044 = vmatpush.bf16.msrb.mxu3 %v8097_v20  ;;  %v9506_v12 = vadd.f32 %v4772_v43, %v4759_v42  ;;  %v4747_v24 = vadd.f32 %v4746_v47, %v4733_v45  ;;  %v8105_v20 = vld [vmem:[%s10322_s1 + $0xa30] sm:$0xff]  ;;  %v8100_v47 = vld [vmem:[%s10322_s1 + $0xa08] sm:$0xff]  ;;  %v8162_v5 = vld [vmem:[%s10322_s1 + $0xbf8] sm:$0xff] }
 0x12a   :  { %5003 = vmatpush.bf16.msrb.mxu0 %v8072_v18  ;;  %v8129_v18 = vld [vmem:[%s10322_s1 + $0xaf0] sm:$0xff] }
 0x12b   :  { %5017 = vmatpush.bf16.msrb.mxu1 %v8080_v19  ;;  %v8104_v19 = vld [vmem:[%s10322_s1 + $0xa28] sm:$0xff]  ;;  %v8101_v43 = vld [vmem:[%s10322_s1 + $0xa10] sm:$0xff] }
 0x12c   :  { %5031 = vmatpush.bf16.msrb.mxu2 %v8088_v22  ;;  %v8120_v22 = vld [vmem:[%s10322_s1 + $0xaa8] sm:$0xff] }
 0x12d   :  { %5045 = vmatpush.bf16.msrb.mxu3 %v8096_v23  ;;  %v8128_v23 = vld [vmem:[%s10322_s1 + $0xae8] sm:$0xff] }
 0x12e   :  { %5004 = vmatpush.bf16.msrb.mxu0 %v8071_v31  ;;  %v4760_v54 = vpop.f32.mrf.mxu2 }
 0x12f   :  { %5018 = vmatpush.bf16.msrb.mxu1 %v8079_v32  ;;  %v4761_v55 = vadd.f32 %v4760_v54, %v4747_v24  ;;  %v4774_v56 = vpop.f32.mrf.mxu3  ;;  %v8119_v32 = vld [vmem:[%s10322_s1 + $0xaa0] sm:$0xff]  ;;  %v8124_v24 = vld [vmem:[%s10322_s1 + $0xac8] sm:$0xff] }
 0x130   :  { %5032 = vmatpush.bf16.msrb.mxu2 %v8087_v33  ;;  %v8107_v54 = vld [vmem:[%s10322_s1 + $0xa40] sm:$0xff] }
 0x131   :  { %5046 = vmatpush.bf16.msrb.mxu3 %v8095_v34  ;;  %v9544_v61 = vadd.f32 %v4774_v56, %v4761_v55  ;;  %v8102_v34 = vld [vmem:[%s10322_s1 + $0xa18] sm:$0xff]  ;;  %v8115_v55 = vld [vmem:[%s10322_s1 + $0xa80] sm:$0xff] }
 0x132   :  { %5005 = vmatpush.bf16.msrb.mxu0 %v8070_v37  ;;  %v8126_v37 = vld [vmem:[%s10322_s1 + $0xad8] sm:$0xff]  ;;  %v8123_v56 = vld [vmem:[%s10322_s1 + $0xac0] sm:$0xff] }
 0x133   :  { %5019 = vmatpush.bf16.msrb.mxu1 %v8078_v9 }
 0x134   :  { %5033 = vmatpush.bf16.msrb.mxu2 %v8086_v38 }
 0x135   :  { %5047 = vmatpush.bf16.msrb.mxu3 %v8094_v39 }
 0x136   :  { %5006 = vmatpush.bf16.msrb.mxu0 %v8069_v21  ;;  %v8125_v21 = vld [vmem:[%s10322_s1 + $0xad0] sm:$0xff] }
 0x137   :  { %5020 = vmatpush.bf16.msrb.mxu1 %v8077_v46 }
 0x138   :  { %5034 = vmatpush.bf16.msrb.mxu2 %v8085_v48  ;;  %v8108_v48 = vld [vmem:[%s10322_s1 + $0xa48] sm:$0xff] }
 0x139   :  { %5048 = vmatpush.bf16.msrb.mxu3 %v8093_v49  ;;  %v8116_v49 = vld [vmem:[%s10322_s1 + $0xa88] sm:$0xff] }
 0x13a   :  { %5007 = vmatpush.bf16.msrb.mxu0 %v8068_v50 }
 0x13b   :  { %5021 = vmatpush.bf16.msrb.mxu1 %v8076_v51 }
 0x13c   :  { %5035 = vmatpush.bf16.msrb.mxu2 %v8084_v52 }
 0x13d   :  { %5049 = vmatpush.bf16.msrb.mxu3 %v8092_v53  ;;  %v8099_v53 = vld [vmem:[%s10322_s1 + $0xa00] sm:$0xff] }
 0x13e   :  { %5008 = vmatpush.bf16.msrb.mxu0 %v8067_v57  ;;  %v4786_v26 = vpop.f32.mrf.mxu0 }
 0x13f   :  { %5022 = vmatpush.bf16.msrb.mxu1 %v8075_v58  ;;  %v4787_v27 = vadd.f32 %v4786_v26, %v9506_v12  ;;  %v4800_v31 = vpop.f32.mrf.mxu1  ;;  %v8117_v12 = vld [vmem:[%s10322_s1 + $0xa90] sm:$0xff]  ;;  %v8138_v58 = vld [vmem:[%s10322_s1 + $0xb38] sm:$0xff] }
 0x140   :  { %5036 = vmatpush.bf16.msrb.mxu2 %v8083_v59  ;;  %v8146_v59 = vld [vmem:[%s10322_s1 + $0xb78] sm:$0xff] }
 0x141   :  { %5050 = vmatpush.bf16.msrb.mxu3 %v8091_v60  ;;  %5009 = vmatmul.bf16.vlgmr.msrb.gmra.mxu0 %v5558_v11  ;;  %v4801_v33 = vadd.f32 %v4800_v31, %v4787_v27  ;;  %v5573_v60 = vld [vmem:[%s10323_s0 + $0xa0] sm:$0xf]  ;;  %v8137_v11 = vld [vmem:[%s10322_s1 + $0xb30] sm:$0xff]  ;;  %v8134_v31 = vld [vmem:[%s10322_s1 + $0xb18] sm:$0xff] }
 0x142   :  { %5057 = vmatpush.bf16.msra.mxu0 %v8106_v62  ;;  %5023 = vmatmul.bf16.vlgmr.msrb.gmra.mxu1 %v5562_v14  ;;  %v5581_v62 = vld [vmem:[%s10323_s0 + $0xa8] sm:$0xf]  ;;  %v8153_v14 = vld [vmem:[%s10322_s1 + $0xbb0] sm:$0xff]  ;;  %v8151_v27 = vld [vmem:[%s10322_s1 + $0xba0] sm:$0xff] }
 0x143   :  { %5071 = vmatpush.bf16.msra.mxu1 %v8114_v63  ;;  %5037 = vmatmul.bf16.vlgmr.msrb.gmra.mxu2 %v5566_v13  ;;  %v7768_v63 = vld [vmem:[%s10323_s0 + $0x1a4] sm:$0xf0]  ;;  %v8145_v13 = vld [vmem:[%s10322_s1 + $0xb70] sm:$0xff] }
 0x144   :  { %5085 = vmatpush.bf16.msra.mxu2 %v8122_v8  ;;  %5051 = vmatmul.bf16.vlgmr.msrb.gmra.mxu3 %v5570_v15  ;;  %v5582_v7 = vor.u32 %v7768_v63, %v5581_v62  ;;  %v5578_v8 = vor.u32 %v7735_v0, %v5575_v1  ;;  %v8161_v15 = vld [vmem:[%s10322_s1 + $0xbf0] sm:$0xff]  ;;  %v7738_v62 = vld [vmem:[%s10323_s0 + $0xbc] sm:$0xf] }
 0x145   :  { %5099 = vmatpush.bf16.msra.mxu3 %v8130_v10  ;;  %v5586_v10 = vor.u32 %v7736_v2, %v5583_v3  ;;  %v5599_v63 = vld [vmem:[%s10323_s0 + $0x1b8] sm:$0xf0] }
 0x146   :  { %5058 = vmatpush.bf16.msra.mxu0 %v8105_v20  ;;  %v4814_v9 = vpop.f32.mrf.mxu2  ;;  %v4788_v40 = vpop.f32.mrf.mxu0  ;;  %v8136_v20 = vld [vmem:[%s10322_s1 + $0xb28] sm:$0xff]  ;;  %v8186_v0 = vld [vmem:[%s10322_s1 + $0xcb8] sm:$0xff] }
 0x147   :  { %5072 = vmatpush.bf16.msra.mxu1 %v8113_v16  ;;  %v4815_v38 = vadd.f32 %v4814_v9, %v4801_v33  ;;  %v4828_v39 = vpop.f32.mrf.mxu3  ;;  %v4789_v41 = vadd.f32 %v4788_v40, %v9544_v61  ;;  %v4802_v45 = vpop.f32.mrf.mxu1  ;;  %v7767_v61 = vld [vmem:[%s10323_s0 + $0x19c] sm:$0xf0]  ;;  %v8144_v16 = vld [vmem:[%s10322_s1 + $0xb68] sm:$0xff]  ;;  %v8158_v33 = vld [vmem:[%s10322_s1 + $0xbd8] sm:$0xff] }
 0x148   :  { %5086 = vmatpush.bf16.msra.mxu2 %v8121_v17  ;;  %v5574_v6 = vor.u32 %v7767_v61, %v5573_v60  ;;  %v8152_v17 = vld [vmem:[%s10322_s1 + $0xba8] sm:$0xff]  ;;  %v8141_v40 = vld [vmem:[%s10322_s1 + $0xb50] sm:$0xff]  ;;  %v8194_v1 = vld [vmem:[%s10322_s1 + $0xcf8] sm:$0xff] }
 0x149   :  { %5100 = vmatpush.bf16.msra.mxu3 %v8129_v18  ;;  %v9632_v42 = vadd.f32 %v4828_v39, %v4815_v38  ;;  %v4803_v46 = vadd.f32 %v4802_v45, %v4789_v41  ;;  %v8160_v18 = vld [vmem:[%s10322_s1 + $0xbe8] sm:$0xff]  ;;  %v8133_v39 = vld [vmem:[%s10322_s1 + $0xb10] sm:$0xff] }
 0x14a   :  { %5059 = vmatpush.bf16.msra.mxu0 %v8104_v19  ;;  %v8132_v45 = vld [vmem:[%s10322_s1 + $0xb08] sm:$0xff]  ;;  %v7737_v60 = vld [vmem:[%s10323_s0 + $0xb4] sm:$0xf] }
 0x14b   :  { %5073 = vmatpush.bf16.msra.mxu1 %v8112_v25  ;;  %v5591_v61 = vld [vmem:[%s10323_s0 + $0x1b0] sm:$0xf0] }
 0x14c   :  { %5087 = vmatpush.bf16.msra.mxu2 %v8120_v22  ;;  %v8135_v22 = vld [vmem:[%s10322_s1 + $0xb20] sm:$0xff] }
 0x14d   :  { %5101 = vmatpush.bf16.msra.mxu3 %v8128_v23  ;;  %v8143_v23 = vld [vmem:[%s10322_s1 + $0xb60] sm:$0xff] }
 0x14e   :  { %5060 = vmatpush.bf16.msra.mxu0 %v8103_v28  ;;  %v4816_v50 = vpop.f32.mrf.mxu2  ;;  %v8159_v28 = vld [vmem:[%s10322_s1 + $0xbe0] sm:$0xff] }
 0x14f   :  { %5074 = vmatpush.bf16.msra.mxu1 %v8111_v29  ;;  %v4817_v51 = vadd.f32 %v4816_v50, %v4803_v46  ;;  %v4830_v52 = vpop.f32.mrf.mxu3  ;;  %v8156_v46 = vld [vmem:[%s10322_s1 + $0xbc8] sm:$0xff]  ;;  %v8139_v50 = vld [vmem:[%s10322_s1 + $0xb40] sm:$0xff] }
 0x150   :  { %5088 = vmatpush.bf16.msra.mxu2 %v8119_v32  ;;  %v8142_v32 = vld [vmem:[%s10322_s1 + $0xb58] sm:$0xff] }
 0x151   :  { %5102 = vmatpush.bf16.msra.mxu3 %v8127_v30  ;;  %v9670_v57 = vadd.f32 %v4830_v52, %v4817_v51  ;;  %v8150_v30 = vld [vmem:[%s10322_s1 + $0xb98] sm:$0xff]  ;;  %v8147_v51 = vld [vmem:[%s10322_s1 + $0xb80] sm:$0xff] }
 0x152   :  { %5061 = vmatpush.bf16.msra.mxu0 %v8102_v34  ;;  %v8155_v52 = vld [vmem:[%s10322_s1 + $0xbc0] sm:$0xff] }
 0x153   :  { %5075 = vmatpush.bf16.msra.mxu1 %v8110_v35 }
 0x154   :  { %5089 = vmatpush.bf16.msra.mxu2 %v8118_v36 }
 0x155   :  { %5103 = vmatpush.bf16.msra.mxu3 %v8126_v37 }
 0x156   :  { %5062 = vmatpush.bf16.msra.mxu0 %v8101_v43  ;;  %v8157_v43 = vld [vmem:[%s10322_s1 + $0xbd0] sm:$0xff] }
 0x157   :  { %5076 = vmatpush.bf16.msra.mxu1 %v8109_v44 }
 0x158   :  { %5090 = vmatpush.bf16.msra.mxu2 %v8117_v12  ;;  %v8140_v12 = vld [vmem:[%s10322_s1 + $0xb48] sm:$0xff] }
 0x159   :  { %5104 = vmatpush.bf16.msra.mxu3 %v8125_v21  ;;  %v8148_v21 = vld [vmem:[%s10322_s1 + $0xb88] sm:$0xff] }
 0x15a   :  { %5063 = vmatpush.bf16.msra.mxu0 %v8100_v47 }
 0x15b   :  { %5077 = vmatpush.bf16.msra.mxu1 %v8108_v48 }
 0x15c   :  { %5091 = vmatpush.bf16.msra.mxu2 %v8116_v49 }
 0x15d   :  { %5105 = vmatpush.bf16.msra.mxu3 %v8124_v24  ;;  %v8131_v24 = vld [vmem:[%s10322_s1 + $0xb00] sm:$0xff] }
 0x15e   :  { %5064 = vmatpush.bf16.msra.mxu0 %v8099_v53  ;;  %v4842_v19 = vpop.f32.mrf.mxu0 }
 0x15f   :  { %5078 = vmatpush.bf16.msra.mxu1 %v8107_v54  ;;  %v4843_v25 = vadd.f32 %v4842_v19, %v9632_v42  ;;  %v4856_v26 = vpop.f32.mrf.mxu1  ;;  %v8149_v42 = vld [vmem:[%s10322_s1 + $0xb90] sm:$0xff]  ;;  %v8170_v54 = vld [vmem:[%s10322_s1 + $0xc38] sm:$0xff] }
 0x160   :  { %5092 = vmatpush.bf16.msra.mxu2 %v8115_v55  ;;  %v8178_v55 = vld [vmem:[%s10322_s1 + $0xc78] sm:$0xff] }
 0x161   :  { %5106 = vmatpush.bf16.msra.mxu3 %v8123_v56  ;;  %5065 = vmatmul.bf16.vlgmr.msra.gmra.mxu0 %v5574_v6  ;;  %v4857_v29 = vadd.f32 %v4856_v26, %v4843_v25  ;;  %v5589_v56 = vld [vmem:[%s10323_s0 + $0xb0] sm:$0xf]  ;;  %v8183_v25 = vld [vmem:[%s10322_s1 + $0xca0] sm:$0xff]  ;;  %v8166_v26 = vld [vmem:[%s10322_s1 + $0xc18] sm:$0xff] }
 0x162   :  { %5113 = vmatpush.bf16.msrb.mxu0 %v8138_v58  ;;  %5079 = vmatmul.bf16.vlgmr.msra.gmra.mxu1 %v5578_v8  ;;  %v5597_v58 = vld [vmem:[%s10323_s0 + $0xb8] sm:$0xf]  ;;  %v8169_v6 = vld [vmem:[%s10322_s1 + $0xc30] sm:$0xff] }
 0x163   :  { %5127 = vmatpush.bf16.msrb.mxu1 %v8146_v59  ;;  %5093 = vmatmul.bf16.vlgmr.msra.gmra.mxu2 %v5582_v7  ;;  %v7770_v59 = vld [vmem:[%s10323_s0 + $0x1b4] sm:$0xf0]  ;;  %v8177_v7 = vld [vmem:[%s10322_s1 + $0xc70] sm:$0xff] }
 0x164   :  { %5141 = vmatpush.bf16.msrb.mxu2 %v8154_v4  ;;  %5107 = vmatmul.bf16.vlgmr.msra.gmra.mxu3 %v5586_v10  ;;  %v5598_v3 = vor.u32 %v7770_v59, %v5597_v58  ;;  %v5594_v4 = vor.u32 %v7737_v60, %v5591_v61  ;;  %v8185_v8 = vld [vmem:[%s10322_s1 + $0xcb0] sm:$0xff]  ;;  %v7740_v58 = vld [vmem:[%s10323_s0 + $0xcc] sm:$0xf]  ;;  %v8218_v60 = vld [vmem:[%s10322_s1 + $0xdb8] sm:$0xff] }
 0x165   :  { %5155 = vmatpush.bf16.msrb.mxu3 %v8162_v5  ;;  %v5602_v5 = vor.u32 %v7738_v62, %v5599_v63  ;;  %v8193_v10 = vld [vmem:[%s10322_s1 + $0xcf0] sm:$0xff]  ;;  %v5615_v59 = vld [vmem:[%s10323_s0 + $0x1c8] sm:$0xf0]  ;;  %v8226_v61 = vld [vmem:[%s10322_s1 + $0xdf8] sm:$0xff] }
 0x166   :  { %5114 = vmatpush.bf16.msrb.mxu0 %v8137_v11  ;;  %v4870_v34 = vpop.f32.mrf.mxu2  ;;  %v4844_v37 = vpop.f32.mrf.mxu0  ;;  %v8168_v11 = vld [vmem:[%s10322_s1 + $0xc28] sm:$0xff] }
 0x167   :  { %5128 = vmatpush.bf16.msrb.mxu1 %v8145_v13  ;;  %v4871_v35 = vadd.f32 %v4870_v34, %v4857_v29  ;;  %v4884_v36 = vpop.f32.mrf.mxu3  ;;  %v4845_v9 = vadd.f32 %v4844_v37, %v9670_v57  ;;  %v4858_v41 = vpop.f32.mrf.mxu1  ;;  %v7769_v57 = vld [vmem:[%s10323_s0 + $0x1ac] sm:$0xf0]  ;;  %v8176_v13 = vld [vmem:[%s10322_s1 + $0xc68] sm:$0xff]  ;;  %v8190_v29 = vld [vmem:[%s10322_s1 + $0xcd8] sm:$0xff] }
 0x168   :  { %5142 = vmatpush.bf16.msrb.mxu2 %v8153_v14  ;;  %v5590_v2 = vor.u32 %v7769_v57, %v5589_v56  ;;  %v8184_v14 = vld [vmem:[%s10322_s1 + $0xca8] sm:$0xff]  ;;  %v8173_v37 = vld [vmem:[%s10322_s1 + $0xc50] sm:$0xff]  ;;  %v7739_v56 = vld [vmem:[%s10323_s0 + $0xc4] sm:$0xf] }
 0x169   :  { %5156 = vmatpush.bf16.msrb.mxu3 %v8161_v15  ;;  %v9758_v38 = vadd.f32 %v4884_v36, %v4871_v35  ;;  %v4859_v44 = vadd.f32 %v4858_v41, %v4845_v9  ;;  %v8192_v15 = vld [vmem:[%s10322_s1 + $0xce8] sm:$0xff]  ;;  %v8165_v36 = vld [vmem:[%s10322_s1 + $0xc10] sm:$0xff]  ;;  %v5607_v57 = vld [vmem:[%s10323_s0 + $0x1c0] sm:$0xf0] }
 0x16a   :  { %5115 = vmatpush.bf16.msrb.mxu0 %v8136_v20  ;;  %v8164_v41 = vld [vmem:[%s10322_s1 + $0xc08] sm:$0xff] }
 0x16b   :  { %5129 = vmatpush.bf16.msrb.mxu1 %v8144_v16 }
 0x16c   :  { %5143 = vmatpush.bf16.msrb.mxu2 %v8152_v17  ;;  %v8167_v17 = vld [vmem:[%s10322_s1 + $0xc20] sm:$0xff] }
 0x16d   :  { %5157 = vmatpush.bf16.msrb.mxu3 %v8160_v18  ;;  %v8175_v18 = vld [vmem:[%s10322_s1 + $0xc60] sm:$0xff] }
 0x16e   :  { %5116 = vmatpush.bf16.msrb.mxu0 %v8135_v22  ;;  %v4872_v47 = vpop.f32.mrf.mxu2  ;;  %v8191_v22 = vld [vmem:[%s10322_s1 + $0xce0] sm:$0xff] }
 0x16f   :  { %5130 = vmatpush.bf16.msrb.mxu1 %v8143_v23  ;;  %v4873_v48 = vadd.f32 %v4872_v47, %v4859_v44  ;;  %v4886_v49 = vpop.f32.mrf.mxu3  ;;  %v8188_v44 = vld [vmem:[%s10322_s1 + $0xcc8] sm:$0xff]  ;;  %v8171_v47 = vld [vmem:[%s10322_s1 + $0xc40] sm:$0xff] }
 0x170   :  { %5144 = vmatpush.bf16.msrb.mxu2 %v8151_v27  ;;  %v8174_v27 = vld [vmem:[%s10322_s1 + $0xc58] sm:$0xff] }
 0x171   :  { %5158 = vmatpush.bf16.msrb.mxu3 %v8159_v28  ;;  %v9796_v53 = vadd.f32 %v4886_v49, %v4873_v48  ;;  %v8182_v28 = vld [vmem:[%s10322_s1 + $0xc98] sm:$0xff]  ;;  %v8179_v48 = vld [vmem:[%s10322_s1 + $0xc80] sm:$0xff] }
 0x172   :  { %5117 = vmatpush.bf16.msrb.mxu0 %v8134_v31  ;;  %v8187_v49 = vld [vmem:[%s10322_s1 + $0xcc0] sm:$0xff] }
 0x173   :  { %5131 = vmatpush.bf16.msrb.mxu1 %v8142_v32 }
 0x174   :  { %5145 = vmatpush.bf16.msrb.mxu2 %v8150_v30 }
 0x175   :  { %5159 = vmatpush.bf16.msrb.mxu3 %v8158_v33 }
 0x176   :  { %5118 = vmatpush.bf16.msrb.mxu0 %v8133_v39  ;;  %v8189_v39 = vld [vmem:[%s10322_s1 + $0xcd0] sm:$0xff] }
 0x177   :  { %5132 = vmatpush.bf16.msrb.mxu1 %v8141_v40 }
 0x178   :  { %5146 = vmatpush.bf16.msrb.mxu2 %v8149_v42  ;;  %v8172_v42 = vld [vmem:[%s10322_s1 + $0xc48] sm:$0xff] }
 0x179   :  { %5160 = vmatpush.bf16.msrb.mxu3 %v8157_v43  ;;  %v8180_v43 = vld [vmem:[%s10322_s1 + $0xc88] sm:$0xff] }
 0x17a   :  { %5119 = vmatpush.bf16.msrb.mxu0 %v8132_v45 }
 0x17b   :  { %5133 = vmatpush.bf16.msrb.mxu1 %v8140_v12 }
 0x17c   :  { %5147 = vmatpush.bf16.msrb.mxu2 %v8148_v21 }
 0x17d   :  { %5161 = vmatpush.bf16.msrb.mxu3 %v8156_v46  ;;  %v8163_v46 = vld [vmem:[%s10322_s1 + $0xc00] sm:$0xff] }
 0x17e   :  { %5120 = vmatpush.bf16.msrb.mxu0 %v8131_v24  ;;  %v4898_v20 = vpop.f32.mrf.mxu0 }
 0x17f   :  { %5134 = vmatpush.bf16.msrb.mxu1 %v8139_v50  ;;  %v4899_v16 = vadd.f32 %v4898_v20, %v9758_v38  ;;  %v4912_v19 = vpop.f32.mrf.mxu1  ;;  %v8181_v38 = vld [vmem:[%s10322_s1 + $0xc90] sm:$0xff]  ;;  %v8202_v50 = vld [vmem:[%s10322_s1 + $0xd38] sm:$0xff] }
 0x180   :  { %5148 = vmatpush.bf16.msrb.mxu2 %v8147_v51  ;;  %v8210_v51 = vld [vmem:[%s10322_s1 + $0xd78] sm:$0xff] }
 0x181   :  { %5162 = vmatpush.bf16.msrb.mxu3 %v8155_v52  ;;  %5121 = vmatmul.bf16.vlgmr.msrb.gmra.mxu0 %v5590_v2  ;;  %v4913_v23 = vadd.f32 %v4912_v19, %v4899_v16  ;;  %v5605_v52 = vld [vmem:[%s10323_s0 + $0xc0] sm:$0xf]  ;;  %v8201_v2 = vld [vmem:[%s10322_s1 + $0xd30] sm:$0xff]  ;;  %v8198_v20 = vld [vmem:[%s10322_s1 + $0xd18] sm:$0xff] }
 0x182   :  { %5169 = vmatpush.bf16.msra.mxu0 %v8170_v54  ;;  %5135 = vmatmul.bf16.vlgmr.msrb.gmra.mxu1 %v5594_v4  ;;  %v5613_v54 = vld [vmem:[%s10323_s0 + $0xc8] sm:$0xf]  ;;  %v8217_v4 = vld [vmem:[%s10322_s1 + $0xdb0] sm:$0xff]  ;;  %v8206_v16 = vld [vmem:[%s10322_s1 + $0xd58] sm:$0xff] }
 0x183   :  { %5183 = vmatpush.bf16.msra.mxu1 %v8178_v55  ;;  %5149 = vmatmul.bf16.vlgmr.msrb.gmra.mxu2 %v5598_v3  ;;  %v7772_v55 = vld [vmem:[%s10323_s0 + $0x1c4] sm:$0xf0]  ;;  %v8209_v3 = vld [vmem:[%s10322_s1 + $0xd70] sm:$0xff] }
 0x184   :  { %5197 = vmatpush.bf16.msra.mxu2 %v8186_v0  ;;  %5163 = vmatmul.bf16.vlgmr.msrb.gmra.mxu3 %v5602_v5  ;;  %v5614_v63 = vor.u32 %v7772_v55, %v5613_v54  ;;  %v5610_v0 = vor.u32 %v7739_v56, %v5607_v57  ;;  %v8225_v5 = vld [vmem:[%s10322_s1 + $0xdf0] sm:$0xff]  ;;  %v8248_v54 = vld [vmem:[%s10322_s1 + $0xea8] sm:$0xff]  ;;  %v8231_v56 = vld [vmem:[%s10322_s1 + $0xe20] sm:$0xff] }
 0x185   :  { %5211 = vmatpush.bf16.msra.mxu3 %v8194_v1  ;;  %v5618_v1 = vor.u32 %v7740_v58, %v5615_v59  ;;  %v8197_v19 = vld [vmem:[%s10322_s1 + $0xd10] sm:$0xff]  ;;  %v8256_v55 = vld [vmem:[%s10322_s1 + $0xee8] sm:$0xff]  ;;  %v8239_v57 = vld [vmem:[%s10322_s1 + $0xe60] sm:$0xff] }
 0x186   :  { %5170 = vmatpush.bf16.msra.mxu0 %v8169_v6  ;;  %v4926_v31 = vpop.f32.mrf.mxu2  ;;  %v4900_v33 = vpop.f32.mrf.mxu0  ;;  %v8200_v6 = vld [vmem:[%s10322_s1 + $0xd28] sm:$0xff]  ;;  %v8247_v58 = vld [vmem:[%s10322_s1 + $0xea0] sm:$0xff] }
 0x187   :  { %5184 = vmatpush.bf16.msra.mxu1 %v8177_v7  ;;  %v4927_v32 = vadd.f32 %v4926_v31, %v4913_v23  ;;  %v4940_v30 = vpop.f32.mrf.mxu3  ;;  %v4901_v34 = vadd.f32 %v4900_v33, %v9796_v53  ;;  %v4914_v9 = vpop.f32.mrf.mxu1  ;;  %v7771_v53 = vld [vmem:[%s10323_s0 + $0x1bc] sm:$0xf0]  ;;  %v8208_v7 = vld [vmem:[%s10322_s1 + $0xd68] sm:$0xff]  ;;  %v8221_v23 = vld [vmem:[%s10322_s1 + $0xdd0] sm:$0xff] }
 0x188   :  { %5198 = vmatpush.bf16.msra.mxu2 %v8185_v8  ;;  %v5606_v62 = vor.u32 %v7771_v53, %v5605_v52  ;;  %v8216_v8 = vld [vmem:[%s10322_s1 + $0xda8] sm:$0xff]  ;;  %v8195_v31 = vld [vmem:[%s10322_s1 + $0xd00] sm:$0xff] }
 0x189   :  { %5212 = vmatpush.bf16.msra.mxu3 %v8193_v10  ;;  %v9884_v35 = vadd.f32 %v4940_v30, %v4927_v32  ;;  %v4915_v40 = vadd.f32 %v4914_v9, %v4901_v34  ;;  %v8224_v10 = vld [vmem:[%s10322_s1 + $0xde8] sm:$0xff]  ;;  %v8203_v32 = vld [vmem:[%s10322_s1 + $0xd40] sm:$0xff]  ;;  %v8234_v34 = vld [vmem:[%s10322_s1 + $0xe38] sm:$0xff] }
 0x18a   :  { %5171 = vmatpush.bf16.msra.mxu0 %v8168_v11  ;;  %v8199_v11 = vld [vmem:[%s10322_s1 + $0xd20] sm:$0xff]  ;;  %v7773_v9 = vld [vmem:[%s10323_s0 + $0x1cc] sm:$0xf0]  ;;  %v8232_v52 = vld [vmem:[%s10322_s1 + $0xe28] sm:$0xff] }
 0x18b   :  { %5185 = vmatpush.bf16.msra.mxu1 %v8176_v13  ;;  %v8207_v13 = vld [vmem:[%s10322_s1 + $0xd60] sm:$0xff]  ;;  %v8240_v53 = vld [vmem:[%s10322_s1 + $0xe68] sm:$0xff] }
 0x18c   :  { %5199 = vmatpush.bf16.msra.mxu2 %v8184_v14  ;;  %v8215_v14 = vld [vmem:[%s10322_s1 + $0xda0] sm:$0xff] }
 0x18d   :  { %5213 = vmatpush.bf16.msra.mxu3 %v8192_v15  ;;  %v8223_v15 = vld [vmem:[%s10322_s1 + $0xde0] sm:$0xff] }
 0x18e   :  { %5172 = vmatpush.bf16.msra.mxu0 %v8167_v17  ;;  %v4928_v45 = vpop.f32.mrf.mxu2  ;;  %v8214_v17 = vld [vmem:[%s10322_s1 + $0xd98] sm:$0xff]  ;;  %v8211_v30 = vld [vmem:[%s10322_s1 + $0xd80] sm:$0xff] }
 0x18f   :  { %5186 = vmatpush.bf16.msra.mxu1 %v8175_v18  ;;  %v4929_v12 = vadd.f32 %v4928_v45, %v4915_v40  ;;  %v4942_v21 = vpop.f32.mrf.mxu3  ;;  %v8222_v18 = vld [vmem:[%s10322_s1 + $0xdd8] sm:$0xff]  ;;  %v8219_v33 = vld [vmem:[%s10322_s1 + $0xdc0] sm:$0xff]  ;;  %v7741_v40 = vld [vmem:[%s10323_s0 + $0xd4] sm:$0xf] }
 0x190   :  { %5200 = vmatpush.bf16.msra.mxu2 %v8183_v25  ;;  %v8205_v25 = vld [vmem:[%s10322_s1 + $0xd50] sm:$0xff]  ;;  %v8258_v45 = vld [vmem:[%s10322_s1 + $0xef8] sm:$0xff]  ;;  %v8255_v59 = vld [vmem:[%s10322_s1 + $0xee0] sm:$0xff] }
 0x191   :  { %5214 = vmatpush.bf16.msra.mxu3 %v8191_v22  ;;  %v9922_v24 = vadd.f32 %v4942_v21, %v4929_v12  ;;  %v8213_v22 = vld [vmem:[%s10322_s1 + $0xd90] sm:$0xff] }
 0x192   :  { %5173 = vmatpush.bf16.msra.mxu0 %v8166_v26  ;;  %v8196_v26 = vld [vmem:[%s10322_s1 + $0xd08] sm:$0xff] }
 0x193   :  { %5187 = vmatpush.bf16.msra.mxu1 %v8174_v27  ;;  %v8204_v27 = vld [vmem:[%s10322_s1 + $0xd48] sm:$0xff] }
 0x194   :  { %5201 = vmatpush.bf16.msra.mxu2 %v8182_v28  ;;  %v8212_v28 = vld [vmem:[%s10322_s1 + $0xd88] sm:$0xff] }
 0x195   :  { %5215 = vmatpush.bf16.msra.mxu3 %v8190_v29  ;;  %v8220_v29 = vld [vmem:[%s10322_s1 + $0xdc8] sm:$0xff] }
 0x196   :  { %5174 = vmatpush.bf16.msra.mxu0 %v8165_v36  ;;  %v8242_v36 = vld [vmem:[%s10322_s1 + $0xe78] sm:$0xff] }
 0x197   :  { %5188 = vmatpush.bf16.msra.mxu1 %v8173_v37  ;;  %v5621_v37 = vld [vmem:[%s10323_s0 + $0xd0] sm:$0xf] }
 0x198   :  { %5202 = vmatpush.bf16.msra.mxu2 %v8181_v38  ;;  %v5629_v38 = vld [vmem:[%s10323_s0 + $0xd8] sm:$0xf]  ;;  %v5622_v12 = vor.u32 %v7773_v9, %v5621_v37  ;;  %v8264_v37 = vld [vmem:[%s10322_s1 + $0xf28] sm:$0xff] }
 0x199   :  { %5216 = vmatpush.bf16.msra.mxu3 %v8189_v39  ;;  %v7774_v39 = vld [vmem:[%s10323_s0 + $0x1d4] sm:$0xf0]  ;;  %v8272_v9 = vld [vmem:[%s10322_s1 + $0xf68] sm:$0xff] }
 0x19a   :  { %5175 = vmatpush.bf16.msra.mxu0 %v8164_v41  ;;  %v5623_v41 = vld [vmem:[%s10323_s0 + $0x1d0] sm:$0xf0]  ;;  %v5630_v21 = vor.u32 %v7774_v39, %v5629_v38  ;;  %v8280_v38 = vld [vmem:[%s10322_s1 + $0xfa8] sm:$0xff] }
 0x19b   :  { %5189 = vmatpush.bf16.msra.mxu1 %v8172_v42  ;;  %v7742_v42 = vld [vmem:[%s10323_s0 + $0xdc] sm:$0xf]  ;;  %v8288_v39 = vld [vmem:[%s10322_s1 + $0xfe8] sm:$0xff] }
 0x19c   :  { %5203 = vmatpush.bf16.msra.mxu2 %v8180_v43  ;;  %v5631_v43 = vld [vmem:[%s10323_s0 + $0x1d8] sm:$0xf0] }
 0x19d   :  { %5217 = vmatpush.bf16.msra.mxu3 %v8188_v44  ;;  %v8250_v44 = vld [vmem:[%s10322_s1 + $0xeb8] sm:$0xff] }
 0x19e   :  { %5176 = vmatpush.bf16.msra.mxu0 %v8163_v46  ;;  %v5626_v46 = vor.u32 %v7741_v40, %v5623_v41  ;;  %v8263_v40 = vld [vmem:[%s10322_s1 + $0xf20] sm:$0xff] }
 0x19f   :  { %5190 = vmatpush.bf16.msra.mxu1 %v8171_v47  ;;  %v5634_v47 = vor.u32 %v7742_v42, %v5631_v43  ;;  %v8271_v41 = vld [vmem:[%s10322_s1 + $0xf60] sm:$0xff] }
 0x1a0   :  { %5204 = vmatpush.bf16.msra.mxu2 %v8179_v48  ;;  %v8233_v48 = vld [vmem:[%s10322_s1 + $0xe30] sm:$0xff]  ;;  %v8279_v42 = vld [vmem:[%s10322_s1 + $0xfa0] sm:$0xff] }
 0x1a1   :  { %5218 = vmatpush.bf16.msra.mxu3 %v8187_v49  ;;  %5177 = vmatmul.bf16.vlgmr.msra.gmra.mxu0 %v5606_v62  ;;  %v8241_v49 = vld [vmem:[%s10322_s1 + $0xe70] sm:$0xff]  ;;  %v8246_v62 = vld [vmem:[%s10322_s1 + $0xe98] sm:$0xff]  ;;  %v8287_v43 = vld [vmem:[%s10322_s1 + $0xfe0] sm:$0xff] }
 0x1a2   :  { %5225 = vmatpush.bf16.msrb.mxu0 %v8202_v50  ;;  %5191 = vmatmul.bf16.vlgmr.msra.gmra.mxu1 %v5610_v0  ;;  %v8249_v50 = vld [vmem:[%s10322_s1 + $0xeb0] sm:$0xff] }
 0x1a3   :  { %5239 = vmatpush.bf16.msrb.mxu1 %v8210_v51  ;;  %5205 = vmatmul.bf16.vlgmr.msra.gmra.mxu2 %v5614_v63  ;;  %v8257_v51 = vld [vmem:[%s10322_s1 + $0xef0] sm:$0xff]  ;;  %v8254_v63 = vld [vmem:[%s10322_s1 + $0xed8] sm:$0xff] }
 0x1a4   :  { %5253 = vmatpush.bf16.msrb.mxu2 %v8218_v60  ;;  %5219 = vmatmul.bf16.vlgmr.msra.gmra.mxu3 %v5618_v1  ;;  %v8230_v60 = vld [vmem:[%s10322_s1 + $0xe18] sm:$0xff]  ;;  %v8229_v0 = vld [vmem:[%s10322_s1 + $0xe10] sm:$0xff] }
 0x1a5   :  { %5267 = vmatpush.bf16.msrb.mxu3 %v8226_v61  ;;  %v8238_v61 = vld [vmem:[%s10322_s1 + $0xe58] sm:$0xff]  ;;  %v8237_v1 = vld [vmem:[%s10322_s1 + $0xe50] sm:$0xff] }
 0x1a6   :  { %5226 = vmatpush.bf16.msrb.mxu0 %v8201_v2  ;;  %v8245_v2 = vld [vmem:[%s10322_s1 + $0xe90] sm:$0xff] }
 0x1a7   :  { %5240 = vmatpush.bf16.msrb.mxu1 %v8209_v3  ;;  %v8253_v3 = vld [vmem:[%s10322_s1 + $0xed0] sm:$0xff] }
 0x1a8   :  { %5254 = vmatpush.bf16.msrb.mxu2 %v8217_v4  ;;  %v8228_v4 = vld [vmem:[%s10322_s1 + $0xe08] sm:$0xff] }
 0x1a9   :  { %5268 = vmatpush.bf16.msrb.mxu3 %v8225_v5  ;;  %v8236_v5 = vld [vmem:[%s10322_s1 + $0xe48] sm:$0xff] }
 0x1aa   :  { %5227 = vmatpush.bf16.msrb.mxu0 %v8200_v6  ;;  %v8244_v6 = vld [vmem:[%s10322_s1 + $0xe88] sm:$0xff] }
 0x1ab   :  { %5241 = vmatpush.bf16.msrb.mxu1 %v8208_v7  ;;  %v8252_v7 = vld [vmem:[%s10322_s1 + $0xec8] sm:$0xff] }
 0x1ac   :  { %5255 = vmatpush.bf16.msrb.mxu2 %v8216_v8  ;;  %v8227_v8 = vld [vmem:[%s10322_s1 + $0xe00] sm:$0xff] }
 0x1ad   :  { %5269 = vmatpush.bf16.msrb.mxu3 %v8224_v10  ;;  %v8235_v10 = vld [vmem:[%s10322_s1 + $0xe40] sm:$0xff] }
 0x1ae   :  { %5228 = vmatpush.bf16.msrb.mxu0 %v8199_v11  ;;  %v8243_v11 = vld [vmem:[%s10322_s1 + $0xe80] sm:$0xff] }
 0x1af   :  { %5242 = vmatpush.bf16.msrb.mxu1 %v8207_v13  ;;  %v8251_v13 = vld [vmem:[%s10322_s1 + $0xec0] sm:$0xff] }
 0x1b0   :  { %5256 = vmatpush.bf16.msrb.mxu2 %v8215_v14  ;;  %v8266_v14 = vld [vmem:[%s10322_s1 + $0xf38] sm:$0xff] }
 0x1b1   :  { %5270 = vmatpush.bf16.msrb.mxu3 %v8223_v15  ;;  %v8274_v15 = vld [vmem:[%s10322_s1 + $0xf78] sm:$0xff] }
 0x1b2   :  { %5229 = vmatpush.bf16.msrb.mxu0 %v8198_v20  ;;  %v5637_v20 = vld [vmem:[%s10323_s0 + $0xe0] sm:$0xf] }
 0x1b3   :  { %5243 = vmatpush.bf16.msrb.mxu1 %v8206_v16  ;;  %v7775_v16 = vld [vmem:[%s10323_s0 + $0x1dc] sm:$0xf0] }
 0x1b4   :  { %5257 = vmatpush.bf16.msrb.mxu2 %v8214_v17  ;;  %v5645_v17 = vld [vmem:[%s10323_s0 + $0xe8] sm:$0xf] }
 0x1b5   :  { %5271 = vmatpush.bf16.msrb.mxu3 %v8222_v18  ;;  %v7776_v18 = vld [vmem:[%s10323_s0 + $0x1e4] sm:$0xf0] }
 0x1b6   :  { %5230 = vmatpush.bf16.msrb.mxu0 %v8197_v19  ;;  %v7743_v19 = vld [vmem:[%s10323_s0 + $0xe4] sm:$0xf] }
 0x1b7   :  { %5244 = vmatpush.bf16.msrb.mxu1 %v8205_v25  ;;  %v5639_v25 = vld [vmem:[%s10323_s0 + $0x1e0] sm:$0xf0] }
 0x1b8   :  { %5258 = vmatpush.bf16.msrb.mxu2 %v8213_v22  ;;  %v7744_v22 = vld [vmem:[%s10323_s0 + $0xec] sm:$0xf] }
 0x1b9   :  { %5272 = vmatpush.bf16.msrb.mxu3 %v8221_v23  ;;  %v5647_v23 = vld [vmem:[%s10323_s0 + $0x1e8] sm:$0xf0] }
 0x1ba   :  { %5231 = vmatpush.bf16.msrb.mxu0 %v8196_v26  ;;  %v8282_v26 = vld [vmem:[%s10322_s1 + $0xfb8] sm:$0xff] }
 0x1bb   :  { %5245 = vmatpush.bf16.msrb.mxu1 %v8204_v27  ;;  %v8290_v27 = vld [vmem:[%s10322_s1 + $0xff8] sm:$0xff] }
 0x1bc   :  { %5259 = vmatpush.bf16.msrb.mxu2 %v8212_v28  ;;  %v5638_v28 = vor.u32 %v7775_v16, %v5637_v20 }
 0x1bd   :  { %5273 = vmatpush.bf16.msrb.mxu3 %v8220_v29  ;;  %v5646_v29 = vor.u32 %v7776_v18, %v5645_v17 }
 0x1be   :  { %5232 = vmatpush.bf16.msrb.mxu0 %v8195_v31  ;;  %v5642_v31 = vor.u32 %v7743_v19, %v5639_v25 }
 0x1bf   :  { %5246 = vmatpush.bf16.msrb.mxu1 %v8203_v32  ;;  %v5650_v32 = vor.u32 %v7744_v22, %v5647_v23 }
 0x1c0   :  { %5260 = vmatpush.bf16.msrb.mxu2 %v8211_v30  ;;  %v8265_v30 = vld [vmem:[%s10322_s1 + $0xf30] sm:$0xff] }
 0x1c1   :  { %5274 = vmatpush.bf16.msrb.mxu3 %v8219_v33  ;;  %5233 = vmatmul.bf16.vlgmr.msrb.gmra.mxu0 %v5622_v12  ;;  %v8273_v33 = vld [vmem:[%s10322_s1 + $0xf70] sm:$0xff]  ;;  %v8278_v12 = vld [vmem:[%s10322_s1 + $0xf98] sm:$0xff] }
 0x1c2   :  { %5281 = vmatpush.bf16.msra.mxu0 %v8234_v34  ;;  %5247 = vmatmul.bf16.vlgmr.msrb.gmra.mxu1 %v5626_v46  ;;  %v8281_v34 = vld [vmem:[%s10322_s1 + $0xfb0] sm:$0xff] }
 0x1c3   :  { %5295 = vmatpush.bf16.msra.mxu1 %v8242_v36  ;;  %5261 = vmatmul.bf16.vlgmr.msrb.gmra.mxu2 %v5630_v21  ;;  %v8289_v36 = vld [vmem:[%s10322_s1 + $0xff0] sm:$0xff]  ;;  %v8286_v21 = vld [vmem:[%s10322_s1 + $0xfd8] sm:$0xff] }
 0x1c4   :  { %5309 = vmatpush.bf16.msra.mxu2 %v8250_v44  ;;  %5275 = vmatmul.bf16.vlgmr.msrb.gmra.mxu3 %v5634_v47  ;;  %v8262_v44 = vld [vmem:[%s10322_s1 + $0xf18] sm:$0xff]  ;;  %v8261_v46 = vld [vmem:[%s10322_s1 + $0xf10] sm:$0xff] }
 0x1c5   :  { %5323 = vmatpush.bf16.msra.mxu3 %v8258_v45  ;;  %v8270_v45 = vld [vmem:[%s10322_s1 + $0xf58] sm:$0xff]  ;;  %v8269_v47 = vld [vmem:[%s10322_s1 + $0xf50] sm:$0xff] }
 0x1c6   :  { %5282 = vmatpush.bf16.msra.mxu0 %v8233_v48  ;;  %v8277_v48 = vld [vmem:[%s10322_s1 + $0xf90] sm:$0xff] }
 0x1c7   :  { %5296 = vmatpush.bf16.msra.mxu1 %v8241_v49  ;;  %v8285_v49 = vld [vmem:[%s10322_s1 + $0xfd0] sm:$0xff] }
 0x1c8   :  { %5310 = vmatpush.bf16.msra.mxu2 %v8249_v50  ;;  %v8260_v50 = vld [vmem:[%s10322_s1 + $0xf08] sm:$0xff] }
 0x1c9   :  { %5324 = vmatpush.bf16.msra.mxu3 %v8257_v51  ;;  %v8268_v51 = vld [vmem:[%s10322_s1 + $0xf48] sm:$0xff] }
 0x1ca   :  { %5283 = vmatpush.bf16.msra.mxu0 %v8232_v52  ;;  %v8276_v52 = vld [vmem:[%s10322_s1 + $0xf88] sm:$0xff] }
 0x1cb   :  { %5297 = vmatpush.bf16.msra.mxu1 %v8240_v53  ;;  %v8284_v53 = vld [vmem:[%s10322_s1 + $0xfc8] sm:$0xff] }
 0x1cc   :  { %5311 = vmatpush.bf16.msra.mxu2 %v8248_v54  ;;  %v8259_v54 = vld [vmem:[%s10322_s1 + $0xf00] sm:$0xff] }
 0x1cd   :  { %5325 = vmatpush.bf16.msra.mxu3 %v8256_v55  ;;  %v8267_v55 = vld [vmem:[%s10322_s1 + $0xf40] sm:$0xff] }
 0x1ce   :  { %5284 = vmatpush.bf16.msra.mxu0 %v8231_v56  ;;  %v8275_v56 = vld [vmem:[%s10322_s1 + $0xf80] sm:$0xff] }
 0x1cf   :  { %5298 = vmatpush.bf16.msra.mxu1 %v8239_v57  ;;  %v8283_v57 = vld [vmem:[%s10322_s1 + $0xfc0] sm:$0xff] }
 0x1d0   :  { %5312 = vmatpush.bf16.msra.mxu2 %v8247_v58  ;;  %v5653_v58 = vld [vmem:[%s10323_s0 + $0xf0] sm:$0xf] }
 0x1d1   :  { %5326 = vmatpush.bf16.msra.mxu3 %v8255_v59  ;;  %v7777_v59 = vld [vmem:[%s10323_s0 + $0x1ec] sm:$0xf0] }
 0x1d2   :  { %5285 = vmatpush.bf16.msra.mxu0 %v8230_v60  ;;  %v7745_v60 = vld [vmem:[%s10323_s0 + $0xf4] sm:$0xf] }
 0x1d3   :  { %5299 = vmatpush.bf16.msra.mxu1 %v8238_v61  ;;  %v5655_v61 = vld [vmem:[%s10323_s0 + $0x1f0] sm:$0xf0] }
 0x1d4   :  { %5313 = vmatpush.bf16.msra.mxu2 %v8246_v62  ;;  %v5661_v62 = vld [vmem:[%s10323_s0 + $0xf8] sm:$0xf] }
 0x1d5   :  { %5327 = vmatpush.bf16.msra.mxu3 %v8254_v63  ;;  %v7778_v63 = vld [vmem:[%s10323_s0 + $0x1f4] sm:$0xf0] }
 0x1d6   :  { %5286 = vmatpush.bf16.msra.mxu0 %v8229_v0  ;;  %v7746_v0 = vld [vmem:[%s10323_s0 + $0xfc] sm:$0xf] }
 0x1d7   :  { %5300 = vmatpush.bf16.msra.mxu1 %v8237_v1  ;;  %v5663_v1 = vld [vmem:[%s10323_s0 + $0x1f8] sm:$0xf0] }
 0x1d8   :  { %5314 = vmatpush.bf16.msra.mxu2 %v8245_v2  ;;  %v5654_v2 = vor.u32 %v7777_v59, %v5653_v58 }
 0x1d9   :  { %5328 = vmatpush.bf16.msra.mxu3 %v8253_v3  ;;  %v5658_v3 = vor.u32 %v7745_v60, %v5655_v61 }
 0x1da   :  { %5287 = vmatpush.bf16.msra.mxu0 %v8228_v4  ;;  %v5662_v4 = vor.u32 %v7778_v63, %v5661_v62 }
 0x1db   :  { %5301 = vmatpush.bf16.msra.mxu1 %v8236_v5  ;;  %v5666_v5 = vor.u32 %v7746_v0, %v5663_v1 }
 0x1dc   :  { %5315 = vmatpush.bf16.msra.mxu2 %v8244_v6  ;;  %v4954_v6 = vpop.f32.mrf.mxu0 }
 0x1dd   :  { %5329 = vmatpush.bf16.msra.mxu3 %v8252_v7  ;;  %v4968_v7 = vpop.f32.mrf.mxu1 }
 0x1de   :  { %5288 = vmatpush.bf16.msra.mxu0 %v8227_v8  ;;  %v4982_v8 = vpop.f32.mrf.mxu2 }
 0x1df   :  { %5302 = vmatpush.bf16.msra.mxu1 %v8235_v10  ;;  %v4996_v10 = vpop.f32.mrf.mxu3 }
 0x1e0   :  { %5316 = vmatpush.bf16.msra.mxu2 %v8243_v11 }
 0x1e1   :  { %5330 = vmatpush.bf16.msra.mxu3 %v8251_v13  ;;  %5289 = vmatmul.bf16.vlgmr.msra.gmra.mxu0 %v5638_v28 }
 0x1e2   :  { %5337 = vmatpush.bf16.msrb.mxu0 %v8266_v14  ;;  %5303 = vmatmul.bf16.vlgmr.msra.gmra.mxu1 %v5642_v31  ;;  %v4955_v31 = vadd.f32 %v4954_v6, %v9884_v35 }
 0x1e3   :  { %5351 = vmatpush.bf16.msrb.mxu1 %v8274_v15  ;;  %5317 = vmatmul.bf16.vlgmr.msra.gmra.mxu2 %v5646_v29 }
 0x1e4   :  { %5365 = vmatpush.bf16.msrb.mxu2 %v8282_v26  ;;  %5331 = vmatmul.bf16.vlgmr.msra.gmra.mxu3 %v5650_v32  ;;  %v4956_v11 = vpop.f32.mrf.mxu0 }
 0x1e5   :  { %5379 = vmatpush.bf16.msrb.mxu3 %v8290_v27  ;;  %v4970_v13 = vpop.f32.mrf.mxu1 }
 0x1e6   :  { %5338 = vmatpush.bf16.msrb.mxu0 %v8265_v30  ;;  %v4984_v14 = vpop.f32.mrf.mxu2  ;;  %v4969_v30 = vadd.f32 %v4968_v7, %v4955_v31 }
 0x1e7   :  { %5352 = vmatpush.bf16.msrb.mxu1 %v8273_v33  ;;  %v4998_v15 = vpop.f32.mrf.mxu3 }
 0x1e8   :  { %5366 = vmatpush.bf16.msrb.mxu2 %v8281_v34  ;;  %v4983_v34 = vadd.f32 %v4982_v8, %v4969_v30 }
 0x1e9   :  { %5380 = vmatpush.bf16.msrb.mxu3 %v8289_v36  ;;  %v4957_v36 = vadd.f32 %v4956_v11, %v9922_v24 }
 0x1ea   :  { %5339 = vmatpush.bf16.msrb.mxu0 %v8264_v37 }
 0x1eb   :  { %5353 = vmatpush.bf16.msrb.mxu1 %v8272_v9 }
 0x1ec   :  { %5367 = vmatpush.bf16.msrb.mxu2 %v8280_v38  ;;  %v5010_v20 = vpop.f32.mrf.mxu0  ;;  %v4997_v38 = vadd.f32 %v4996_v10, %v4983_v34 }
 0x1ed   :  { %5381 = vmatpush.bf16.msrb.mxu3 %v8288_v39  ;;  %v5024_v16 = vpop.f32.mrf.mxu1 }
 0x1ee   :  { %5340 = vmatpush.bf16.msrb.mxu0 %v8263_v40  ;;  %v5038_v17 = vpop.f32.mrf.mxu2  ;;  %v4971_v40 = vadd.f32 %v4970_v13, %v4957_v36 }
 0x1ef   :  { %5354 = vmatpush.bf16.msrb.mxu1 %v8271_v41  ;;  %v5052_v18 = vpop.f32.mrf.mxu3  ;;  %v5011_v41 = vadd.f32 %v5010_v20, %v4997_v38 }
 0x1f0   :  { %5368 = vmatpush.bf16.msrb.mxu2 %v8279_v42 }
 0x1f1   :  { %5382 = vmatpush.bf16.msrb.mxu3 %v8287_v43  ;;  %v4985_v43 = vadd.f32 %v4984_v14, %v4971_v40 }
 0x1f2   :  { %5341 = vmatpush.bf16.msrb.mxu0 %v8262_v44  ;;  %v5025_v44 = vadd.f32 %v5024_v16, %v5011_v41 }
 0x1f3   :  { %5355 = vmatpush.bf16.msrb.mxu1 %v8270_v45 }
 0x1f4   :  { %5369 = vmatpush.bf16.msrb.mxu2 %v8278_v12  ;;  %v5012_v19 = vpop.f32.mrf.mxu0 }
 0x1f5   :  { %5383 = vmatpush.bf16.msrb.mxu3 %v8286_v21  ;;  %v5026_v25 = vpop.f32.mrf.mxu1  ;;  %v4999_v21 = vadd.f32 %v4998_v15, %v4985_v43 }
 0x1f6   :  { %5342 = vmatpush.bf16.msrb.mxu0 %v8261_v46  ;;  %v5040_v22 = vpop.f32.mrf.mxu2  ;;  %v5039_v46 = vadd.f32 %v5038_v17, %v5025_v44 }
 0x1f7   :  { %5356 = vmatpush.bf16.msrb.mxu1 %v8269_v47  ;;  %v5054_v23 = vpop.f32.mrf.mxu3  ;;  %v5013_v35 = vadd.f32 %v5012_v19, %v4999_v21 }
 0x1f8   :  { %5370 = vmatpush.bf16.msrb.mxu2 %v8277_v48  ;;  %v5053_v48 = vadd.f32 %v5052_v18, %v5039_v46 }
 0x1f9   :  { %5384 = vmatpush.bf16.msrb.mxu3 %v8285_v49 }
 0x1fa   :  { %5343 = vmatpush.bf16.msrb.mxu0 %v8260_v50  ;;  %v5027_v50 = vadd.f32 %v5026_v25, %v5013_v35 }
 0x1fb   :  { %5357 = vmatpush.bf16.msrb.mxu1 %v8268_v51 }
 0x1fc   :  { %5371 = vmatpush.bf16.msrb.mxu2 %v8276_v52  ;;  %v5066_v26 = vpop.f32.mrf.mxu0  ;;  %v5041_v24 = vadd.f32 %v5040_v22, %v5027_v50 }
 0x1fd   :  { %5385 = vmatpush.bf16.msrb.mxu3 %v8284_v53  ;;  %v5080_v27 = vpop.f32.mrf.mxu1  ;;  %v5067_v51 = vadd.f32 %v5066_v26, %v5053_v48 }
 0x1fe   :  { %5344 = vmatpush.bf16.msrb.mxu0 %v8259_v54  ;;  %v5094_v28 = vpop.f32.mrf.mxu2 }
 0x1ff   :  { %5358 = vmatpush.bf16.msrb.mxu1 %v8267_v55  ;;  %v5108_v29 = vpop.f32.mrf.mxu3  ;;  %v5081_v54 = vadd.f32 %v5080_v27, %v5067_v51 }
 0x200   :  { %5372 = vmatpush.bf16.msrb.mxu2 %v8275_v56  ;;  %v5055_v56 = vadd.f32 %v5054_v23, %v5041_v24 }
 0x201   :  { %5386 = vmatpush.bf16.msrb.mxu3 %v8283_v57  ;;  %5345 = vmatmul.bf16.vlgmr.msrb.gmra.mxu0 %v5654_v2  ;;  %v5095_v57 = vadd.f32 %v5094_v28, %v5081_v54 }
 0x202   :  { %5359 = vmatmul.bf16.vlgmr.msrb.gmra.mxu1 %v5658_v3 }
 0x203   :  { %5373 = vmatmul.bf16.vlgmr.msrb.gmra.mxu2 %v5662_v4  ;;  %v5109_v60 = vadd.f32 %v5108_v29, %v5095_v57 }
 0x204   :  { %5387 = vmatmul.bf16.vlgmr.msrb.gmra.mxu3 %v5666_v5  ;;  %v5068_v32 = vpop.f32.mrf.mxu0 }
 0x205   :  { %v5082_v33 = vpop.f32.mrf.mxu1  ;;  %v5069_v59 = vadd.f32 %v5068_v32, %v5055_v56 }
 0x206   :  { %v5096_v37 = vpop.f32.mrf.mxu2 }
 0x207   :  { %v5110_v9 = vpop.f32.mrf.mxu3  ;;  %v5083_v63 = vadd.f32 %v5082_v33, %v5069_v59 }
 0x209   :  { %v5097_v1 = vadd.f32 %v5096_v37, %v5083_v63 }
 0x20b   :  { %v5111_v5 = vadd.f32 %v5110_v9, %v5097_v1 }
 0x20c   :  { %v5122_v39 = vpop.f32.mrf.mxu0 }
 0x20d   :  { %v5136_v42 = vpop.f32.mrf.mxu1  ;;  %v5123_v0 = vadd.f32 %v5122_v39, %v5109_v60 }
 0x20e   :  { %v5150_v45 = vpop.f32.mrf.mxu2 }
 0x20f   :  { %v5164_v12 = vpop.f32.mrf.mxu3  ;;  %v5137_v3 = vadd.f32 %v5136_v42, %v5123_v0  ;;  %v8292_v0 = vld [vmem:[%s10325_s3] ss:$0 sm:$0xff] }
 0x211   :  { %v5151_v6 = vadd.f32 %v5150_v45, %v5137_v3 }
 0x213   :  { %v5165_v11 = vadd.f32 %v5164_v12, %v5151_v6 }
 0x214   :  { %v5124_v47 = vpop.f32.mrf.mxu0 }
 0x215   :  { %v5138_v49 = vpop.f32.mrf.mxu1  ;;  %v5125_v7 = vadd.f32 %v5124_v47, %v5111_v5 }
 0x216   :  { %v5152_v52 = vpop.f32.mrf.mxu2 }
 0x217   :  { %v5166_v53 = vpop.f32.mrf.mxu3  ;;  %v5139_v14 = vadd.f32 %v5138_v49, %v5125_v7 }
 0x219   :  { %v5153_v16 = vadd.f32 %v5152_v52, %v5139_v14 }
 0x21b   :  { %v5167_v25 = vadd.f32 %v5166_v53, %v5153_v16 }
 0x21e   :  { %v5178_v55 = vpop.f32.mrf.mxu0 }
 0x21f   :  { %v5192_v58 = vpop.f32.mrf.mxu1  ;;  %v5179_v15 = vadd.f32 %v5178_v55, %v5165_v11 }
 0x221   :  { %v5193_v17 = vadd.f32 %v5192_v58, %v5179_v15 }
 0x226   :  { %v5206_v61 = vpop.f32.mrf.mxu2  ;;  %v5180_v2 = vpop.f32.mrf.mxu0 }
 0x227   :  { %v5220_v62 = vpop.f32.mrf.mxu3  ;;  %v5194_v4 = vpop.f32.mrf.mxu1  ;;  %v5207_v22 = vadd.f32 %v5206_v61, %v5193_v17  ;;  %v5181_v23 = vadd.f32 %v5180_v2, %v5167_v25  ;;  %v8291_v61 = vld [vmem:[%s10324_s2] ss:$0 sm:$0xff] }
 0x229   :  { %v5221_v27 = vadd.f32 %v5220_v62, %v5207_v22  ;;  %v5195_v29 = vadd.f32 %v5194_v4, %v5181_v23 }
 0x22e   :  { %v5208_v8 = vpop.f32.mrf.mxu2 }
 0x22f   :  { %v5222_v10 = vpop.f32.mrf.mxu3  ;;  %v5209_v32 = vadd.f32 %v5208_v8, %v5195_v29 }
 0x231   :  { %v5223_v37 = vadd.f32 %v5222_v10, %v5209_v32 }
 0x23e   :  { %v5234_v13 = vpop.f32.mrf.mxu0 }
 0x23f   :  { %v5248_v20 = vpop.f32.mrf.mxu1  ;;  %v5235_v31 = vadd.f32 %v5234_v13, %v5221_v27 }
 0x241   :  { %v5249_v34 = vadd.f32 %v5248_v20, %v5235_v31 }
 0x246   :  { %v5262_v18 = vpop.f32.mrf.mxu2  ;;  %v5236_v26 = vpop.f32.mrf.mxu0 }
 0x247   :  { %v5276_v19 = vpop.f32.mrf.mxu3  ;;  %v5250_v28 = vpop.f32.mrf.mxu1  ;;  %v5263_v9 = vadd.f32 %v5262_v18, %v5249_v34  ;;  %v5237_v39 = vadd.f32 %v5236_v26, %v5223_v37 }
 0x249   :  { %v5277_v40 = vadd.f32 %v5276_v19, %v5263_v9  ;;  %v5251_v43 = vadd.f32 %v5250_v28, %v5237_v39 }
 0x24e   :  { %v5264_v30 = vpop.f32.mrf.mxu2 }
 0x24f   :  { %v5278_v33 = vpop.f32.mrf.mxu3  ;;  %v5265_v45 = vadd.f32 %v5264_v30, %v5251_v43 }
 0x251   :  { %v5279_v35 = vadd.f32 %v5278_v33, %v5265_v45 }
 0x25e   :  { %v5290_v36 = vpop.f32.mrf.mxu0 }
 0x25f   :  { %v5304_v38 = vpop.f32.mrf.mxu1  ;;  %v5291_v44 = vadd.f32 %v5290_v36, %v5277_v40 }
 0x261   :  { %v5305_v21 = vadd.f32 %v5304_v38, %v5291_v44 }
 0x266   :  { %v5318_v41 = vpop.f32.mrf.mxu2  ;;  %v5292_v12 = vpop.f32.mrf.mxu0 }
 0x267   :  { %v5332_v42 = vpop.f32.mrf.mxu3  ;;  %v5306_v46 = vpop.f32.mrf.mxu1  ;;  %v5319_v47 = vadd.f32 %v5318_v41, %v5305_v21  ;;  %v5293_v48 = vadd.f32 %v5292_v12, %v5279_v35 }
 0x269   :  { %v5333_v51 = vadd.f32 %v5332_v42, %v5319_v47  ;;  %v5307_v52 = vadd.f32 %v5306_v46, %v5293_v48 }
 0x26e   :  { %v5320_v49 = vpop.f32.mrf.mxu2 }
 0x26f   :  { %v5334_v50 = vpop.f32.mrf.mxu3  ;;  %v5321_v55 = vadd.f32 %v5320_v49, %v5307_v52 }
 0x271   :  { %v5335_v59 = vadd.f32 %v5334_v50, %v5321_v55 }
 0x27e   :  { %v5346_v24 = vpop.f32.mrf.mxu0 }
 0x27f   :  { %v5347_v53 = vadd.f32 %v5346_v24, %v5333_v51  ;;  %v5360_v54 = vpop.f32.mrf.mxu1 }
 0x281   :  { %v5361_v56 = vadd.f32 %v5360_v54, %v5347_v53 }
 0x286   :  { %v5374_v57 = vpop.f32.mrf.mxu2  ;;  %v5348_v62 = vpop.f32.mrf.mxu0 }
 0x287   :  { %v5388_v58 = vpop.f32.mrf.mxu3  ;;  %v5375_v60 = vadd.f32 %v5374_v57, %v5361_v56  ;;  %v5349_v1 = vadd.f32 %v5348_v62, %v5335_v59  ;;  %v5362_v3 = vpop.f32.mrf.mxu1 }
 0x289   :  { %v5389_v63 = vadd.f32 %v5388_v58, %v5375_v60  ;;  %v5363_v5 = vadd.f32 %v5362_v3, %v5349_v1 }
 0x28b   :  { %v5397_v2 = vmul.f32 %v8291_v61, %v5389_v63 }
 0x28d   :  { %v5403_v4 = vadd.f32 %v8292_v0, %v5397_v2 }
 0x28e   :  { %v5376_v6 = vpop.f32.mrf.mxu2 }
 0x28f   :  { %5405 = vst [vmem:[%s10326_s4] sm:$0xff] %v5403_v4  ;;  %v5377_v7 = vadd.f32 %v5376_v6, %v5363_v5  ;;  %v5390_v8 = vpop.f32.mrf.mxu3 }
 0x291   :  { %v5391_v10 = vadd.f32 %v5390_v8, %v5377_v7 }
 0x293   :  { %v5398_v11 = vmul.f32 %v8291_v61, %v5391_v10 }
 0x295   :  { %v5404_v13 = vadd.f32 %v8292_v0, %v5398_v11 }
 0x297   :  { %5406 = vst [vmem:[%s10326_s4 + $0x8] sm:$0xff] %v5404_v13 }

</bundles_post_ra>
